<compile_context>
chip_gen: v6e
topology: v6e:2x2x1
jax: 0.10.0
libtpu: 0.0.40
codegen_flags: <defaults>
</compile_context>

<pallas_src>
import functools
import math

import jax
import jax.numpy as jnp
from jax import lax
from jax.experimental import pallas as pl
from jax.experimental.pallas import tpu as pltpu

LANE = 128
SUBLANE = 8


def violence_lstm_kernel(
    x_ref,      # (T, BB, D)    time-major, batch zero-padded
    wih0_ref,   # (D, 4H)       gate column order [i, f, o, g]
    whh0_ref,   # (4H, 4H)      rows >= H are zero
    b0_ref,     # (1, 4H)       b_ih0 + b_hh0 (reordered)
    wih1_ref,   # (4H, 4H)      rows >= H are zero
    whh1_ref,   # (4H, 4H)      rows >= H are zero
    b1_ref,     # (1, 4H)       b_ih1 + b_hh1 (reordered)
    fc1w_ref,   # (4H, H // 2)  rows >= H are zero
    fc1b_ref,   # (1, H // 2)
    fc2w_ref,   # (H // 2, LANE)  zero-padded to a full lane width
    fc2b_ref,   # (1, LANE)
    out_ref,    # (BB, LANE)
):
    T, BB, D = x_ref.shape
    G4 = whh0_ref.shape[0]          # 4H
    H = G4 // 4
    f32 = jnp.float32

    # ---- hoisted loads / constants (outside the recurrence) ----------------
    whh0 = whh0_ref[...]
    wih1 = wih1_ref[...]
    whh1 = whh1_ref[...]
    b1b = jnp.broadcast_to(b1_ref[...], (BB, G4))
    # lanes [0, 3H) hold the sigmoid gates (i, f, o); lanes [3H, 4H) hold g.
    ifo_mask = lax.broadcasted_iota(jnp.int32, (BB, G4), 1) < 3 * H

    # ---- layer-0 input projection for ALL timesteps at once ----------------
    # (T*BB, D) @ (D, 4H): M = T*BB rows (better MXU utilization), bias folded.
    x2 = x_ref[...].reshape(T * BB, D)            # merge leading dims (layout-preserving)
    pre0 = (jnp.dot(x2, wih0_ref[...], preferred_element_type=f32)
            + b0_ref[...])                        # (T*BB, 4H)

    def sigmoid(v):
        # One EUP tanh instead of exp + divide.
        return 0.5 * jnp.tanh(0.5 * v) + 0.5

    def gates_to_hc(gates, c_prev):
        # Activations over the full gates vreg, blended with the hoisted mask.
        act = jnp.where(ifo_mask, sigmoid(gates), jnp.tanh(gates))
        i = act                                      # lanes [0, H) hold i
        f = pltpu.roll(act, shift=3 * H, axis=1)     # lanes [0, H) hold f
        o = pltpu.roll(act, shift=2 * H, axis=1)     # lanes [0, H) hold o
        g = pltpu.roll(act, shift=H, axis=1)         # lanes [0, H) hold g
        c_new = f * c_prev + i * g                   # lanes >= H: bounded garbage
        h_new = o * jnp.tanh(c_new)                  # (zeroed out by padded weight rows)
        return h_new, c_new

    zeros = jnp.zeros((BB, G4), f32)
    h0 = c0 = h1 = c1 = zeros

    # T is small & static: full unroll via a Python loop -> static slicing of
    # the vreg-resident pre-gates, full LLO scheduler visibility.
    for t in range(T):
        # Depends only on h1_{t-1}: overlaps the entire layer-0 cell below.
        r1 = jnp.dot(h1, whh1, preferred_element_type=f32) + b1b
        # Layer 0: recurrent matmul only; input projection + b0 precomputed.
        g0 = pre0[t * BB:(t + 1) * BB, :] + jnp.dot(
            h0, whh0, preferred_element_type=f32)
        h0, c0 = gates_to_hc(g0, c0)
        # nn.LSTM inter-layer dropout (p=0.5) is identity at inference time.
        # Layer 1.
        g1 = jnp.dot(h0, wih1, preferred_element_type=f32) + r1
        h1, c1 = gates_to_hc(g1, c1)

    # ---- classification head: relu(fc1(h_T)) -> fc2, lane-dense output -----
    z = jnp.maximum(
        jnp.dot(h1, fc1w_ref[...], preferred_element_type=f32) + fc1b_ref[...],
        0.0)
    out = (jnp.dot(z, fc2w_ref[...], preferred_element_type=f32)
           + fc2b_ref[...])
    out_ref[...] = out.astype(out_ref.dtype)


def _round_up(n, m):
    return ((n + m - 1) // m) * m


@functools.partial(jax.jit, static_argnames=("num_classes",))
def violence_lstm_forward(x, kparams, num_classes):
    """x: (B, T, D) float32, batch_first like the PyTorch module."""
    B, T, D = x.shape
    assert num_classes <= LANE, "fc2 output is padded to a single 128-lane slab"

    Bp = max(SUBLANE, _round_up(B, SUBLANE))
    # Batch block per grid step: whole (small) batch on one core, or 256-row
    # blocks sharded across TensorCores (v7x) once the batch grows.
    BB = Bp if Bp <= 256 else 256
    Bp = _round_up(Bp, BB)
    grid = (Bp // BB,)

    # Zero-pad the batch to a sublane/block multiple; padded rows are sliced off.
    x_p = jnp.zeros((Bp, T, D), jnp.float32).at[:B].set(x)
    x_tm = jnp.transpose(x_p, (1, 0, 2))          # (T, Bp, D) time-major

    def full(a):
        return pl.BlockSpec(a.shape, lambda b, _nd=a.ndim: (0,) * _nd)

    in_specs = [
        pl.BlockSpec((T, BB, D), lambda b: (0, b, 0)),
        full(kparams["wih0"]), full(kparams["whh0"]), full(kparams["b0"]),
        full(kparams["wih1"]), full(kparams["whh1"]), full(kparams["b1"]),
        full(kparams["fc1w"]), full(kparams["fc1b"]),
        full(kparams["fc2w"]), full(kparams["fc2b"]),
    ]
    out_p = pl.pallas_call(
        violence_lstm_kernel,
        out_shape=jax.ShapeDtypeStruct((Bp, LANE), jnp.float32),
        grid=grid,
        in_specs=in_specs,
        out_specs=pl.BlockSpec((BB, LANE), lambda b: (b, 0)),
        compiler_params=pltpu.CompilerParams(
            dimension_semantics=("parallel",)),
    )(
        x_tm,
        kparams["wih0"], kparams["whh0"], kparams["b0"],
        kparams["wih1"], kparams["whh1"], kparams["b1"],
        kparams["fc1w"], kparams["fc1b"],
        kparams["fc2w"], kparams["fc2b"],
    )
    return out_p[:B, :num_classes]


def init_pt_params(key, input_size, hidden_size, num_classes):
    """PyTorch-layout params: uniform(-1/sqrt(H), 1/sqrt(H)), gate order [i,f,g,o]."""
    H = hidden_size
    k = 1.0 / math.sqrt(H)
    names_shapes = [
        ("w_ih_l0", (4 * H, input_size)), ("w_hh_l0", (4 * H, H)),
        ("b_ih_l0", (4 * H,)), ("b_hh_l0", (4 * H,)),
        ("w_ih_l1", (4 * H, H)), ("w_hh_l1", (4 * H, H)),
        ("b_ih_l1", (4 * H,)), ("b_hh_l1", (4 * H,)),
        ("fc1_w", (H // 2, H)), ("fc1_b", (H // 2,)),
        ("fc2_w", (num_classes, H // 2)), ("fc2_b", (num_classes,)),
    ]
    keys = jax.random.split(key, len(names_shapes))
    return {n: jax.random.uniform(sk, s, jnp.float32, -k, k)
            for sk, (n, s) in zip(keys, names_shapes)}


def pack_params(pt):
    """PyTorch-layout params -> kernel layout (gate-reordered, row-padded)."""
    H = pt["w_hh_l0"].shape[1]
    G4 = 4 * H
    C = pt["fc2_w"].shape[0]
    assert C <= LANE, "num_classes must fit in one 128-lane output slab"

    def reorder_gates(a):   # rows [i,f,g,o] -> [i,f,o,g] along axis 0
        i, f, g, o = jnp.split(a, 4, axis=0)
        return jnp.concatenate([i, f, o, g], axis=0)

    def pad_rows(w_t, rows):   # (H, cols) -> (rows, cols) with zero rows >= H
        return jnp.zeros((rows, w_t.shape[1]), jnp.float32).at[:w_t.shape[0]].set(w_t)

    wih0 = reorder_gates(pt["w_ih_l0"]).T                     # (D, 4H)
    whh0 = pad_rows(reorder_gates(pt["w_hh_l0"]).T, G4)       # (4H, 4H)
    wih1 = pad_rows(reorder_gates(pt["w_ih_l1"]).T, G4)       # (4H, 4H)
    whh1 = pad_rows(reorder_gates(pt["w_hh_l1"]).T, G4)       # (4H, 4H)
    fc1w = pad_rows(pt["fc1_w"].T, G4)                        # (4H, H//2)
    fc2w = jnp.zeros((H // 2, LANE), jnp.float32).at[:, :C].set(pt["fc2_w"].T)
    fc2b = jnp.zeros((1, LANE), jnp.float32).at[:, :C].set(pt["fc2_b"])

    return {
        "wih0": wih0,
        "whh0": whh0,
        "b0": reorder_gates(pt["b_ih_l0"] + pt["b_hh_l0"]).reshape(1, G4),
        "wih1": wih1,
        "whh1": whh1,
        "b1": reorder_gates(pt["b_ih_l1"] + pt["b_hh_l1"]).reshape(1, G4),
        "fc1w": fc1w,
        "fc1b": pt["fc1_b"].reshape(1, -1),
        "fc2w": fc2w,
        "fc2b": fc2b,
    }


def reference_forward(x, pt):
    """Pure-JAX reference replicating PyTorch nn.LSTM + head (eval mode)."""
    B, T, D = x.shape
    H = pt["w_hh_l0"].shape[1]

    def cell(x_in, h, c, w_ih, w_hh, b_ih, b_hh):
        g = x_in @ w_ih.T + h @ w_hh.T + b_ih + b_hh
        i = jax.nn.sigmoid(g[:, 0 * H:1 * H])
        f = jax.nn.sigmoid(g[:, 1 * H:2 * H])
        gg = jnp.tanh(g[:, 2 * H:3 * H])
        o = jax.nn.sigmoid(g[:, 3 * H:4 * H])
        c_new = f * c + i * gg
        return o * jnp.tanh(c_new), c_new

    h0 = c0 = h1 = c1 = jnp.zeros((B, H), jnp.float32)
    for t in range(T):
        h0, c0 = cell(x[:, t, :], h0, c0,
                      pt["w_ih_l0"], pt["w_hh_l0"], pt["b_ih_l0"], pt["b_hh_l0"])
        h1, c1 = cell(h0, h1, c1,
                      pt["w_ih_l1"], pt["w_hh_l1"], pt["b_ih_l1"], pt["b_hh_l1"])
    z = jnp.maximum(h1 @ pt["fc1_w"].T + pt["fc1_b"], 0.0)
    return z @ pt["fc2_w"].T + pt["fc2_b"]


if __name__ == "__main__":
    # Small shapes consistent with the module's forward:
    # batch=2, seq_len=8, input_size=16, hidden_size=32, num_classes=2.
    B, T, D, H, C = 2, 8, 16, 32, 2

    key = jax.random.PRNGKey(0)
    k_x, k_p = jax.random.split(key)
    x = jax.random.normal(k_x, (B, T, D), jnp.float32)

    pt_params = init_pt_params(k_p, input_size=D, hidden_size=H, num_classes=C)
    kparams = pack_params(pt_params)

    out = violence_lstm_forward(x, kparams, num_classes=C)
    out = jax.block_until_ready(out)

    ref = reference_forward(x, pt_params)
    assert out.shape == (B, C), out.shape
    assert jnp.allclose(out, ref, atol=1e-4, rtol=1e-4), (out, ref)

    print("KERNEL_OK")
</pallas_src>

<mosaic_0001>
module attributes {stable_mosaic.version = 11 : i64} {
  func.func @violence_lstm_kernel(%arg0: i32, %arg1: memref<8x8x16xf32, #tpu.memory_space<vmem>>, %arg2: memref<16x128xf32, #tpu.memory_space<vmem>>, %arg3: memref<128x128xf32, #tpu.memory_space<vmem>>, %arg4: memref<1x128xf32, #tpu.memory_space<vmem>>, %arg5: memref<128x128xf32, #tpu.memory_space<vmem>>, %arg6: memref<128x128xf32, #tpu.memory_space<vmem>>, %arg7: memref<1x128xf32, #tpu.memory_space<vmem>>, %arg8: memref<128x16xf32, #tpu.memory_space<vmem>>, %arg9: memref<1x16xf32, #tpu.memory_space<vmem>>, %arg10: memref<16x128xf32, #tpu.memory_space<vmem>>, %arg11: memref<1x128xf32, #tpu.memory_space<vmem>>, %arg12: memref<8x128xf32, #tpu.memory_space<vmem>>) attributes {dimension_semantics = [#tpu.dimension_semantics<parallel>], iteration_bounds = array<i64: 1>, scalar_prefetch = 0 : i64, scratch_operands = 0 : i64, tpu.core_type = #tpu.core_type<tc>, window_params = [{transform_indices = @transform_0, window_bounds = array<i64: 8, 8, 16>}, {pipeline_mode = #tpu.pipeline_mode<synchronous>, transform_indices = @transform_1, window_bounds = array<i64: 16, 128>}, {pipeline_mode = #tpu.pipeline_mode<synchronous>, transform_indices = @transform_2, window_bounds = array<i64: 128, 128>}, {pipeline_mode = #tpu.pipeline_mode<synchronous>, transform_indices = @transform_3, window_bounds = array<i64: 1, 128>}, {pipeline_mode = #tpu.pipeline_mode<synchronous>, transform_indices = @transform_4, window_bounds = array<i64: 128, 128>}, {pipeline_mode = #tpu.pipeline_mode<synchronous>, transform_indices = @transform_5, window_bounds = array<i64: 128, 128>}, {pipeline_mode = #tpu.pipeline_mode<synchronous>, transform_indices = @transform_6, window_bounds = array<i64: 1, 128>}, {pipeline_mode = #tpu.pipeline_mode<synchronous>, transform_indices = @transform_7, window_bounds = array<i64: 128, 16>}, {pipeline_mode = #tpu.pipeline_mode<synchronous>, transform_indices = @transform_8, window_bounds = array<i64: 1, 16>}, {pipeline_mode = #tpu.pipeline_mode<synchronous>, transform_indices = @transform_9, window_bounds = array<i64: 16, 128>}, {pipeline_mode = #tpu.pipeline_mode<synchronous>, transform_indices = @transform_10, window_bounds = array<i64: 1, 128>}, {transform_indices = @transform_11, window_bounds = array<i64: 8, 128>}]} {
    %c0 = arith.constant 0 : index
    %c0_0 = arith.constant 0 : index
    %0 = vector.load %arg3[%c0, %c0_0] : memref<128x128xf32, #tpu.memory_space<vmem>>, vector<128x128xf32>
    %c0_1 = arith.constant 0 : index
    %c0_2 = arith.constant 0 : index
    %1 = vector.load %arg5[%c0_1, %c0_2] : memref<128x128xf32, #tpu.memory_space<vmem>>, vector<128x128xf32>
    %c0_3 = arith.constant 0 : index
    %c0_4 = arith.constant 0 : index
    %2 = vector.load %arg6[%c0_3, %c0_4] : memref<128x128xf32, #tpu.memory_space<vmem>>, vector<128x128xf32>
    %c0_5 = arith.constant 0 : index
    %c0_6 = arith.constant 0 : index
    %3 = vector.load %arg7[%c0_5, %c0_6] : memref<1x128xf32, #tpu.memory_space<vmem>>, vector<1x128xf32>
    %4 = vector.shape_cast %3 : vector<1x128xf32> to vector<1x128xf32>
    %5 = vector.broadcast %4 : vector<1x128xf32> to vector<8x128xf32>
    %6 = tpu.iota {dimensions = array<i32: 1>} : vector<8x128xi32>
    %c96_i32 = arith.constant 96 : i32
    %7 = vector.broadcast %c96_i32 : i32 to vector<8x128xi32>
    %8 = arith.cmpi slt, %6, %7 : vector<8x128xi32>
    %c0_7 = arith.constant 0 : index
    %c0_8 = arith.constant 0 : index
    %c0_9 = arith.constant 0 : index
    %9 = vector.load %arg1[%c0_7, %c0_8, %c0_9] : memref<8x8x16xf32, #tpu.memory_space<vmem>>, vector<8x8x16xf32>
    %10 = vector.shape_cast %9 : vector<8x8x16xf32> to vector<64x16xf32>
    %c0_10 = arith.constant 0 : index
    %c0_11 = arith.constant 0 : index
    %11 = vector.load %arg2[%c0_10, %c0_11] : memref<16x128xf32, #tpu.memory_space<vmem>>, vector<16x128xf32>
    %cst = arith.constant dense<0.000000e+00> : vector<64x128xf32>
    %12 = tpu.matmul %10, %11, %cst {dimension_numbers = #tpu.dot_dimension_numbers<[1], [0], [0], [1], [0, 0, 1, 1], [], []>} : vector<64x16xf32>, vector<16x128xf32>, vector<64x128xf32> -> vector<64x128xf32>
    %c0_12 = arith.constant 0 : index
    %c0_13 = arith.constant 0 : index
    %13 = vector.load %arg4[%c0_12, %c0_13] : memref<1x128xf32, #tpu.memory_space<vmem>>, vector<1x128xf32>
    %14 = vector.broadcast %13 : vector<1x128xf32> to vector<64x128xf32>
    %15 = arith.addf %12, %14 : vector<64x128xf32>
    %cst_14 = arith.constant 0.000000e+00 : f32
    %16 = vector.broadcast %cst_14 : f32 to vector<8x128xf32>
    %cst_15 = arith.constant dense<0.000000e+00> : vector<8x128xf32>
    %17 = tpu.matmul %16, %2, %cst_15 {dimension_numbers = #tpu.dot_dimension_numbers<[1], [0], [0], [1], [0, 0, 1, 1], [], []>} : vector<8x128xf32>, vector<128x128xf32>, vector<8x128xf32> -> vector<8x128xf32>
    %18 = arith.addf %17, %5 : vector<8x128xf32>
    %19 = vector.extract_strided_slice %15 {offsets = [0, 0], sizes = [8, 128], strides = [1, 1]} : vector<64x128xf32> to vector<8x128xf32>
    %cst_16 = arith.constant dense<0.000000e+00> : vector<8x128xf32>
    %20 = tpu.matmul %16, %0, %cst_16 {dimension_numbers = #tpu.dot_dimension_numbers<[1], [0], [0], [1], [0, 0, 1, 1], [], []>} : vector<8x128xf32>, vector<128x128xf32>, vector<8x128xf32> -> vector<8x128xf32>
    %21 = arith.addf %19, %20 : vector<8x128xf32>
    %cst_17 = arith.constant 5.000000e-01 : f32
    %22 = vector.broadcast %cst_17 : f32 to vector<8x128xf32>
    %23 = arith.mulf %22, %21 : vector<8x128xf32>
    %24 = math.tanh %23 : vector<8x128xf32>
    %cst_18 = arith.constant 5.000000e-01 : f32
    %25 = vector.broadcast %cst_18 : f32 to vector<8x128xf32>
    %26 = arith.mulf %25, %24 : vector<8x128xf32>
    %cst_19 = arith.constant 5.000000e-01 : f32
    %27 = vector.broadcast %cst_19 : f32 to vector<8x128xf32>
    %28 = arith.addf %26, %27 : vector<8x128xf32>
    %29 = math.tanh %21 : vector<8x128xf32>
    %30 = arith.select %8, %28, %29 : vector<8x128xi1>, vector<8x128xf32>
    %c96_i32_20 = arith.constant 96 : i32
    %31 = tpu.dynamic_rotate %30 by %c96_i32_20 dim 1 : vector<8x128xf32>, i32 -> vector<8x128xf32>
    %c64_i32 = arith.constant 64 : i32
    %32 = tpu.dynamic_rotate %30 by %c64_i32 dim 1 : vector<8x128xf32>, i32 -> vector<8x128xf32>
    %c32_i32 = arith.constant 32 : i32
    %33 = tpu.dynamic_rotate %30 by %c32_i32 dim 1 : vector<8x128xf32>, i32 -> vector<8x128xf32>
    %34 = arith.mulf %31, %16 : vector<8x128xf32>
    %35 = arith.mulf %30, %33 : vector<8x128xf32>
    %36 = arith.addf %34, %35 : vector<8x128xf32>
    %37 = math.tanh %36 : vector<8x128xf32>
    %38 = arith.mulf %32, %37 : vector<8x128xf32>
    %cst_21 = arith.constant dense<0.000000e+00> : vector<8x128xf32>
    %39 = tpu.matmul %38, %1, %cst_21 {dimension_numbers = #tpu.dot_dimension_numbers<[1], [0], [0], [1], [0, 0, 1, 1], [], []>} : vector<8x128xf32>, vector<128x128xf32>, vector<8x128xf32> -> vector<8x128xf32>
    %40 = arith.addf %39, %18 : vector<8x128xf32>
    %cst_22 = arith.constant 5.000000e-01 : f32
    %41 = vector.broadcast %cst_22 : f32 to vector<8x128xf32>
    %42 = arith.mulf %41, %40 : vector<8x128xf32>
    %43 = math.tanh %42 : vector<8x128xf32>
    %cst_23 = arith.constant 5.000000e-01 : f32
    %44 = vector.broadcast %cst_23 : f32 to vector<8x128xf32>
    %45 = arith.mulf %44, %43 : vector<8x128xf32>
    %cst_24 = arith.constant 5.000000e-01 : f32
    %46 = vector.broadcast %cst_24 : f32 to vector<8x128xf32>
    %47 = arith.addf %45, %46 : vector<8x128xf32>
    %48 = math.tanh %40 : vector<8x128xf32>
    %49 = arith.select %8, %47, %48 : vector<8x128xi1>, vector<8x128xf32>
    %c96_i32_25 = arith.constant 96 : i32
    %50 = tpu.dynamic_rotate %49 by %c96_i32_25 dim 1 : vector<8x128xf32>, i32 -> vector<8x128xf32>
    %c64_i32_26 = arith.constant 64 : i32
    %51 = tpu.dynamic_rotate %49 by %c64_i32_26 dim 1 : vector<8x128xf32>, i32 -> vector<8x128xf32>
    %c32_i32_27 = arith.constant 32 : i32
    %52 = tpu.dynamic_rotate %49 by %c32_i32_27 dim 1 : vector<8x128xf32>, i32 -> vector<8x128xf32>
    %53 = arith.mulf %50, %16 : vector<8x128xf32>
    %54 = arith.mulf %49, %52 : vector<8x128xf32>
    %55 = arith.addf %53, %54 : vector<8x128xf32>
    %56 = math.tanh %55 : vector<8x128xf32>
    %57 = arith.mulf %51, %56 : vector<8x128xf32>
    %cst_28 = arith.constant dense<0.000000e+00> : vector<8x128xf32>
    %58 = tpu.matmul %57, %2, %cst_28 {dimension_numbers = #tpu.dot_dimension_numbers<[1], [0], [0], [1], [0, 0, 1, 1], [], []>} : vector<8x128xf32>, vector<128x128xf32>, vector<8x128xf32> -> vector<8x128xf32>
    %59 = arith.addf %58, %5 : vector<8x128xf32>
    %60 = vector.extract_strided_slice %15 {offsets = [8, 0], sizes = [8, 128], strides = [1, 1]} : vector<64x128xf32> to vector<8x128xf32>
    %cst_29 = arith.constant dense<0.000000e+00> : vector<8x128xf32>
    %61 = tpu.matmul %38, %0, %cst_29 {dimension_numbers = #tpu.dot_dimension_numbers<[1], [0], [0], [1], [0, 0, 1, 1], [], []>} : vector<8x128xf32>, vector<128x128xf32>, vector<8x128xf32> -> vector<8x128xf32>
    %62 = arith.addf %60, %61 : vector<8x128xf32>
    %cst_30 = arith.constant 5.000000e-01 : f32
    %63 = vector.broadcast %cst_30 : f32 to vector<8x128xf32>
    %64 = arith.mulf %63, %62 : vector<8x128xf32>
    %65 = math.tanh %64 : vector<8x128xf32>
    %cst_31 = arith.constant 5.000000e-01 : f32
    %66 = vector.broadcast %cst_31 : f32 to vector<8x128xf32>
    %67 = arith.mulf %66, %65 : vector<8x128xf32>
    %cst_32 = arith.constant 5.000000e-01 : f32
    %68 = vector.broadcast %cst_32 : f32 to vector<8x128xf32>
    %69 = arith.addf %67, %68 : vector<8x128xf32>
    %70 = math.tanh %62 : vector<8x128xf32>
    %71 = arith.select %8, %69, %70 : vector<8x128xi1>, vector<8x128xf32>
    %c96_i32_33 = arith.constant 96 : i32
    %72 = tpu.dynamic_rotate %71 by %c96_i32_33 dim 1 : vector<8x128xf32>, i32 -> vector<8x128xf32>
    %c64_i32_34 = arith.constant 64 : i32
    %73 = tpu.dynamic_rotate %71 by %c64_i32_34 dim 1 : vector<8x128xf32>, i32 -> vector<8x128xf32>
    %c32_i32_35 = arith.constant 32 : i32
    %74 = tpu.dynamic_rotate %71 by %c32_i32_35 dim 1 : vector<8x128xf32>, i32 -> vector<8x128xf32>
    %75 = arith.mulf %72, %36 : vector<8x128xf32>
    %76 = arith.mulf %71, %74 : vector<8x128xf32>
    %77 = arith.addf %75, %76 : vector<8x128xf32>
    %78 = math.tanh %77 : vector<8x128xf32>
    %79 = arith.mulf %73, %78 : vector<8x128xf32>
    %cst_36 = arith.constant dense<0.000000e+00> : vector<8x128xf32>
    %80 = tpu.matmul %79, %1, %cst_36 {dimension_numbers = #tpu.dot_dimension_numbers<[1], [0], [0], [1], [0, 0, 1, 1], [], []>} : vector<8x128xf32>, vector<128x128xf32>, vector<8x128xf32> -> vector<8x128xf32>
    %81 = arith.addf %80, %59 : vector<8x128xf32>
    %cst_37 = arith.constant 5.000000e-01 : f32
    %82 = vector.broadcast %cst_37 : f32 to vector<8x128xf32>
    %83 = arith.mulf %82, %81 : vector<8x128xf32>
    %84 = math.tanh %83 : vector<8x128xf32>
    %cst_38 = arith.constant 5.000000e-01 : f32
    %85 = vector.broadcast %cst_38 : f32 to vector<8x128xf32>
    %86 = arith.mulf %85, %84 : vector<8x128xf32>
    %cst_39 = arith.constant 5.000000e-01 : f32
    %87 = vector.broadcast %cst_39 : f32 to vector<8x128xf32>
    %88 = arith.addf %86, %87 : vector<8x128xf32>
    %89 = math.tanh %81 : vector<8x128xf32>
    %90 = arith.select %8, %88, %89 : vector<8x128xi1>, vector<8x128xf32>
    %c96_i32_40 = arith.constant 96 : i32
    %91 = tpu.dynamic_rotate %90 by %c96_i32_40 dim 1 : vector<8x128xf32>, i32 -> vector<8x128xf32>
    %c64_i32_41 = arith.constant 64 : i32
    %92 = tpu.dynamic_rotate %90 by %c64_i32_41 dim 1 : vector<8x128xf32>, i32 -> vector<8x128xf32>
    %c32_i32_42 = arith.constant 32 : i32
    %93 = tpu.dynamic_rotate %90 by %c32_i32_42 dim 1 : vector<8x128xf32>, i32 -> vector<8x128xf32>
    %94 = arith.mulf %91, %55 : vector<8x128xf32>
    %95 = arith.mulf %90, %93 : vector<8x128xf32>
    %96 = arith.addf %94, %95 : vector<8x128xf32>
    %97 = math.tanh %96 : vector<8x128xf32>
    %98 = arith.mulf %92, %97 : vector<8x128xf32>
    %cst_43 = arith.constant dense<0.000000e+00> : vector<8x128xf32>
    %99 = tpu.matmul %98, %2, %cst_43 {dimension_numbers = #tpu.dot_dimension_numbers<[1], [0], [0], [1], [0, 0, 1, 1], [], []>} : vector<8x128xf32>, vector<128x128xf32>, vector<8x128xf32> -> vector<8x128xf32>
    %100 = arith.addf %99, %5 : vector<8x128xf32>
    %101 = vector.extract_strided_slice %15 {offsets = [16, 0], sizes = [8, 128], strides = [1, 1]} : vector<64x128xf32> to vector<8x128xf32>
    %cst_44 = arith.constant dense<0.000000e+00> : vector<8x128xf32>
    %102 = tpu.matmul %79, %0, %cst_44 {dimension_numbers = #tpu.dot_dimension_numbers<[1], [0], [0], [1], [0, 0, 1, 1], [], []>} : vector<8x128xf32>, vector<128x128xf32>, vector<8x128xf32> -> vector<8x128xf32>
    %103 = arith.addf %101, %102 : vector<8x128xf32>
    %cst_45 = arith.constant 5.000000e-01 : f32
    %104 = vector.broadcast %cst_45 : f32 to vector<8x128xf32>
    %105 = arith.mulf %104, %103 : vector<8x128xf32>
    %106 = math.tanh %105 : vector<8x128xf32>
    %cst_46 = arith.constant 5.000000e-01 : f32
    %107 = vector.broadcast %cst_46 : f32 to vector<8x128xf32>
    %108 = arith.mulf %107, %106 : vector<8x128xf32>
    %cst_47 = arith.constant 5.000000e-01 : f32
    %109 = vector.broadcast %cst_47 : f32 to vector<8x128xf32>
    %110 = arith.addf %108, %109 : vector<8x128xf32>
    %111 = math.tanh %103 : vector<8x128xf32>
    %112 = arith.select %8, %110, %111 : vector<8x128xi1>, vector<8x128xf32>
    %c96_i32_48 = arith.constant 96 : i32
    %113 = tpu.dynamic_rotate %112 by %c96_i32_48 dim 1 : vector<8x128xf32>, i32 -> vector<8x128xf32>
    %c64_i32_49 = arith.constant 64 : i32
    %114 = tpu.dynamic_rotate %112 by %c64_i32_49 dim 1 : vector<8x128xf32>, i32 -> vector<8x128xf32>
    %c32_i32_50 = arith.constant 32 : i32
    %115 = tpu.dynamic_rotate %112 by %c32_i32_50 dim 1 : vector<8x128xf32>, i32 -> vector<8x128xf32>
    %116 = arith.mulf %113, %77 : vector<8x128xf32>
    %117 = arith.mulf %112, %115 : vector<8x128xf32>
    %118 = arith.addf %116, %117 : vector<8x128xf32>
    %119 = math.tanh %118 : vector<8x128xf32>
    %120 = arith.mulf %114, %119 : vector<8x128xf32>
    %cst_51 = arith.constant dense<0.000000e+00> : vector<8x128xf32>
    %121 = tpu.matmul %120, %1, %cst_51 {dimension_numbers = #tpu.dot_dimension_numbers<[1], [0], [0], [1], [0, 0, 1, 1], [], []>} : vector<8x128xf32>, vector<128x128xf32>, vector<8x128xf32> -> vector<8x128xf32>
    %122 = arith.addf %121, %100 : vector<8x128xf32>
    %cst_52 = arith.constant 5.000000e-01 : f32
    %123 = vector.broadcast %cst_52 : f32 to vector<8x128xf32>
    %124 = arith.mulf %123, %122 : vector<8x128xf32>
    %125 = math.tanh %124 : vector<8x128xf32>
    %cst_53 = arith.constant 5.000000e-01 : f32
    %126 = vector.broadcast %cst_53 : f32 to vector<8x128xf32>
    %127 = arith.mulf %126, %125 : vector<8x128xf32>
    %cst_54 = arith.constant 5.000000e-01 : f32
    %128 = vector.broadcast %cst_54 : f32 to vector<8x128xf32>
    %129 = arith.addf %127, %128 : vector<8x128xf32>
    %130 = math.tanh %122 : vector<8x128xf32>
    %131 = arith.select %8, %129, %130 : vector<8x128xi1>, vector<8x128xf32>
    %c96_i32_55 = arith.constant 96 : i32
    %132 = tpu.dynamic_rotate %131 by %c96_i32_55 dim 1 : vector<8x128xf32>, i32 -> vector<8x128xf32>
    %c64_i32_56 = arith.constant 64 : i32
    %133 = tpu.dynamic_rotate %131 by %c64_i32_56 dim 1 : vector<8x128xf32>, i32 -> vector<8x128xf32>
    %c32_i32_57 = arith.constant 32 : i32
    %134 = tpu.dynamic_rotate %131 by %c32_i32_57 dim 1 : vector<8x128xf32>, i32 -> vector<8x128xf32>
    %135 = arith.mulf %132, %96 : vector<8x128xf32>
    %136 = arith.mulf %131, %134 : vector<8x128xf32>
    %137 = arith.addf %135, %136 : vector<8x128xf32>
    %138 = math.tanh %137 : vector<8x128xf32>
    %139 = arith.mulf %133, %138 : vector<8x128xf32>
    %cst_58 = arith.constant dense<0.000000e+00> : vector<8x128xf32>
    %140 = tpu.matmul %139, %2, %cst_58 {dimension_numbers = #tpu.dot_dimension_numbers<[1], [0], [0], [1], [0, 0, 1, 1], [], []>} : vector<8x128xf32>, vector<128x128xf32>, vector<8x128xf32> -> vector<8x128xf32>
    %141 = arith.addf %140, %5 : vector<8x128xf32>
    %142 = vector.extract_strided_slice %15 {offsets = [24, 0], sizes = [8, 128], strides = [1, 1]} : vector<64x128xf32> to vector<8x128xf32>
    %cst_59 = arith.constant dense<0.000000e+00> : vector<8x128xf32>
    %143 = tpu.matmul %120, %0, %cst_59 {dimension_numbers = #tpu.dot_dimension_numbers<[1], [0], [0], [1], [0, 0, 1, 1], [], []>} : vector<8x128xf32>, vector<128x128xf32>, vector<8x128xf32> -> vector<8x128xf32>
    %144 = arith.addf %142, %143 : vector<8x128xf32>
    %cst_60 = arith.constant 5.000000e-01 : f32
    %145 = vector.broadcast %cst_60 : f32 to vector<8x128xf32>
    %146 = arith.mulf %145, %144 : vector<8x128xf32>
    %147 = math.tanh %146 : vector<8x128xf32>
    %cst_61 = arith.constant 5.000000e-01 : f32
    %148 = vector.broadcast %cst_61 : f32 to vector<8x128xf32>
    %149 = arith.mulf %148, %147 : vector<8x128xf32>
    %cst_62 = arith.constant 5.000000e-01 : f32
    %150 = vector.broadcast %cst_62 : f32 to vector<8x128xf32>
    %151 = arith.addf %149, %150 : vector<8x128xf32>
    %152 = math.tanh %144 : vector<8x128xf32>
    %153 = arith.select %8, %151, %152 : vector<8x128xi1>, vector<8x128xf32>
    %c96_i32_63 = arith.constant 96 : i32
    %154 = tpu.dynamic_rotate %153 by %c96_i32_63 dim 1 : vector<8x128xf32>, i32 -> vector<8x128xf32>
    %c64_i32_64 = arith.constant 64 : i32
    %155 = tpu.dynamic_rotate %153 by %c64_i32_64 dim 1 : vector<8x128xf32>, i32 -> vector<8x128xf32>
    %c32_i32_65 = arith.constant 32 : i32
    %156 = tpu.dynamic_rotate %153 by %c32_i32_65 dim 1 : vector<8x128xf32>, i32 -> vector<8x128xf32>
    %157 = arith.mulf %154, %118 : vector<8x128xf32>
    %158 = arith.mulf %153, %156 : vector<8x128xf32>
    %159 = arith.addf %157, %158 : vector<8x128xf32>
    %160 = math.tanh %159 : vector<8x128xf32>
    %161 = arith.mulf %155, %160 : vector<8x128xf32>
    %cst_66 = arith.constant dense<0.000000e+00> : vector<8x128xf32>
    %162 = tpu.matmul %161, %1, %cst_66 {dimension_numbers = #tpu.dot_dimension_numbers<[1], [0], [0], [1], [0, 0, 1, 1], [], []>} : vector<8x128xf32>, vector<128x128xf32>, vector<8x128xf32> -> vector<8x128xf32>
    %163 = arith.addf %162, %141 : vector<8x128xf32>
    %cst_67 = arith.constant 5.000000e-01 : f32
    %164 = vector.broadcast %cst_67 : f32 to vector<8x128xf32>
    %165 = arith.mulf %164, %163 : vector<8x128xf32>
    %166 = math.tanh %165 : vector<8x128xf32>
    %cst_68 = arith.constant 5.000000e-01 : f32
    %167 = vector.broadcast %cst_68 : f32 to vector<8x128xf32>
    %168 = arith.mulf %167, %166 : vector<8x128xf32>
    %cst_69 = arith.constant 5.000000e-01 : f32
    %169 = vector.broadcast %cst_69 : f32 to vector<8x128xf32>
    %170 = arith.addf %168, %169 : vector<8x128xf32>
    %171 = math.tanh %163 : vector<8x128xf32>
    %172 = arith.select %8, %170, %171 : vector<8x128xi1>, vector<8x128xf32>
    %c96_i32_70 = arith.constant 96 : i32
    %173 = tpu.dynamic_rotate %172 by %c96_i32_70 dim 1 : vector<8x128xf32>, i32 -> vector<8x128xf32>
    %c64_i32_71 = arith.constant 64 : i32
    %174 = tpu.dynamic_rotate %172 by %c64_i32_71 dim 1 : vector<8x128xf32>, i32 -> vector<8x128xf32>
    %c32_i32_72 = arith.constant 32 : i32
    %175 = tpu.dynamic_rotate %172 by %c32_i32_72 dim 1 : vector<8x128xf32>, i32 -> vector<8x128xf32>
    %176 = arith.mulf %173, %137 : vector<8x128xf32>
    %177 = arith.mulf %172, %175 : vector<8x128xf32>
    %178 = arith.addf %176, %177 : vector<8x128xf32>
    %179 = math.tanh %178 : vector<8x128xf32>
    %180 = arith.mulf %174, %179 : vector<8x128xf32>
    %cst_73 = arith.constant dense<0.000000e+00> : vector<8x128xf32>
    %181 = tpu.matmul %180, %2, %cst_73 {dimension_numbers = #tpu.dot_dimension_numbers<[1], [0], [0], [1], [0, 0, 1, 1], [], []>} : vector<8x128xf32>, vector<128x128xf32>, vector<8x128xf32> -> vector<8x128xf32>
    %182 = arith.addf %181, %5 : vector<8x128xf32>
    %183 = vector.extract_strided_slice %15 {offsets = [32, 0], sizes = [8, 128], strides = [1, 1]} : vector<64x128xf32> to vector<8x128xf32>
    %cst_74 = arith.constant dense<0.000000e+00> : vector<8x128xf32>
    %184 = tpu.matmul %161, %0, %cst_74 {dimension_numbers = #tpu.dot_dimension_numbers<[1], [0], [0], [1], [0, 0, 1, 1], [], []>} : vector<8x128xf32>, vector<128x128xf32>, vector<8x128xf32> -> vector<8x128xf32>
    %185 = arith.addf %183, %184 : vector<8x128xf32>
    %cst_75 = arith.constant 5.000000e-01 : f32
    %186 = vector.broadcast %cst_75 : f32 to vector<8x128xf32>
    %187 = arith.mulf %186, %185 : vector<8x128xf32>
    %188 = math.tanh %187 : vector<8x128xf32>
    %cst_76 = arith.constant 5.000000e-01 : f32
    %189 = vector.broadcast %cst_76 : f32 to vector<8x128xf32>
    %190 = arith.mulf %189, %188 : vector<8x128xf32>
    %cst_77 = arith.constant 5.000000e-01 : f32
    %191 = vector.broadcast %cst_77 : f32 to vector<8x128xf32>
    %192 = arith.addf %190, %191 : vector<8x128xf32>
    %193 = math.tanh %185 : vector<8x128xf32>
    %194 = arith.select %8, %192, %193 : vector<8x128xi1>, vector<8x128xf32>
    %c96_i32_78 = arith.constant 96 : i32
    %195 = tpu.dynamic_rotate %194 by %c96_i32_78 dim 1 : vector<8x128xf32>, i32 -> vector<8x128xf32>
    %c64_i32_79 = arith.constant 64 : i32
    %196 = tpu.dynamic_rotate %194 by %c64_i32_79 dim 1 : vector<8x128xf32>, i32 -> vector<8x128xf32>
    %c32_i32_80 = arith.constant 32 : i32
    %197 = tpu.dynamic_rotate %194 by %c32_i32_80 dim 1 : vector<8x128xf32>, i32 -> vector<8x128xf32>
    %198 = arith.mulf %195, %159 : vector<8x128xf32>
    %199 = arith.mulf %194, %197 : vector<8x128xf32>
    %200 = arith.addf %198, %199 : vector<8x128xf32>
    %201 = math.tanh %200 : vector<8x128xf32>
    %202 = arith.mulf %196, %201 : vector<8x128xf32>
    %cst_81 = arith.constant dense<0.000000e+00> : vector<8x128xf32>
    %203 = tpu.matmul %202, %1, %cst_81 {dimension_numbers = #tpu.dot_dimension_numbers<[1], [0], [0], [1], [0, 0, 1, 1], [], []>} : vector<8x128xf32>, vector<128x128xf32>, vector<8x128xf32> -> vector<8x128xf32>
    %204 = arith.addf %203, %182 : vector<8x128xf32>
    %cst_82 = arith.constant 5.000000e-01 : f32
    %205 = vector.broadcast %cst_82 : f32 to vector<8x128xf32>
    %206 = arith.mulf %205, %204 : vector<8x128xf32>
    %207 = math.tanh %206 : vector<8x128xf32>
    %cst_83 = arith.constant 5.000000e-01 : f32
    %208 = vector.broadcast %cst_83 : f32 to vector<8x128xf32>
    %209 = arith.mulf %208, %207 : vector<8x128xf32>
    %cst_84 = arith.constant 5.000000e-01 : f32
    %210 = vector.broadcast %cst_84 : f32 to vector<8x128xf32>
    %211 = arith.addf %209, %210 : vector<8x128xf32>
    %212 = math.tanh %204 : vector<8x128xf32>
    %213 = arith.select %8, %211, %212 : vector<8x128xi1>, vector<8x128xf32>
    %c96_i32_85 = arith.constant 96 : i32
    %214 = tpu.dynamic_rotate %213 by %c96_i32_85 dim 1 : vector<8x128xf32>, i32 -> vector<8x128xf32>
    %c64_i32_86 = arith.constant 64 : i32
    %215 = tpu.dynamic_rotate %213 by %c64_i32_86 dim 1 : vector<8x128xf32>, i32 -> vector<8x128xf32>
    %c32_i32_87 = arith.constant 32 : i32
    %216 = tpu.dynamic_rotate %213 by %c32_i32_87 dim 1 : vector<8x128xf32>, i32 -> vector<8x128xf32>
    %217 = arith.mulf %214, %178 : vector<8x128xf32>
    %218 = arith.mulf %213, %216 : vector<8x128xf32>
    %219 = arith.addf %217, %218 : vector<8x128xf32>
    %220 = math.tanh %219 : vector<8x128xf32>
    %221 = arith.mulf %215, %220 : vector<8x128xf32>
    %cst_88 = arith.constant dense<0.000000e+00> : vector<8x128xf32>
    %222 = tpu.matmul %221, %2, %cst_88 {dimension_numbers = #tpu.dot_dimension_numbers<[1], [0], [0], [1], [0, 0, 1, 1], [], []>} : vector<8x128xf32>, vector<128x128xf32>, vector<8x128xf32> -> vector<8x128xf32>
    %223 = arith.addf %222, %5 : vector<8x128xf32>
    %224 = vector.extract_strided_slice %15 {offsets = [40, 0], sizes = [8, 128], strides = [1, 1]} : vector<64x128xf32> to vector<8x128xf32>
    %cst_89 = arith.constant dense<0.000000e+00> : vector<8x128xf32>
    %225 = tpu.matmul %202, %0, %cst_89 {dimension_numbers = #tpu.dot_dimension_numbers<[1], [0], [0], [1], [0, 0, 1, 1], [], []>} : vector<8x128xf32>, vector<128x128xf32>, vector<8x128xf32> -> vector<8x128xf32>
    %226 = arith.addf %224, %225 : vector<8x128xf32>
    %cst_90 = arith.constant 5.000000e-01 : f32
    %227 = vector.broadcast %cst_90 : f32 to vector<8x128xf32>
    %228 = arith.mulf %227, %226 : vector<8x128xf32>
    %229 = math.tanh %228 : vector<8x128xf32>
    %cst_91 = arith.constant 5.000000e-01 : f32
    %230 = vector.broadcast %cst_91 : f32 to vector<8x128xf32>
    %231 = arith.mulf %230, %229 : vector<8x128xf32>
    %cst_92 = arith.constant 5.000000e-01 : f32
    %232 = vector.broadcast %cst_92 : f32 to vector<8x128xf32>
    %233 = arith.addf %231, %232 : vector<8x128xf32>
    %234 = math.tanh %226 : vector<8x128xf32>
    %235 = arith.select %8, %233, %234 : vector<8x128xi1>, vector<8x128xf32>
    %c96_i32_93 = arith.constant 96 : i32
    %236 = tpu.dynamic_rotate %235 by %c96_i32_93 dim 1 : vector<8x128xf32>, i32 -> vector<8x128xf32>
    %c64_i32_94 = arith.constant 64 : i32
    %237 = tpu.dynamic_rotate %235 by %c64_i32_94 dim 1 : vector<8x128xf32>, i32 -> vector<8x128xf32>
    %c32_i32_95 = arith.constant 32 : i32
    %238 = tpu.dynamic_rotate %235 by %c32_i32_95 dim 1 : vector<8x128xf32>, i32 -> vector<8x128xf32>
    %239 = arith.mulf %236, %200 : vector<8x128xf32>
    %240 = arith.mulf %235, %238 : vector<8x128xf32>
    %241 = arith.addf %239, %240 : vector<8x128xf32>
    %242 = math.tanh %241 : vector<8x128xf32>
    %243 = arith.mulf %237, %242 : vector<8x128xf32>
    %cst_96 = arith.constant dense<0.000000e+00> : vector<8x128xf32>
    %244 = tpu.matmul %243, %1, %cst_96 {dimension_numbers = #tpu.dot_dimension_numbers<[1], [0], [0], [1], [0, 0, 1, 1], [], []>} : vector<8x128xf32>, vector<128x128xf32>, vector<8x128xf32> -> vector<8x128xf32>
    %245 = arith.addf %244, %223 : vector<8x128xf32>
    %cst_97 = arith.constant 5.000000e-01 : f32
    %246 = vector.broadcast %cst_97 : f32 to vector<8x128xf32>
    %247 = arith.mulf %246, %245 : vector<8x128xf32>
    %248 = math.tanh %247 : vector<8x128xf32>
    %cst_98 = arith.constant 5.000000e-01 : f32
    %249 = vector.broadcast %cst_98 : f32 to vector<8x128xf32>
    %250 = arith.mulf %249, %248 : vector<8x128xf32>
    %cst_99 = arith.constant 5.000000e-01 : f32
    %251 = vector.broadcast %cst_99 : f32 to vector<8x128xf32>
    %252 = arith.addf %250, %251 : vector<8x128xf32>
    %253 = math.tanh %245 : vector<8x128xf32>
    %254 = arith.select %8, %252, %253 : vector<8x128xi1>, vector<8x128xf32>
    %c96_i32_100 = arith.constant 96 : i32
    %255 = tpu.dynamic_rotate %254 by %c96_i32_100 dim 1 : vector<8x128xf32>, i32 -> vector<8x128xf32>
    %c64_i32_101 = arith.constant 64 : i32
    %256 = tpu.dynamic_rotate %254 by %c64_i32_101 dim 1 : vector<8x128xf32>, i32 -> vector<8x128xf32>
    %c32_i32_102 = arith.constant 32 : i32
    %257 = tpu.dynamic_rotate %254 by %c32_i32_102 dim 1 : vector<8x128xf32>, i32 -> vector<8x128xf32>
    %258 = arith.mulf %255, %219 : vector<8x128xf32>
    %259 = arith.mulf %254, %257 : vector<8x128xf32>
    %260 = arith.addf %258, %259 : vector<8x128xf32>
    %261 = math.tanh %260 : vector<8x128xf32>
    %262 = arith.mulf %256, %261 : vector<8x128xf32>
    %cst_103 = arith.constant dense<0.000000e+00> : vector<8x128xf32>
    %263 = tpu.matmul %262, %2, %cst_103 {dimension_numbers = #tpu.dot_dimension_numbers<[1], [0], [0], [1], [0, 0, 1, 1], [], []>} : vector<8x128xf32>, vector<128x128xf32>, vector<8x128xf32> -> vector<8x128xf32>
    %264 = arith.addf %263, %5 : vector<8x128xf32>
    %265 = vector.extract_strided_slice %15 {offsets = [48, 0], sizes = [8, 128], strides = [1, 1]} : vector<64x128xf32> to vector<8x128xf32>
    %cst_104 = arith.constant dense<0.000000e+00> : vector<8x128xf32>
    %266 = tpu.matmul %243, %0, %cst_104 {dimension_numbers = #tpu.dot_dimension_numbers<[1], [0], [0], [1], [0, 0, 1, 1], [], []>} : vector<8x128xf32>, vector<128x128xf32>, vector<8x128xf32> -> vector<8x128xf32>
    %267 = arith.addf %265, %266 : vector<8x128xf32>
    %cst_105 = arith.constant 5.000000e-01 : f32
    %268 = vector.broadcast %cst_105 : f32 to vector<8x128xf32>
    %269 = arith.mulf %268, %267 : vector<8x128xf32>
    %270 = math.tanh %269 : vector<8x128xf32>
    %cst_106 = arith.constant 5.000000e-01 : f32
    %271 = vector.broadcast %cst_106 : f32 to vector<8x128xf32>
    %272 = arith.mulf %271, %270 : vector<8x128xf32>
    %cst_107 = arith.constant 5.000000e-01 : f32
    %273 = vector.broadcast %cst_107 : f32 to vector<8x128xf32>
    %274 = arith.addf %272, %273 : vector<8x128xf32>
    %275 = math.tanh %267 : vector<8x128xf32>
    %276 = arith.select %8, %274, %275 : vector<8x128xi1>, vector<8x128xf32>
    %c96_i32_108 = arith.constant 96 : i32
    %277 = tpu.dynamic_rotate %276 by %c96_i32_108 dim 1 : vector<8x128xf32>, i32 -> vector<8x128xf32>
    %c64_i32_109 = arith.constant 64 : i32
    %278 = tpu.dynamic_rotate %276 by %c64_i32_109 dim 1 : vector<8x128xf32>, i32 -> vector<8x128xf32>
    %c32_i32_110 = arith.constant 32 : i32
    %279 = tpu.dynamic_rotate %276 by %c32_i32_110 dim 1 : vector<8x128xf32>, i32 -> vector<8x128xf32>
    %280 = arith.mulf %277, %241 : vector<8x128xf32>
    %281 = arith.mulf %276, %279 : vector<8x128xf32>
    %282 = arith.addf %280, %281 : vector<8x128xf32>
    %283 = math.tanh %282 : vector<8x128xf32>
    %284 = arith.mulf %278, %283 : vector<8x128xf32>
    %cst_111 = arith.constant dense<0.000000e+00> : vector<8x128xf32>
    %285 = tpu.matmul %284, %1, %cst_111 {dimension_numbers = #tpu.dot_dimension_numbers<[1], [0], [0], [1], [0, 0, 1, 1], [], []>} : vector<8x128xf32>, vector<128x128xf32>, vector<8x128xf32> -> vector<8x128xf32>
    %286 = arith.addf %285, %264 : vector<8x128xf32>
    %cst_112 = arith.constant 5.000000e-01 : f32
    %287 = vector.broadcast %cst_112 : f32 to vector<8x128xf32>
    %288 = arith.mulf %287, %286 : vector<8x128xf32>
    %289 = math.tanh %288 : vector<8x128xf32>
    %cst_113 = arith.constant 5.000000e-01 : f32
    %290 = vector.broadcast %cst_113 : f32 to vector<8x128xf32>
    %291 = arith.mulf %290, %289 : vector<8x128xf32>
    %cst_114 = arith.constant 5.000000e-01 : f32
    %292 = vector.broadcast %cst_114 : f32 to vector<8x128xf32>
    %293 = arith.addf %291, %292 : vector<8x128xf32>
    %294 = math.tanh %286 : vector<8x128xf32>
    %295 = arith.select %8, %293, %294 : vector<8x128xi1>, vector<8x128xf32>
    %c96_i32_115 = arith.constant 96 : i32
    %296 = tpu.dynamic_rotate %295 by %c96_i32_115 dim 1 : vector<8x128xf32>, i32 -> vector<8x128xf32>
    %c64_i32_116 = arith.constant 64 : i32
    %297 = tpu.dynamic_rotate %295 by %c64_i32_116 dim 1 : vector<8x128xf32>, i32 -> vector<8x128xf32>
    %c32_i32_117 = arith.constant 32 : i32
    %298 = tpu.dynamic_rotate %295 by %c32_i32_117 dim 1 : vector<8x128xf32>, i32 -> vector<8x128xf32>
    %299 = arith.mulf %296, %260 : vector<8x128xf32>
    %300 = arith.mulf %295, %298 : vector<8x128xf32>
    %301 = arith.addf %299, %300 : vector<8x128xf32>
    %302 = math.tanh %301 : vector<8x128xf32>
    %303 = arith.mulf %297, %302 : vector<8x128xf32>
    %cst_118 = arith.constant dense<0.000000e+00> : vector<8x128xf32>
    %304 = tpu.matmul %303, %2, %cst_118 {dimension_numbers = #tpu.dot_dimension_numbers<[1], [0], [0], [1], [0, 0, 1, 1], [], []>} : vector<8x128xf32>, vector<128x128xf32>, vector<8x128xf32> -> vector<8x128xf32>
    %305 = arith.addf %304, %5 : vector<8x128xf32>
    %306 = vector.extract_strided_slice %15 {offsets = [56, 0], sizes = [8, 128], strides = [1, 1]} : vector<64x128xf32> to vector<8x128xf32>
    %cst_119 = arith.constant dense<0.000000e+00> : vector<8x128xf32>
    %307 = tpu.matmul %284, %0, %cst_119 {dimension_numbers = #tpu.dot_dimension_numbers<[1], [0], [0], [1], [0, 0, 1, 1], [], []>} : vector<8x128xf32>, vector<128x128xf32>, vector<8x128xf32> -> vector<8x128xf32>
    %308 = arith.addf %306, %307 : vector<8x128xf32>
    %cst_120 = arith.constant 5.000000e-01 : f32
    %309 = vector.broadcast %cst_120 : f32 to vector<8x128xf32>
    %310 = arith.mulf %309, %308 : vector<8x128xf32>
    %311 = math.tanh %310 : vector<8x128xf32>
    %cst_121 = arith.constant 5.000000e-01 : f32
    %312 = vector.broadcast %cst_121 : f32 to vector<8x128xf32>
    %313 = arith.mulf %312, %311 : vector<8x128xf32>
    %cst_122 = arith.constant 5.000000e-01 : f32
    %314 = vector.broadcast %cst_122 : f32 to vector<8x128xf32>
    %315 = arith.addf %313, %314 : vector<8x128xf32>
    %316 = math.tanh %308 : vector<8x128xf32>
    %317 = arith.select %8, %315, %316 : vector<8x128xi1>, vector<8x128xf32>
    %c96_i32_123 = arith.constant 96 : i32
    %318 = tpu.dynamic_rotate %317 by %c96_i32_123 dim 1 : vector<8x128xf32>, i32 -> vector<8x128xf32>
    %c64_i32_124 = arith.constant 64 : i32
    %319 = tpu.dynamic_rotate %317 by %c64_i32_124 dim 1 : vector<8x128xf32>, i32 -> vector<8x128xf32>
    %c32_i32_125 = arith.constant 32 : i32
    %320 = tpu.dynamic_rotate %317 by %c32_i32_125 dim 1 : vector<8x128xf32>, i32 -> vector<8x128xf32>
    %321 = arith.mulf %318, %282 : vector<8x128xf32>
    %322 = arith.mulf %317, %320 : vector<8x128xf32>
    %323 = arith.addf %321, %322 : vector<8x128xf32>
    %324 = math.tanh %323 : vector<8x128xf32>
    %325 = arith.mulf %319, %324 : vector<8x128xf32>
    %cst_126 = arith.constant dense<0.000000e+00> : vector<8x128xf32>
    %326 = tpu.matmul %325, %1, %cst_126 {dimension_numbers = #tpu.dot_dimension_numbers<[1], [0], [0], [1], [0, 0, 1, 1], [], []>} : vector<8x128xf32>, vector<128x128xf32>, vector<8x128xf32> -> vector<8x128xf32>
    %327 = arith.addf %326, %305 : vector<8x128xf32>
    %cst_127 = arith.constant 5.000000e-01 : f32
    %328 = vector.broadcast %cst_127 : f32 to vector<8x128xf32>
    %329 = arith.mulf %328, %327 : vector<8x128xf32>
    %330 = math.tanh %329 : vector<8x128xf32>
    %cst_128 = arith.constant 5.000000e-01 : f32
    %331 = vector.broadcast %cst_128 : f32 to vector<8x128xf32>
    %332 = arith.mulf %331, %330 : vector<8x128xf32>
    %cst_129 = arith.constant 5.000000e-01 : f32
    %333 = vector.broadcast %cst_129 : f32 to vector<8x128xf32>
    %334 = arith.addf %332, %333 : vector<8x128xf32>
    %335 = math.tanh %327 : vector<8x128xf32>
    %336 = arith.select %8, %334, %335 : vector<8x128xi1>, vector<8x128xf32>
    %c96_i32_130 = arith.constant 96 : i32
    %337 = tpu.dynamic_rotate %336 by %c96_i32_130 dim 1 : vector<8x128xf32>, i32 -> vector<8x128xf32>
    %c64_i32_131 = arith.constant 64 : i32
    %338 = tpu.dynamic_rotate %336 by %c64_i32_131 dim 1 : vector<8x128xf32>, i32 -> vector<8x128xf32>
    %c32_i32_132 = arith.constant 32 : i32
    %339 = tpu.dynamic_rotate %336 by %c32_i32_132 dim 1 : vector<8x128xf32>, i32 -> vector<8x128xf32>
    %340 = arith.mulf %337, %301 : vector<8x128xf32>
    %341 = arith.mulf %336, %339 : vector<8x128xf32>
    %342 = arith.addf %340, %341 : vector<8x128xf32>
    %343 = math.tanh %342 : vector<8x128xf32>
    %344 = arith.mulf %338, %343 : vector<8x128xf32>
    %c0_133 = arith.constant 0 : index
    %c0_134 = arith.constant 0 : index
    %345 = vector.load %arg8[%c0_133, %c0_134] : memref<128x16xf32, #tpu.memory_space<vmem>>, vector<128x16xf32>
    %cst_135 = arith.constant dense<0.000000e+00> : vector<8x16xf32>
    %346 = tpu.matmul %344, %345, %cst_135 {dimension_numbers = #tpu.dot_dimension_numbers<[1], [0], [0], [1], [0, 0, 1, 1], [], []>} : vector<8x128xf32>, vector<128x16xf32>, vector<8x16xf32> -> vector<8x16xf32>
    %c0_136 = arith.constant 0 : index
    %c0_137 = arith.constant 0 : index
    %347 = vector.load %arg9[%c0_136, %c0_137] : memref<1x16xf32, #tpu.memory_space<vmem>>, vector<1x16xf32>
    %348 = vector.broadcast %347 : vector<1x16xf32> to vector<8x16xf32>
    %349 = arith.addf %346, %348 : vector<8x16xf32>
    %cst_138 = arith.constant 0.000000e+00 : f32
    %350 = vector.broadcast %cst_138 : f32 to vector<8x16xf32>
    %351 = arith.maximumf %349, %350 : vector<8x16xf32>
    %c0_139 = arith.constant 0 : index
    %c0_140 = arith.constant 0 : index
    %352 = vector.load %arg10[%c0_139, %c0_140] : memref<16x128xf32, #tpu.memory_space<vmem>>, vector<16x128xf32>
    %cst_141 = arith.constant dense<0.000000e+00> : vector<8x128xf32>
    %353 = tpu.matmul %351, %352, %cst_141 {dimension_numbers = #tpu.dot_dimension_numbers<[1], [0], [0], [1], [0, 0, 1, 1], [], []>} : vector<8x16xf32>, vector<16x128xf32>, vector<8x128xf32> -> vector<8x128xf32>
    %c0_142 = arith.constant 0 : index
    %c0_143 = arith.constant 0 : index
    %354 = vector.load %arg11[%c0_142, %c0_143] : memref<1x128xf32, #tpu.memory_space<vmem>>, vector<1x128xf32>
    %355 = vector.broadcast %354 : vector<1x128xf32> to vector<8x128xf32>
    %356 = arith.addf %353, %355 : vector<8x128xf32>
    %c0_144 = arith.constant 0 : index
    %c0_145 = arith.constant 0 : index
    %357 = vector.load %arg12[%c0_144, %c0_145] : memref<8x128xf32, #tpu.memory_space<vmem>>, vector<8x128xf32>
    tpu.vector_store %arg12[%c0_144, %c0_145], %356 {strides = array<i32>} : memref<8x128xf32, #tpu.memory_space<vmem>>, vector<8x128xf32>,
    return
  }
  func.func @transform_0(%arg0: i32) -> (i32, i32, i32) {
    %c0_i32 = arith.constant 0 : i32
    %c0_i32_0 = arith.constant 0 : i32
    %c0_i32_1 = arith.constant 0 : i32
    return %c0_i32, %arg0, %c0_i32_0 : i32, i32, i32
  }
  func.func @transform_1(%arg0: i32) -> (i32, i32) {
    %c0_i32 = arith.constant 0 : i32
    %c0_i32_0 = arith.constant 0 : i32
    %c0_i32_1 = arith.constant 0 : i32
    return %c0_i32, %c0_i32_0 : i32, i32
  }
  func.func @transform_2(%arg0: i32) -> (i32, i32) {
    %c0_i32 = arith.constant 0 : i32
    %c0_i32_0 = arith.constant 0 : i32
    %c0_i32_1 = arith.constant 0 : i32
    return %c0_i32, %c0_i32_0 : i32, i32
  }
  func.func @transform_3(%arg0: i32) -> (i32, i32) {
    %c0_i32 = arith.constant 0 : i32
    %c0_i32_0 = arith.constant 0 : i32
    %c0_i32_1 = arith.constant 0 : i32
    return %c0_i32, %c0_i32_0 : i32, i32
  }
  func.func @transform_4(%arg0: i32) -> (i32, i32) {
    %c0_i32 = arith.constant 0 : i32
    %c0_i32_0 = arith.constant 0 : i32
    %c0_i32_1 = arith.constant 0 : i32
    return %c0_i32, %c0_i32_0 : i32, i32
  }
  func.func @transform_5(%arg0: i32) -> (i32, i32) {
    %c0_i32 = arith.constant 0 : i32
    %c0_i32_0 = arith.constant 0 : i32
    %c0_i32_1 = arith.constant 0 : i32
    return %c0_i32, %c0_i32_0 : i32, i32
  }
  func.func @transform_6(%arg0: i32) -> (i32, i32) {
    %c0_i32 = arith.constant 0 : i32
    %c0_i32_0 = arith.constant 0 : i32
    %c0_i32_1 = arith.constant 0 : i32
    return %c0_i32, %c0_i32_0 : i32, i32
  }
  func.func @transform_7(%arg0: i32) -> (i32, i32) {
    %c0_i32 = arith.constant 0 : i32
    %c0_i32_0 = arith.constant 0 : i32
    %c0_i32_1 = arith.constant 0 : i32
    return %c0_i32, %c0_i32_0 : i32, i32
  }
  func.func @transform_8(%arg0: i32) -> (i32, i32) {
    %c0_i32 = arith.constant 0 : i32
    %c0_i32_0 = arith.constant 0 : i32
    %c0_i32_1 = arith.constant 0 : i32
    return %c0_i32, %c0_i32_0 : i32, i32
  }
  func.func @transform_9(%arg0: i32) -> (i32, i32) {
    %c0_i32 = arith.constant 0 : i32
    %c0_i32_0 = arith.constant 0 : i32
    %c0_i32_1 = arith.constant 0 : i32
    return %c0_i32, %c0_i32_0 : i32, i32
  }
  func.func @transform_10(%arg0: i32) -> (i32, i32) {
    %c0_i32 = arith.constant 0 : i32
    %c0_i32_0 = arith.constant 0 : i32
    %c0_i32_1 = arith.constant 0 : i32
    return %c0_i32, %c0_i32_0 : i32, i32
  }
  func.func @transform_11(%arg0: i32) -> (i32, i32) {
    %c0_i32 = arith.constant 0 : i32
    %c0_i32_0 = arith.constant 0 : i32
    return %arg0, %c0_i32 : i32, i32
  }
}

</mosaic_0001>

<bundles_post_ra>
// kernel: violence_lstm_forward.1
= control target key start
LH: loop header
LB: loop body
LE: loop exit
PB: predicated region body
PF: predicated region fallthrough
CT: control target
= control target key end

     0   :  { %16 = vsyncpa [#allocation3], 0  ;;  %s5623_s0 = inlined_call_operand.vmem [shape: f32[8,8,16], index: 0, kind: input, shape index: {}]   ;;  %s5624_s1 = inlined_call_operand.hbm [shape: f32[16,128], index: 1, kind: input, shape index: {}]   ;;  %s5625_s2 = inlined_call_operand.vmem [shape: f32[128,128], index: 2, kind: input, shape index: {}]   ;;  %s5626_s3 = inlined_call_operand.vmem [shape: f32[1,128], index: 3, kind: input, shape index: {}]   ;;  %s5627_s4 = inlined_call_operand.vmem [shape: f32[128,128], index: 4, kind: input, shape index: {}]   ;;  %s5628_s5 = inlined_call_operand.hbm [shape: f32[128,128], index: 5, kind: input, shape index: {}]   ;;  %s5629_s6 = inlined_call_operand.vmem [shape: f32[1,128], index: 6, kind: input, shape index: {}]   ;;  %s5630_s7 = inlined_call_operand.vmem [shape: f32[128,16], index: 7, kind: input, shape index: {}]   ;;  %s5631_s8 = inlined_call_operand.vmem [shape: f32[1,16], index: 8, kind: input, shape index: {}]   ;;  %s5632_s9 = inlined_call_operand.hbm [shape: f32[16,128], index: 9, kind: input, shape index: {}]   ;;  %s5633_s10 = inlined_call_operand.vmem [shape: f32[1,128], index: 10, kind: input, shape index: {}]   ;;  %s5634_s11 = inlined_call_operand.vmem [shape: f32[8,128], index: 11, kind: output, shape index: {}]  }
   0x1   :  { %17 = vsyncpa [#allocation5], 0  ;;  %s4012_s17 = smov [#allocation4]   ;;  %s4013_s19 = smov [#allocation2]  }
   0x2   :  { %s43_s18 = sshll.u32 %s4012_s17, 4  ;;  %s25_s20 = sshll.u32 %s4013_s19, 4  ;;  %s44_s18 = int_to_ptr.vmem [resolvable:$true] %s43_s18  ;;  %s26_s20 = int_to_ptr.vmem [resolvable:$true] %s25_s20 }
   0x3   :  { %s3956_s21 = scalar_lea.vmem %s44_s18, 2048  ;;  %p3961_p1 = scmp.lt.s32.totalorder %s44_s18, %s44_s18 }
   0x4   :  { %p3957_p0 = scmp.ne.s32.totalorder %s44_s18, %s3956_s21  ;;  %p3962_p2 = scmp.lt.s32.totalorder %s3956_s21, %s3956_s21 }
   0x6   :  { %p3963_p3 = por %p3962_p2, %p3961_p1 }
   0x8   :  { %p3964_p4 = pnand %p3963_p3, %p3957_p0 }
   0xa   :  { %3967 = shalt.err (!%p3964_p4)
}
   0xb   :  { %s4014_s22 = smov 128   ;;  %s4015_s23 = smov 8  }
   0xc   :  { %49 = dma.hbm_to_vmem [thread:$0]  %s5628_s5, 2048, %s44_s18, [#allocation5], %s4014_s22, %s4014_s22, %s4015_s23  }
   0xd   :  { %s3976_s26 = scalar_lea.vmem %s26_s20, 256  ;;  %p3981_p6 = scmp.lt.s32.totalorder %s26_s20, %s26_s20 }
   0xe   :  { %p3977_p5 = scmp.ne.s32.totalorder %s26_s20, %s3976_s26  ;;  %p3982_p7 = scmp.lt.s32.totalorder %s3976_s26, %s3976_s26 }
  0x10   :  { %p3983_p8 = por %p3982_p7, %p3981_p6 }
  0x12   :  { %p3984_p9 = pnand %p3983_p8, %p3977_p5 }
  0x14   :  { %3987 = shalt.err (!%p3984_p9)
}
  0x15   :  { %31 = dma.hbm_to_vmem [thread:$0]  %s5624_s1, 256, %s26_s20, [#allocation3], %s4014_s22, %s4014_s22, %s4015_s23  }
  0x16   :  { %s4016_s29 = smov [#allocation6]  }
  0x17   :  { %s61_s30 = sshll.u32 %s4016_s29, 4  ;;  %s62_s30 = int_to_ptr.vmem [resolvable:$true] %s61_s30 }
  0x18   :  { %s3996_s12 = scalar_lea.vmem %s62_s30, 256  ;;  %p4001_p11 = scmp.lt.s32.totalorder %s62_s30, %s62_s30 }
  0x19   :  { %p3997_p10 = scmp.ne.s32.totalorder %s62_s30, %s3996_s12  ;;  %p4002_p12 = scmp.lt.s32.totalorder %s3996_s12, %s3996_s12 }
  0x1b   :  { %p4003_p13 = por %p4002_p12, %p4001_p11 }
  0x1d   :  { %p4004_p0 = pnand %p4003_p13, %p3997_p10 }
  0x1f   :  { %4007 = shalt.err (!%p4004_p0)
}
  0x20   :  { %67 = dma.hbm_to_vmem [thread:$0]  %s5632_s9, 256, %s62_s30, [#allocation5], %s4014_s22, %s4014_s22, %s4015_s23  }
  0x21   :  { %4008 = dma.done.wait [#allocation3], 256  }
  0x22   :  { %4009 = vsyncadd [#allocation3], 4294967040 }
  0x23   :  { %4010 = dma.done.wait [#allocation5], 2304  }
  0x24   :  { %4011 = vsyncadd [#allocation5], 4294964992  ;;  %v5635_v0 = vmov 0.0   ;;  %vm4018_vm0 = vmmov 0   ;;  %vm154_vm1 = vcmask 130048   ;;  %v146_v1 = vld [vmem:[#allocation2 + $0x8] sm:$0xff] }
  0x25   :  { %2894 = vmatprep.subr.mxu1 %v5635_v0  ;;  %2926 = vmatprep.mubr.msk.f32.mxu1 %vm4018_vm0, %v5635_v0  ;;  %v145_v2 = vld [vmem:[#allocation2] sm:$0xff]  ;;  %v138_v4 = vld [vmem:[%s5623_s0 + $0x8] sm:$0xff]  ;;  %v4104_v5 = vld [vmem:[%s5625_s2 + $0x78] sm:$0xff]  ;;  %s4019_s17 = smov 64   ;;  %s4020_s18 = smov 96  }
  0x26   :  { %v137_v3 = vld [vmem:[%s5623_s0] sm:$0xff]  ;;  %2878 = vmatprep.subr.mxu0 %v146_v1  ;;  %v139_v6 = vld [vmem:[%s5623_s0 + $0x10] sm:$0xff]  ;;  %v140_v8 = vld [vmem:[%s5623_s0 + $0x18] sm:$0xff]  ;;  %s4021_s22 = smov 32  }
  0x27   :  { %2882 = vmatprep.mubr.msk.f32.mxu0 %vm154_vm1, %v137_v3  ;;  %2879 = vmatpush3.msra.mxu0 %v146_v1  ;;  %v4114_v7 = vld [vmem:[%s5625_s2 + $0x70] sm:$0xff]  ;;  %v4125_v9 = vld [vmem:[%s5625_s2 + $0x68] sm:$0xff]  ;;  %v141_v10 = vld [vmem:[%s5623_s0 + $0x20] sm:$0xff] }
  0x28   :  { %2880 = vmatprep.subr.mxu0 %v145_v2  ;;  %v4135_v11 = vld [vmem:[%s5625_s2 + $0x60] sm:$0xff]  ;;  %v142_v12 = vld [vmem:[%s5623_s0 + $0x28] sm:$0xff]  ;;  %v4147_v13 = vld [vmem:[%s5625_s2 + $0x58] sm:$0xff] }
  0x29   :  { %2881 = vmatpush3.msra.mxu0 %v145_v2  ;;  %v143_v14 = vld [vmem:[%s5623_s0 + $0x30] sm:$0xff]  ;;  %v144_v16 = vld [vmem:[%s5623_s0 + $0x38] sm:$0xff]  ;;  %v4169_v17 = vld [vmem:[%s5625_s2 + $0x48] sm:$0xff] }
  0x2a   :  { %2883 = vmatmul.mubr.msk.f32.vlgmr.msra.gmra.mxu0 %vm154_vm1, %v138_v4  ;;  %2929 = vmatprep.subr.mxu0 %v5635_v0  ;;  %v4157_v15 = vld [vmem:[%s5625_s2 + $0x50] sm:$0xff]  ;;  %v4176_v18 = vld [vmem:[%s5625_s2 + $0x40] sm:$0xff]  ;;  %v4186_v19 = vld [vmem:[%s5625_s2 + $0x38] sm:$0xff] }
  0x2b   :  { %2930 = vmatpush3.msra.mxu0 %v4104_v5  ;;  %2885 = vmatprep.mubr.msk.f32.mxu0 %vm154_vm1, %v139_v6  ;;  %v4193_v20 = vld [vmem:[%s5625_s2 + $0x30] sm:$0xff]  ;;  %v4200_v21 = vld [vmem:[%s5625_s2 + $0x28] sm:$0xff]  ;;  %v4207_v22 = vld [vmem:[%s5625_s2 + $0x20] sm:$0xff] }
  0x2c   :  { %2931 = vmatprep.subr.mxu0 %v5635_v0  ;;  %v4214_v23 = vld [vmem:[%s5625_s2 + $0x18] sm:$0xff]  ;;  %v4221_v24 = vld [vmem:[%s5625_s2 + $0x10] sm:$0xff]  ;;  %v4228_v25 = vld [vmem:[%s5625_s2 + $0x8] sm:$0xff] }
  0x2d   :  { %2932 = vmatpush3.msra.mxu0 %v4114_v7  ;;  %v4235_v26 = vld [vmem:[%s5625_s2] sm:$0xff]  ;;  %v4244_v27 = vld [vmem:[#allocation4 + $0x78] sm:$0xff]  ;;  %v4251_v29 = vld [vmem:[#allocation4 + $0x68] sm:$0xff] }
  0x2e   :  { %2933 = vmatprep.subr.mxu0 %v5635_v0  ;;  %2886 = vmatmul.mubr.msk.f32.gmra.mxu0 %vm154_vm1, %v140_v8  ;;  %v4246_v28 = vld [vmem:[#allocation4 + $0x70] sm:$0xff]  ;;  %v4257_v30 = vld [vmem:[#allocation4 + $0x60] sm:$0xff]  ;;  %v4263_v31 = vld [vmem:[#allocation4 + $0x58] sm:$0xff] }
  0x2f   :  { %2934 = vmatpush3.msra.mxu0 %v4125_v9  ;;  %2888 = vmatprep.mubr.msk.f32.mxu0 %vm154_vm1, %v141_v10  ;;  %v4269_v32 = vld [vmem:[#allocation4 + $0x50] sm:$0xff]  ;;  %v4275_v33 = vld [vmem:[#allocation4 + $0x48] sm:$0xff]  ;;  %v4281_v34 = vld [vmem:[#allocation4 + $0x40] sm:$0xff]  ;;  %v134_v10 = vlaneseq }
  0x30   :  { %2935 = vmatprep.subr.mxu0 %v5635_v0  ;;  %2895 = vmatpush3.msra.mxu1 %v4244_v27  ;;  %v4287_v35 = vld [vmem:[#allocation4 + $0x38] sm:$0xff]  ;;  %v4293_v36 = vld [vmem:[#allocation4 + $0x30] sm:$0xff]  ;;  %v4299_v37 = vld [vmem:[#allocation4 + $0x28] sm:$0xff] }
  0x31   :  { %2936 = vmatpush3.msra.mxu0 %v4135_v11  ;;  %2896 = vmatprep.subr.mxu1 %v5635_v0  ;;  %v4305_v38 = vld [vmem:[#allocation4 + $0x20] sm:$0xff]  ;;  %v4311_v39 = vld [vmem:[#allocation4 + $0x18] sm:$0xff]  ;;  %v4317_v40 = vld [vmem:[#allocation4 + $0x10] sm:$0xff] }
  0x32   :  { %2937 = vmatprep.subr.mxu0 %v5635_v0  ;;  %2889 = vmatmul.mubr.msk.f32.gmra.mxu0 %vm154_vm1, %v142_v12  ;;  %v4323_v41 = vld [vmem:[#allocation4 + $0x8] sm:$0xff]  ;;  %v4329_v42 = vld [vmem:[#allocation4] sm:$0xff]  ;;  %v4357_v45 = vld [vmem:[%s5627_s4 + $0x68] sm:$0xff] }
  0x33   :  { %2938 = vmatpush3.msra.mxu0 %v4147_v13  ;;  %2891 = vmatprep.mubr.msk.f32.mxu0 %vm154_vm1, %v143_v14  ;;  %v4338_v43 = vld [vmem:[%s5627_s4 + $0x78] sm:$0xff]  ;;  %v4348_v44 = vld [vmem:[%s5627_s4 + $0x70] sm:$0xff]  ;;  %v4365_v46 = vld [vmem:[%s5627_s4 + $0x60] sm:$0xff]  ;;  %v4408_v14 = vand.u32 127, %v134_v10 }
  0x34   :  { %2939 = vmatprep.subr.mxu0 %v5635_v0  ;;  %2897 = vmatpush3.msra.mxu1 %v4246_v28  ;;  %v2428_v47 = vld [vmem:[%s5626_s3] ss:$0 sm:$0xff]  ;;  %v4391_v6 = vld [vmem:[%s5627_s4 + $0x58] sm:$0xff]  ;;  %v4397_v8 = vld [vmem:[%s5627_s4 + $0x50] sm:$0xff] }
  0x35   :  { %2940 = vmatpush3.msra.mxu0 %v4157_v15  ;;  %2898 = vmatprep.subr.mxu1 %v5635_v0  ;;  %v4405_v12 = vld [vmem:[%s5627_s4 + $0x48] sm:$0xff]  ;;  %vm136_vm2 = vcmp.lt.s32.totalorder %v4408_v14, 96 }
  0x36   :  { %2941 = vmatprep.subr.mxu0 %v5635_v0  ;;  %2892 = vmatmul.mubr.msk.f32.gmra.mxu0 %vm154_vm1, %v144_v16  ;;  %v4414_v16 = vld [vmem:[%s5627_s4 + $0x40] sm:$0xff]  ;;  %v2245_v14 = vld [vmem:[%s5630_s7 + $0x8] sm:$0xff] }
  0x37   :  { %2942 = vmatpush3.msra.mxu0 %v4169_v17  ;;  %2961 = vmatprep.mubr.msk.f32.mxu0 %vm4018_vm0, %v5635_v0 }
  0x38   :  { %2943 = vmatprep.subr.mxu0 %v5635_v0  ;;  %2899 = vmatpush3.msra.mxu1 %v4251_v29 }
  0x39   :  { %2944 = vmatpush3.msra.mxu0 %v4176_v18  ;;  %2900 = vmatprep.subr.mxu1 %v5635_v0 }
  0x3a   :  { %2945 = vmatprep.subr.mxu0 %v5635_v0  ;;  %2901 = vmatpush3.msra.mxu1 %v4257_v30 }
  0x3b   :  { %2946 = vmatpush3.msra.mxu0 %v4186_v19  ;;  %2902 = vmatprep.subr.mxu1 %v5635_v0 }
  0x3c   :  { %2947 = vmatprep.subr.mxu0 %v5635_v0  ;;  %2903 = vmatpush3.msra.mxu1 %v4263_v31 }
  0x3d   :  { %2948 = vmatpush3.msra.mxu0 %v4193_v20  ;;  %2904 = vmatprep.subr.mxu1 %v5635_v0 }
  0x3e   :  { %2949 = vmatprep.subr.mxu0 %v5635_v0  ;;  %2905 = vmatpush3.msra.mxu1 %v4269_v32 }
  0x3f   :  { %2950 = vmatpush3.msra.mxu0 %v4200_v21  ;;  %2906 = vmatprep.subr.mxu1 %v5635_v0 }
  0x40   :  { %2951 = vmatprep.subr.mxu0 %v5635_v0  ;;  %2907 = vmatpush3.msra.mxu1 %v4275_v33 }
  0x41   :  { %2952 = vmatpush3.msra.mxu0 %v4207_v22  ;;  %2908 = vmatprep.subr.mxu1 %v5635_v0 }
  0x42   :  { %2953 = vmatprep.subr.mxu0 %v5635_v0  ;;  %2909 = vmatpush3.msra.mxu1 %v4281_v34 }
  0x43   :  { %2954 = vmatpush3.msra.mxu0 %v4214_v23  ;;  %2910 = vmatprep.subr.mxu1 %v5635_v0 }
  0x44   :  { %2955 = vmatprep.subr.mxu0 %v5635_v0  ;;  %2911 = vmatpush3.msra.mxu1 %v4287_v35 }
  0x45   :  { %2956 = vmatpush3.msra.mxu0 %v4221_v24  ;;  %2912 = vmatprep.subr.mxu1 %v5635_v0 }
  0x46   :  { %2957 = vmatprep.subr.mxu0 %v5635_v0  ;;  %2913 = vmatpush3.msra.mxu1 %v4293_v36 }
  0x47   :  { %2958 = vmatpush3.msra.mxu0 %v4228_v25  ;;  %2914 = vmatprep.subr.mxu1 %v5635_v0 }
  0x48   :  { %2959 = vmatprep.subr.mxu0 %v5635_v0  ;;  %2915 = vmatpush3.msra.mxu1 %v4299_v37 }
  0x49   :  { %2960 = vmatpush3.msra.mxu0 %v4235_v26  ;;  %2916 = vmatprep.subr.mxu1 %v5635_v0 }
  0x4a   :  { %2962 = vmatmul.mubr.f32.vlgmr.msra.gmra.mxu0 %v5635_v0  ;;  %2999 = vmatprep.subr.mxu0 %v5635_v0 }
  0x4b   :  { %3031 = vmatprep.mubr.msk.f32.mxu0 %vm4018_vm0, %v5635_v0  ;;  %3000 = vmatpush3.msra.mxu0 %v4244_v27 }
  0x4c   :  { %3001 = vmatprep.subr.mxu0 %v5635_v0  ;;  %2917 = vmatpush3.msra.mxu1 %v4305_v38 }
  0x4d   :  { %3002 = vmatpush3.msra.mxu0 %v4246_v28  ;;  %2918 = vmatprep.subr.mxu1 %v5635_v0 }
  0x4e   :  { %3003 = vmatprep.subr.mxu0 %v5635_v0  ;;  %2919 = vmatpush3.msra.mxu1 %v4311_v39 }
  0x4f   :  { %3004 = vmatpush3.msra.mxu0 %v4251_v29  ;;  %2920 = vmatprep.subr.mxu1 %v5635_v0 }
  0x50   :  { %3005 = vmatprep.subr.mxu0 %v5635_v0  ;;  %2921 = vmatpush3.msra.mxu1 %v4317_v40 }
  0x51   :  { %3006 = vmatpush3.msra.mxu0 %v4257_v30  ;;  %2922 = vmatprep.subr.mxu1 %v5635_v0 }
  0x52   :  { %3007 = vmatprep.subr.mxu0 %v5635_v0  ;;  %2923 = vmatpush3.msra.mxu1 %v4323_v41 }
  0x53   :  { %3008 = vmatpush3.msra.mxu0 %v4263_v31  ;;  %2924 = vmatprep.subr.mxu1 %v5635_v0 }
  0x54   :  { %3009 = vmatprep.subr.mxu0 %v5635_v0  ;;  %2925 = vmatpush3.msra.mxu1 %v4329_v42 }
  0x55   :  { %3010 = vmatpush3.msra.mxu0 %v4269_v32  ;;  %2927 = vmatmul.mubr.f32.vlgmr.msra.gmra.mxu1 %v5635_v0 }
  0x56   :  { %3011 = vmatprep.subr.mxu0 %v5635_v0  ;;  %2964 = vmatprep.subr.mxu1 %v5635_v0 }
  0x57   :  { %3012 = vmatpush3.msra.mxu0 %v4275_v33  ;;  %2965 = vmatpush3.msra.mxu1 %v4338_v43 }
  0x58   :  { %3013 = vmatprep.subr.mxu0 %v5635_v0  ;;  %2996 = vmatprep.mubr.msk.f32.mxu1 %vm4018_vm0, %v5635_v0 }
  0x59   :  { %3014 = vmatpush3.msra.mxu0 %v4281_v34  ;;  %2966 = vmatprep.subr.mxu1 %v5635_v0 }
  0x5a   :  { %3015 = vmatprep.subr.mxu0 %v5635_v0  ;;  %2967 = vmatpush3.msra.mxu1 %v4348_v44 }
  0x5b   :  { %3016 = vmatpush3.msra.mxu0 %v4287_v35  ;;  %2968 = vmatprep.subr.mxu1 %v5635_v0 }
  0x5c   :  { %3017 = vmatprep.subr.mxu0 %v5635_v0  ;;  %2969 = vmatpush3.msra.mxu1 %v4357_v45 }
  0x5d   :  { %3018 = vmatpush3.msra.mxu0 %v4293_v36  ;;  %2970 = vmatprep.subr.mxu1 %v5635_v0 }
  0x5e   :  { %3019 = vmatprep.subr.mxu0 %v5635_v0  ;;  %2971 = vmatpush3.msra.mxu1 %v4365_v46 }
  0x5f   :  { %3020 = vmatpush3.msra.mxu0 %v4299_v37  ;;  %2972 = vmatprep.subr.mxu1 %v5635_v0 }
  0x60   :  { %3021 = vmatprep.subr.mxu0 %v5635_v0  ;;  %2973 = vmatpush3.msra.mxu1 %v4391_v6 }
  0x61   :  { %3022 = vmatpush3.msra.mxu0 %v4305_v38  ;;  %2974 = vmatprep.subr.mxu1 %v5635_v0 }
  0x62   :  { %3023 = vmatprep.subr.mxu0 %v5635_v0  ;;  %2975 = vmatpush3.msra.mxu1 %v4397_v8 }
  0x63   :  { %3024 = vmatpush3.msra.mxu0 %v4311_v39  ;;  %2976 = vmatprep.subr.mxu1 %v5635_v0 }
  0x64   :  { %3025 = vmatprep.subr.mxu0 %v5635_v0  ;;  %2977 = vmatpush3.msra.mxu1 %v4405_v12 }
  0x65   :  { %3026 = vmatpush3.msra.mxu0 %v4317_v40  ;;  %2978 = vmatprep.subr.mxu1 %v5635_v0 }
  0x66   :  { %3027 = vmatprep.subr.mxu0 %v5635_v0  ;;  %2979 = vmatpush3.msra.mxu1 %v4414_v16 }
  0x67   :  { %3028 = vmatpush3.msra.mxu0 %v4323_v41  ;;  %2980 = vmatprep.subr.mxu1 %v5635_v0 }
  0x68   :  { %3029 = vmatprep.subr.mxu0 %v5635_v0 }
  0x69   :  { %3030 = vmatpush3.msra.mxu0 %v4329_v42 }
  0x6a   :  { %3069 = vmatprep.subr.mxu0 %v5635_v0 }
  0xea   :  { %v2884_v48 = vpop.f32.mrf.mxu0 }
  0xeb   :  { %v4374_v49 = vadd.f32 %v2884_v48, %v2428_v47  ;;  %v4421_v48 = vld [vmem:[%s5627_s4 + $0x38] sm:$0xff] }
  0xec   :  { %v245_v50 = vpop.f32.mrf.mxu0  ;;  %2981 = vmatpush3.msra.mxu1 %v4421_v48 }
  0xed   :  { %v246_v63 = vadd.f32 %v2428_v47, %v245_v50  ;;  %2982 = vmatprep.subr.mxu1 %v5635_v0 }
  0xee   :  { %v2887_v51 = vpop.f32.mrf.mxu0 }
  0xef   :  { %v4376_v52 = vadd.f32 %v2887_v51, %v2428_v47  ;;  %v4427_v51 = vld [vmem:[%s5627_s4 + $0x30] sm:$0xff] }
  0xf0   :  { %v255_v53 = vpop.f32.mrf.mxu0  ;;  %2983 = vmatpush3.msra.mxu1 %v4427_v51 }
  0xf1   :  { %5640 = vst [vmem:[#allocation9_spill] sm:$0xff] %v4376_v52  ;;  %v4378_v54 = vadd.f32 %v2428_v47, %v255_v53  ;;  %v4434_v53 = vld [vmem:[%s5627_s4 + $0x28] sm:$0xff]  ;;  %2984 = vmatprep.subr.mxu1 %v5635_v0 }
  0xf2   :  { %v2890_v55 = vpop.f32.mrf.mxu0  ;;  %2985 = vmatpush3.msra.mxu1 %v4434_v53 }
  0xf3   :  { %5641 = vst [vmem:[#allocation10_spill] sm:$0xff] %v4378_v54  ;;  %v4380_v56 = vadd.f32 %v2890_v55, %v2428_v47  ;;  %2986 = vmatprep.subr.mxu1 %v5635_v0 }
  0xf4   :  { %v265_v57 = vpop.f32.mrf.mxu0 }
  0xf5   :  { %5642 = vst [vmem:[#allocation11_spill] sm:$0xff] %v4380_v56  ;;  %v4382_v58 = vadd.f32 %v2428_v47, %v265_v57 }
  0xf6   :  { %v2893_v59 = vpop.f32.mrf.mxu0 }
  0xf7   :  { %5643 = vst [vmem:[#allocation12_spill] sm:$0xff] %v4382_v58  ;;  %v4384_v60 = vadd.f32 %v2893_v59, %v2428_v47 }
  0xf8   :  { %v275_v61 = vpop.f32.mrf.mxu0 }
  0xf9   :  { %5644 = vst [vmem:[#allocation13_spill] sm:$0xff] %v4384_v60  ;;  %v4386_v62 = vadd.f32 %v2428_v47, %v275_v61  ;;  %v4444_v61 = vld [vmem:[%s5627_s4 + $0x20] sm:$0xff] }
  0xfa   :  { %2987 = vmatpush3.msra.mxu1 %v4444_v61 }
  0xfb   :  { %5645 = vst [vmem:[#allocation14_spill] sm:$0xff] %v4386_v62  ;;  %2988 = vmatprep.subr.mxu1 %v5635_v0 }
 0x10a   :  { %v420_v1 = vpop.f32.mrf.mxu0 }
 0x10b   :  { %v424_v2 = vadd.f32 %v420_v1, %v246_v63  ;;  %v4452_v63 = vld [vmem:[%s5627_s4 + $0x18] sm:$0xff]  ;;  %v4459_v1 = vld [vmem:[%s5627_s4 + $0x10] sm:$0xff] }
 0x10c   :  { %v2963_v3 = vpop.f32.mrf.mxu0  ;;  %2989 = vmatpush3.msra.mxu1 %v4452_v63 }
 0x10d   :  { %v425_v4 = vmul.f32 0.5, %v424_v2  ;;  %2990 = vmatprep.subr.mxu1 %v5635_v0  ;;  %v4474_v3 = vld [vmem:[%s5627_s4] sm:$0xff] }
 0x10e   :  { %2991 = vmatpush3.msra.mxu1 %v4459_v1 }
 0x10f   :  { %3786 = vtanh.f32 %v425_v4  ;;  %2992 = vmatprep.subr.mxu1 %v5635_v0 }
 0x110   :  { %3788 = vtanh.f32 %v424_v2  ;;  %v4467_v2 = vld [vmem:[%s5627_s4 + $0x8] sm:$0xff] }
 0x111   :  { %2993 = vmatpush3.msra.mxu1 %v4467_v2 }
 0x112   :  { %2994 = vmatprep.subr.mxu1 %v5635_v0 }
 0x113   :  { %2995 = vmatpush3.msra.mxu1 %v4474_v3 }
 0x114   :  { %3034 = vmatprep.subr.mxu1 %v5635_v0 }
 0x115   :  { %v4480_v4 = vpop.f32.mrf.mxu1 }
 0x117   :  { %v2928_v10 = vpop.f32.mrf.mxu1 }
 0x11c   :  { %v3787_v47 = vpop.eup %3786 }
 0x11d   :  { %v427_v50 = vmul.f32 0.5, %v3787_v47  ;;  %v3789_v57 = vpop.eup %3788 }
 0x11f   :  { %v428_v55 = vadd.f32 0.5, %v427_v50 }
 0x121   :  { %v430_v59 = vsel %vm136_vm2, %v428_v55, %v3789_v57 }
 0x122   :  { %433 = vrot.lane.b32.xlu1 %v430_v59, %s4019_s17  ;;  %431 = vrot.lane.b32.xlu0 %v430_v59, %s4020_s18 }
 0x126   :  { %435 = vrot.lane.b32.xlu0 %v430_v59, %s4021_s22 }
 0x194   :  { %v432_v47 = vpop.permute.xlu0 %431  ;;  %v434_v56 = vpop.permute.xlu1 %433 }
 0x195   :  { %v437_v55 = vmul.f32 0.0, %v432_v47 }
 0x198   :  { %v436_v50 = vpop.permute.xlu0 %435 }
 0x199   :  { %v438_v57 = vmul.f32 %v436_v50, %v430_v59 }
 0x19b   :  { %v4482_v60 = vadd.f32 %v438_v57, %v437_v55 }
 0x19d   :  { %3790 = vtanh.f32 %v4482_v60 }
 0x1aa   :  { %v3791_v62 = vpop.eup %3790 }
 0x1ab   :  { %v441_v58 = vmul.f32 %v3791_v62, %v434_v56  ;;  %v4556_v56 = vld [vmem:[%s5629_s6] ss:$0 sm:$0xff] }
 0x1ad   :  { %2997 = vmatmul.mubr.f32.vlgmr.msra.gmra.mxu1 %v441_v58 }
 0x1ae   :  { %3035 = vmatpush3.msra.mxu1 %v4104_v5  ;;  %3066 = vmatprep.mubr.msk.f32.mxu1 %vm4018_vm0, %v5635_v0 }
 0x1af   :  { %3036 = vmatprep.subr.mxu1 %v5635_v0 }
 0x1b0   :  { %3037 = vmatpush3.msra.mxu1 %v4114_v7 }
 0x1b1   :  { %3038 = vmatprep.subr.mxu1 %v5635_v0 }
 0x1b2   :  { %3039 = vmatpush3.msra.mxu1 %v4125_v9 }
 0x1b3   :  { %3040 = vmatprep.subr.mxu1 %v5635_v0 }
 0x1b4   :  { %3041 = vmatpush3.msra.mxu1 %v4135_v11 }
 0x1b5   :  { %3042 = vmatprep.subr.mxu1 %v5635_v0 }
 0x1b6   :  { %3043 = vmatpush3.msra.mxu1 %v4147_v13 }
 0x1b7   :  { %3044 = vmatprep.subr.mxu1 %v5635_v0 }
 0x1b8   :  { %3045 = vmatpush3.msra.mxu1 %v4157_v15 }
 0x1b9   :  { %3046 = vmatprep.subr.mxu1 %v5635_v0 }
 0x1ba   :  { %3047 = vmatpush3.msra.mxu1 %v4169_v17 }
 0x1bb   :  { %3048 = vmatprep.subr.mxu1 %v5635_v0 }
 0x1bc   :  { %3049 = vmatpush3.msra.mxu1 %v4176_v18 }
 0x1bd   :  { %3050 = vmatprep.subr.mxu1 %v5635_v0 }
 0x1be   :  { %3051 = vmatpush3.msra.mxu1 %v4186_v19 }
 0x1bf   :  { %3052 = vmatprep.subr.mxu1 %v5635_v0 }
 0x1c0   :  { %3053 = vmatpush3.msra.mxu1 %v4193_v20 }
 0x1c1   :  { %3054 = vmatprep.subr.mxu1 %v5635_v0 }
 0x1c2   :  { %3055 = vmatpush3.msra.mxu1 %v4200_v21 }
 0x1c3   :  { %3056 = vmatprep.subr.mxu1 %v5635_v0 }
 0x1c4   :  { %3057 = vmatpush3.msra.mxu1 %v4207_v22 }
 0x1c5   :  { %3058 = vmatprep.subr.mxu1 %v5635_v0 }
 0x1c6   :  { %3059 = vmatpush3.msra.mxu1 %v4214_v23 }
 0x1c7   :  { %3060 = vmatprep.subr.mxu1 %v5635_v0 }
 0x1c8   :  { %3061 = vmatpush3.msra.mxu1 %v4221_v24 }
 0x1c9   :  { %3062 = vmatprep.subr.mxu1 %v5635_v0 }
 0x1ca   :  { %3063 = vmatpush3.msra.mxu1 %v4228_v25 }
 0x1cb   :  { %3064 = vmatprep.subr.mxu1 %v5635_v0 }
 0x1cc   :  { %3065 = vmatpush3.msra.mxu1 %v4235_v26 }
 0x1cd   :  { %3067 = vmatmul.mubr.f32.vlgmr.msra.gmra.mxu1 %v441_v58  ;;  %3104 = vmatprep.subr.mxu1 %v5635_v0  ;;  %v351_v58 = vadd.f32 %v4556_v56, %v4480_v4 }
 0x1ce   :  { %3105 = vmatpush3.msra.mxu1 %v4244_v27  ;;  %3136 = vmatprep.mubr.msk.f32.mxu1 %vm4018_vm0, %v5635_v0 }
 0x1cf   :  { %3106 = vmatprep.subr.mxu1 %v5635_v0 }
 0x1d0   :  { %3107 = vmatpush3.msra.mxu1 %v4246_v28 }
 0x1d1   :  { %3108 = vmatprep.subr.mxu1 %v5635_v0 }
 0x1d2   :  { %3109 = vmatpush3.msra.mxu1 %v4251_v29 }
 0x1d3   :  { %3110 = vmatprep.subr.mxu1 %v5635_v0 }
 0x1d4   :  { %3111 = vmatpush3.msra.mxu1 %v4257_v30 }
 0x1d5   :  { %3112 = vmatprep.subr.mxu1 %v5635_v0 }
 0x1d6   :  { %3113 = vmatpush3.msra.mxu1 %v4263_v31 }
 0x1d7   :  { %3114 = vmatprep.subr.mxu1 %v5635_v0 }
 0x1d8   :  { %3115 = vmatpush3.msra.mxu1 %v4269_v32 }
 0x1d9   :  { %3116 = vmatprep.subr.mxu1 %v5635_v0 }
 0x1da   :  { %3117 = vmatpush3.msra.mxu1 %v4275_v33 }
 0x1db   :  { %3118 = vmatprep.subr.mxu1 %v5635_v0 }
 0x1dc   :  { %3119 = vmatpush3.msra.mxu1 %v4281_v34 }
 0x1dd   :  { %3120 = vmatprep.subr.mxu1 %v5635_v0 }
 0x1de   :  { %3121 = vmatpush3.msra.mxu1 %v4287_v35 }
 0x1df   :  { %3122 = vmatprep.subr.mxu1 %v5635_v0 }
 0x1e0   :  { %3123 = vmatpush3.msra.mxu1 %v4293_v36 }
 0x1e1   :  { %3124 = vmatprep.subr.mxu1 %v5635_v0 }
 0x1e2   :  { %3125 = vmatpush3.msra.mxu1 %v4299_v37 }
 0x1e3   :  { %3126 = vmatprep.subr.mxu1 %v5635_v0 }
 0x1e4   :  { %3127 = vmatpush3.msra.mxu1 %v4305_v38 }
 0x1e5   :  { %3128 = vmatprep.subr.mxu1 %v5635_v0 }
 0x1e6   :  { %3129 = vmatpush3.msra.mxu1 %v4311_v39 }
 0x1e7   :  { %3130 = vmatprep.subr.mxu1 %v5635_v0 }
 0x1e8   :  { %3131 = vmatpush3.msra.mxu1 %v4317_v40 }
 0x1e9   :  { %3132 = vmatprep.subr.mxu1 %v5635_v0 }
 0x1ea   :  { %3133 = vmatpush3.msra.mxu1 %v4323_v41 }
 0x1eb   :  { %3134 = vmatprep.subr.mxu1 %v5635_v0 }
 0x1ec   :  { %3135 = vmatpush3.msra.mxu1 %v4329_v42 }
 0x1ed   :  { %3174 = vmatprep.subr.mxu1 %v5635_v0 }
 0x26d   :  { %v508_v62 = vpop.f32.mrf.mxu1 }
 0x26e   :  { %v509_v59 = vadd.f32 %v508_v62, %v351_v58 }
 0x26f   :  { %v2998_v10 = vpop.f32.mrf.mxu1 }
 0x270   :  { %v512_v47 = vmul.f32 0.5, %v509_v59 }
 0x272   :  { %3792 = vtanh.f32 %v512_v47 }
 0x273   :  { %3794 = vtanh.f32 %v509_v59 }
 0x27f   :  { %v3793_v50 = vpop.eup %3792 }
 0x280   :  { %v514_v55 = vmul.f32 0.5, %v3793_v50  ;;  %v3795_v52 = vpop.eup %3794 }
 0x282   :  { %v515_v57 = vadd.f32 0.5, %v514_v55 }
 0x284   :  { %v517_v0 = vsel %vm136_vm2, %v515_v57, %v3795_v52 }
 0x285   :  { %522 = vrot.lane.b32.xlu0 %v517_v0, %s4021_s22  ;;  %518 = vrot.lane.b32.xlu1 %v517_v0, %s4020_s18 }
 0x289   :  { %520 = vrot.lane.b32.xlu1 %v517_v0, %s4019_s17 }
 0x28d   :  { %v665_v4 = vpop.f32.mrf.mxu1 }
 0x28e   :  { %v669_v58 = vadd.f32 %v665_v4, %v4374_v49 }
 0x28f   :  { %v3068_v62 = vpop.f32.mrf.mxu1 }
 0x290   :  { %v670_v10 = vmul.f32 0.5, %v669_v58 }
 0x292   :  { %3796 = vtanh.f32 %v670_v10 }
 0x293   :  { %3798 = vtanh.f32 %v669_v58 }
 0x29f   :  { %v3797_v59 = vpop.eup %3796 }
 0x2a0   :  { %v672_v47 = vmul.f32 0.5, %v3797_v59  ;;  %v3799_v55 = vpop.eup %3798 }
 0x2a2   :  { %v673_v50 = vadd.f32 0.5, %v672_v47  ;;  %v5646_v47 = vmov 0.0  }
 0x2a4   :  { %v675_v52 = vsel %vm136_vm2, %v673_v50, %v3799_v55 }
 0x2a5   :  { %680 = vrot.lane.b32.xlu1 %v675_v52, %s4021_s22  ;;  %676 = vrot.lane.b32.xlu0 %v675_v52, %s4020_s18 }
 0x2a9   :  { %678 = vrot.lane.b32.xlu0 %v675_v52, %s4019_s17 }
 0x2f7   :  { %v523_v57 = vpop.permute.xlu0 %522  ;;  %v519_v54 = vpop.permute.xlu1 %518 }
 0x2f8   :  { %v525_v49 = vmul.f32 %v523_v57, %v517_v0  ;;  %v524_v4 = vmul.f32 0.0, %v519_v54 }
 0x2fa   :  { %v4571_v62 = vadd.f32 %v525_v49, %v524_v4 }
 0x2fb   :  { %v521_v10 = vpop.permute.xlu1 %520 }
 0x2fc   :  { %3800 = vtanh.f32 %v4571_v62 }
 0x309   :  { %v3801_v58 = vpop.eup %3800 }
 0x30a   :  { %v528_v59 = vmul.f32 %v3801_v58, %v521_v10 }
 0x30c   :  { %3032 = vmatmul.mubr.f32.vlgmr.msra.gmra.mxu0 %v528_v59 }
 0x30d   :  { %3070 = vmatpush3.msra.mxu0 %v4338_v43  ;;  %3101 = vmatprep.mubr.msk.f32.mxu0 %vm4018_vm0, %v5646_v47 }
 0x30e   :  { %3071 = vmatprep.subr.mxu0 %v5646_v47 }
 0x30f   :  { %3072 = vmatpush3.msra.mxu0 %v4348_v44 }
 0x310   :  { %3073 = vmatprep.subr.mxu0 %v5646_v47 }
 0x311   :  { %3074 = vmatpush3.msra.mxu0 %v4357_v45 }
 0x312   :  { %3075 = vmatprep.subr.mxu0 %v5646_v47 }
 0x313   :  { %3076 = vmatpush3.msra.mxu0 %v4365_v46 }
 0x314   :  { %3077 = vmatprep.subr.mxu0 %v5646_v47 }
 0x315   :  { %3078 = vmatpush3.msra.mxu0 %v4391_v6 }
 0x316   :  { %3079 = vmatprep.subr.mxu0 %v5646_v47 }
 0x317   :  { %3080 = vmatpush3.msra.mxu0 %v4397_v8  ;;  %v681_v0 = vpop.permute.xlu1 %680  ;;  %v677_v54 = vpop.permute.xlu0 %676 }
 0x318   :  { %v683_v50 = vmul.f32 %v681_v0, %v675_v52  ;;  %v682_v55 = vmul.f32 %v677_v54, %v4482_v60  ;;  %3081 = vmatprep.subr.mxu0 %v5646_v47 }
 0x319   :  { %3082 = vmatpush3.msra.mxu0 %v4405_v12 }
 0x31a   :  { %v4590_v57 = vadd.f32 %v683_v50, %v682_v55  ;;  %3083 = vmatprep.subr.mxu0 %v5646_v47 }
 0x31b   :  { %3084 = vmatpush3.msra.mxu0 %v4414_v16  ;;  %v679_v52 = vpop.permute.xlu0 %678 }
 0x31c   :  { %3802 = vtanh.f32 %v4590_v57  ;;  %3085 = vmatprep.subr.mxu0 %v5646_v47 }
 0x31d   :  { %3086 = vmatpush3.msra.mxu0 %v4421_v48 }
 0x31e   :  { %3087 = vmatprep.subr.mxu0 %v5646_v47 }
 0x31f   :  { %3088 = vmatpush3.msra.mxu0 %v4427_v51 }
 0x320   :  { %3089 = vmatprep.subr.mxu0 %v5646_v47 }
 0x321   :  { %3090 = vmatpush3.msra.mxu0 %v4434_v53 }
 0x322   :  { %3091 = vmatprep.subr.mxu0 %v5646_v47 }
 0x323   :  { %3092 = vmatpush3.msra.mxu0 %v4444_v61 }
 0x324   :  { %3093 = vmatprep.subr.mxu0 %v5646_v47 }
 0x325   :  { %3094 = vmatpush3.msra.mxu0 %v4452_v63 }
 0x326   :  { %3095 = vmatprep.subr.mxu0 %v5646_v47 }
 0x327   :  { %3096 = vmatpush3.msra.mxu0 %v4459_v1 }
 0x328   :  { %3097 = vmatprep.subr.mxu0 %v5646_v47 }
 0x329   :  { %v3803_v60 = vpop.eup %3802  ;;  %3098 = vmatpush3.msra.mxu0 %v4467_v2 }
 0x32a   :  { %v686_v49 = vmul.f32 %v3803_v60, %v679_v52  ;;  %3099 = vmatprep.subr.mxu0 %v5646_v47 }
 0x32b   :  { %3100 = vmatpush3.msra.mxu0 %v4474_v3 }
 0x32c   :  { %3102 = vmatmul.mubr.f32.vlgmr.msra.gmra.mxu0 %v686_v49  ;;  %3139 = vmatprep.subr.mxu0 %v5646_v47 }
 0x32d   :  { %3140 = vmatpush3.msra.mxu0 %v4104_v5  ;;  %3171 = vmatprep.mubr.msk.f32.mxu0 %vm4018_vm0, %v5646_v47 }
 0x32e   :  { %3141 = vmatprep.subr.mxu0 %v5646_v47 }
 0x32f   :  { %3142 = vmatpush3.msra.mxu0 %v4114_v7 }
 0x330   :  { %3143 = vmatprep.subr.mxu0 %v5646_v47 }
 0x331   :  { %3144 = vmatpush3.msra.mxu0 %v4125_v9 }
 0x332   :  { %3145 = vmatprep.subr.mxu0 %v5646_v47 }
 0x333   :  { %3146 = vmatpush3.msra.mxu0 %v4135_v11 }
 0x334   :  { %3147 = vmatprep.subr.mxu0 %v5646_v47 }
 0x335   :  { %3148 = vmatpush3.msra.mxu0 %v4147_v13 }
 0x336   :  { %3149 = vmatprep.subr.mxu0 %v5646_v47 }
 0x337   :  { %3150 = vmatpush3.msra.mxu0 %v4157_v15 }
 0x338   :  { %3151 = vmatprep.subr.mxu0 %v5646_v47 }
 0x339   :  { %3152 = vmatpush3.msra.mxu0 %v4169_v17 }
 0x33a   :  { %3153 = vmatprep.subr.mxu0 %v5646_v47 }
 0x33b   :  { %3154 = vmatpush3.msra.mxu0 %v4176_v18 }
 0x33c   :  { %3155 = vmatprep.subr.mxu0 %v5646_v47 }
 0x33d   :  { %3156 = vmatpush3.msra.mxu0 %v4186_v19 }
 0x33e   :  { %3157 = vmatprep.subr.mxu0 %v5646_v47 }
 0x33f   :  { %3158 = vmatpush3.msra.mxu0 %v4193_v20 }
 0x340   :  { %3159 = vmatprep.subr.mxu0 %v5646_v47 }
 0x341   :  { %3160 = vmatpush3.msra.mxu0 %v4200_v21 }
 0x342   :  { %3161 = vmatprep.subr.mxu0 %v5646_v47 }
 0x343   :  { %3162 = vmatpush3.msra.mxu0 %v4207_v22 }
 0x344   :  { %3163 = vmatprep.subr.mxu0 %v5646_v47 }
 0x345   :  { %3164 = vmatpush3.msra.mxu0 %v4214_v23 }
 0x346   :  { %3165 = vmatprep.subr.mxu0 %v5646_v47 }
 0x347   :  { %3166 = vmatpush3.msra.mxu0 %v4221_v24  ;;  %v5647_v24 = vld [vmem:[#allocation10_spill] sm:$0xff] }
 0x348   :  { %3167 = vmatprep.subr.mxu0 %v5646_v47 }
 0x349   :  { %3168 = vmatpush3.msra.mxu0 %v4228_v25 }
 0x34a   :  { %3169 = vmatprep.subr.mxu0 %v5646_v47 }
 0x34b   :  { %3170 = vmatpush3.msra.mxu0 %v4235_v26 }
 0x34c   :  { %3172 = vmatmul.mubr.f32.vlgmr.msra.gmra.mxu0 %v686_v49  ;;  %3209 = vmatprep.subr.mxu0 %v5646_v47 }
 0x34d   :  { %3210 = vmatpush3.msra.mxu0 %v4244_v27  ;;  %3241 = vmatprep.mubr.msk.f32.mxu0 %vm4018_vm0, %v5646_v47 }
 0x34e   :  { %3211 = vmatprep.subr.mxu0 %v5646_v47 }
 0x34f   :  { %3212 = vmatpush3.msra.mxu0 %v4246_v28 }
 0x350   :  { %3213 = vmatprep.subr.mxu0 %v5646_v47 }
 0x351   :  { %3214 = vmatpush3.msra.mxu0 %v4251_v29 }
 0x352   :  { %3215 = vmatprep.subr.mxu0 %v5646_v47 }
 0x353   :  { %3216 = vmatpush3.msra.mxu0 %v4257_v30 }
 0x354   :  { %3217 = vmatprep.subr.mxu0 %v5646_v47 }
 0x355   :  { %3218 = vmatpush3.msra.mxu0 %v4263_v31 }
 0x356   :  { %3219 = vmatprep.subr.mxu0 %v5646_v47 }
 0x357   :  { %3220 = vmatpush3.msra.mxu0 %v4269_v32 }
 0x358   :  { %3221 = vmatprep.subr.mxu0 %v5646_v47 }
 0x359   :  { %3222 = vmatpush3.msra.mxu0 %v4275_v33 }
 0x35a   :  { %3223 = vmatprep.subr.mxu0 %v5646_v47 }
 0x35b   :  { %3224 = vmatpush3.msra.mxu0 %v4281_v34 }
 0x35c   :  { %3225 = vmatprep.subr.mxu0 %v5646_v47 }
 0x35d   :  { %3226 = vmatpush3.msra.mxu0 %v4287_v35 }
 0x35e   :  { %3227 = vmatprep.subr.mxu0 %v5646_v47 }
 0x35f   :  { %3228 = vmatpush3.msra.mxu0 %v4293_v36 }
 0x360   :  { %3229 = vmatprep.subr.mxu0 %v5646_v47 }
 0x361   :  { %3230 = vmatpush3.msra.mxu0 %v4299_v37 }
 0x362   :  { %3231 = vmatprep.subr.mxu0 %v5646_v47 }
 0x363   :  { %3232 = vmatpush3.msra.mxu0 %v4305_v38 }
 0x364   :  { %3233 = vmatprep.subr.mxu0 %v5646_v47 }
 0x365   :  { %3234 = vmatpush3.msra.mxu0 %v4311_v39 }
 0x366   :  { %3235 = vmatprep.subr.mxu0 %v5646_v47 }
 0x367   :  { %3236 = vmatpush3.msra.mxu0 %v4317_v40 }
 0x368   :  { %3237 = vmatprep.subr.mxu0 %v5646_v47 }
 0x369   :  { %3238 = vmatpush3.msra.mxu0 %v4323_v41 }
 0x36a   :  { %3239 = vmatprep.subr.mxu0 %v5646_v47 }
 0x36b   :  { %3240 = vmatpush3.msra.mxu0 %v4329_v42 }
 0x36c   :  { %3279 = vmatprep.subr.mxu0 %v5646_v47 }
 0x3cc   :  { %v595_v5 = vpop.f32.mrf.mxu0 }
 0x3cd   :  { %v596_v9 = vadd.f32 %v4556_v56, %v595_v5 }
 0x3ce   :  { %v3033_v7 = vpop.f32.mrf.mxu0 }
 0x3ec   :  { %v753_v11 = vpop.f32.mrf.mxu0 }
 0x3ed   :  { %v754_v13 = vadd.f32 %v753_v11, %v596_v9 }
 0x3ee   :  { %v3103_v15 = vpop.f32.mrf.mxu0 }
 0x3ef   :  { %v757_v17 = vmul.f32 0.5, %v754_v13  ;;  %v4737_v15 = vld [vmem:[%s5625_s2 + $0x78] sm:$0xff] }
 0x3f1   :  { %3804 = vtanh.f32 %v757_v17  ;;  %v4746_v17 = vld [vmem:[%s5625_s2 + $0x70] sm:$0xff] }
 0x3f2   :  { %3806 = vtanh.f32 %v754_v13 }
 0x3fe   :  { %v3805_v18 = vpop.eup %3804 }
 0x3ff   :  { %v759_v19 = vmul.f32 0.5, %v3805_v18  ;;  %v3807_v21 = vpop.eup %3806  ;;  %v4753_v18 = vld [vmem:[%s5625_s2 + $0x68] sm:$0xff] }
 0x401   :  { %v760_v20 = vadd.f32 0.5, %v759_v19  ;;  %v4760_v19 = vld [vmem:[%s5625_s2 + $0x60] sm:$0xff] }
 0x403   :  { %v762_v22 = vsel %vm136_vm2, %v760_v20, %v3807_v21  ;;  %v4767_v20 = vld [vmem:[%s5625_s2 + $0x58] sm:$0xff]  ;;  %v4774_v21 = vld [vmem:[%s5625_s2 + $0x50] sm:$0xff] }
 0x404   :  { %767 = vrot.lane.b32.xlu0 %v762_v22, %s4021_s22  ;;  %763 = vrot.lane.b32.xlu1 %v762_v22, %s4020_s18 }
 0x408   :  { %765 = vrot.lane.b32.xlu1 %v762_v22, %s4019_s17 }
 0x40c   :  { %v910_v23 = vpop.f32.mrf.mxu0 }
 0x40d   :  { %v914_v25 = vadd.f32 %v910_v23, %v5647_v24  ;;  %v4788_v23 = vld [vmem:[%s5625_s2 + $0x40] sm:$0xff]  ;;  %v4795_v24 = vld [vmem:[%s5625_s2 + $0x38] sm:$0xff] }
 0x40e   :  { %v3173_v26 = vpop.f32.mrf.mxu0 }
 0x40f   :  { %v915_v27 = vmul.f32 0.5, %v914_v25  ;;  %v4809_v26 = vld [vmem:[%s5625_s2 + $0x28] sm:$0xff] }
 0x411   :  { %3808 = vtanh.f32 %v915_v27  ;;  %v4816_v27 = vld [vmem:[%s5625_s2 + $0x20] sm:$0xff] }
 0x412   :  { %3810 = vtanh.f32 %v914_v25  ;;  %v4802_v25 = vld [vmem:[%s5625_s2 + $0x30] sm:$0xff] }
 0x41e   :  { %v3809_v28 = vpop.eup %3808 }
 0x41f   :  { %v917_v29 = vmul.f32 0.5, %v3809_v28  ;;  %v3811_v58 = vpop.eup %3810  ;;  %v4823_v28 = vld [vmem:[%s5625_s2 + $0x18] sm:$0xff] }
 0x421   :  { %v918_v4 = vadd.f32 0.5, %v917_v29  ;;  %v4830_v29 = vld [vmem:[%s5625_s2 + $0x10] sm:$0xff] }
 0x423   :  { %v920_v10 = vsel %vm136_vm2, %v918_v4, %v3811_v58  ;;  %v4837_v4 = vld [vmem:[%s5625_s2 + $0x8] sm:$0xff]  ;;  %v4844_v58 = vld [vmem:[%s5625_s2] sm:$0xff] }
 0x424   :  { %925 = vrot.lane.b32.xlu1 %v920_v10, %s4021_s22  ;;  %921 = vrot.lane.b32.xlu0 %v920_v10, %s4020_s18 }
 0x428   :  { %923 = vrot.lane.b32.xlu0 %v920_v10, %s4019_s17 }
 0x476   :  { %v768_v59 = vpop.permute.xlu0 %767  ;;  %v764_v0 = vpop.permute.xlu1 %763 }
 0x477   :  { %v770_v54 = vmul.f32 %v768_v59, %v762_v22  ;;  %v769_v50 = vmul.f32 %v764_v0, %v4571_v62  ;;  %v4781_v22 = vld [vmem:[%s5625_s2 + $0x48] sm:$0xff]  ;;  %v4854_v59 = vld [vmem:[#allocation4 + $0x70] sm:$0xff]  ;;  %v4858_v0 = vld [vmem:[#allocation4 + $0x68] sm:$0xff] }
 0x479   :  { %v4693_v55 = vadd.f32 %v770_v54, %v769_v50  ;;  %v5648_v54 = vld [vmem:[#allocation9_spill] sm:$0xff] }
 0x47a   :  { %v766_v52 = vpop.permute.xlu1 %765 }
 0x47b   :  { %3812 = vtanh.f32 %v4693_v55 }
 0x488   :  { %v3813_v60 = vpop.eup %3812 }
 0x489   :  { %v773_v49 = vmul.f32 %v3813_v60, %v766_v52 }
 0x48b   :  { %3137 = vmatmul.mubr.f32.vlgmr.msra.gmra.mxu1 %v773_v49 }
 0x48c   :  { %3175 = vmatpush3.msra.mxu1 %v4338_v43  ;;  %3206 = vmatprep.mubr.msk.f32.mxu1 %vm4018_vm0, %v5646_v47 }
 0x48d   :  { %3176 = vmatprep.subr.mxu1 %v5646_v47 }
 0x48e   :  { %3177 = vmatpush3.msra.mxu1 %v4348_v44 }
 0x48f   :  { %3178 = vmatprep.subr.mxu1 %v5646_v47 }
 0x490   :  { %3179 = vmatpush3.msra.mxu1 %v4357_v45 }
 0x491   :  { %3180 = vmatprep.subr.mxu1 %v5646_v47 }
 0x492   :  { %3181 = vmatpush3.msra.mxu1 %v4365_v46 }
 0x493   :  { %3182 = vmatprep.subr.mxu1 %v5646_v47 }
 0x494   :  { %3183 = vmatpush3.msra.mxu1 %v4391_v6 }
 0x495   :  { %3184 = vmatprep.subr.mxu1 %v5646_v47 }
 0x496   :  { %3185 = vmatpush3.msra.mxu1 %v4397_v8  ;;  %v926_v43 = vpop.permute.xlu1 %925  ;;  %v922_v62 = vpop.permute.xlu0 %921 }
 0x497   :  { %3186 = vmatprep.subr.mxu1 %v5646_v47  ;;  %v928_v5 = vmul.f32 %v926_v43, %v920_v10  ;;  %v927_v7 = vmul.f32 %v922_v62, %v4590_v57  ;;  %v4848_v10 = vld [vmem:[#allocation4 + $0x78] sm:$0xff] }
 0x498   :  { %3187 = vmatpush3.msra.mxu1 %v4405_v12 }
 0x499   :  { %v4712_v9 = vadd.f32 %v928_v5, %v927_v7  ;;  %3188 = vmatprep.subr.mxu1 %v5646_v47 }
 0x49a   :  { %3189 = vmatpush3.msra.mxu1 %v4414_v16  ;;  %v924_v11 = vpop.permute.xlu0 %923 }
 0x49b   :  { %3814 = vtanh.f32 %v4712_v9  ;;  %3190 = vmatprep.subr.mxu1 %v5646_v47 }
 0x49c   :  { %3191 = vmatpush3.msra.mxu1 %v4421_v48 }
 0x49d   :  { %3192 = vmatprep.subr.mxu1 %v5646_v47 }
 0x49e   :  { %3193 = vmatpush3.msra.mxu1 %v4427_v51 }
 0x49f   :  { %3194 = vmatprep.subr.mxu1 %v5646_v47 }
 0x4a0   :  { %3195 = vmatpush3.msra.mxu1 %v4434_v53 }
 0x4a1   :  { %3196 = vmatprep.subr.mxu1 %v5646_v47 }
 0x4a2   :  { %3197 = vmatpush3.msra.mxu1 %v4444_v61 }
 0x4a3   :  { %3198 = vmatprep.subr.mxu1 %v5646_v47 }
 0x4a4   :  { %3199 = vmatpush3.msra.mxu1 %v4452_v63 }
 0x4a5   :  { %3200 = vmatprep.subr.mxu1 %v5646_v47 }
 0x4a6   :  { %3201 = vmatpush3.msra.mxu1 %v4459_v1 }
 0x4a7   :  { %3202 = vmatprep.subr.mxu1 %v5646_v47 }
 0x4a8   :  { %v3815_v57 = vpop.eup %3814  ;;  %3203 = vmatpush3.msra.mxu1 %v4467_v2 }
 0x4a9   :  { %v931_v13 = vmul.f32 %v3815_v57, %v924_v11  ;;  %3204 = vmatprep.subr.mxu1 %v5646_v47 }
 0x4aa   :  { %3205 = vmatpush3.msra.mxu1 %v4474_v3 }
 0x4ab   :  { %3244 = vmatprep.subr.mxu1 %v5646_v47  ;;  %3207 = vmatmul.mubr.f32.vlgmr.msra.gmra.mxu1 %v931_v13 }
 0x4ac   :  { %3245 = vmatpush3.msra.mxu1 %v4737_v15  ;;  %3276 = vmatprep.mubr.msk.f32.mxu1 %vm4018_vm0, %v5646_v47 }
 0x4ad   :  { %3246 = vmatprep.subr.mxu1 %v5646_v47 }
 0x4ae   :  { %3247 = vmatpush3.msra.mxu1 %v4746_v17 }
 0x4af   :  { %3248 = vmatprep.subr.mxu1 %v5646_v47 }
 0x4b0   :  { %3249 = vmatpush3.msra.mxu1 %v4753_v18 }
 0x4b1   :  { %3250 = vmatprep.subr.mxu1 %v5646_v47 }
 0x4b2   :  { %3251 = vmatpush3.msra.mxu1 %v4760_v19 }
 0x4b3   :  { %3252 = vmatprep.subr.mxu1 %v5646_v47 }
 0x4b4   :  { %3253 = vmatpush3.msra.mxu1 %v4767_v20 }
 0x4b5   :  { %3254 = vmatprep.subr.mxu1 %v5646_v47 }
 0x4b6   :  { %3255 = vmatpush3.msra.mxu1 %v4774_v21 }
 0x4b7   :  { %3256 = vmatprep.subr.mxu1 %v5646_v47 }
 0x4b8   :  { %3257 = vmatpush3.msra.mxu1 %v4781_v22 }
 0x4b9   :  { %3258 = vmatprep.subr.mxu1 %v5646_v47 }
 0x4ba   :  { %3259 = vmatpush3.msra.mxu1 %v4788_v23 }
 0x4bb   :  { %3260 = vmatprep.subr.mxu1 %v5646_v47 }
 0x4bc   :  { %3261 = vmatpush3.msra.mxu1 %v4795_v24 }
 0x4bd   :  { %3262 = vmatprep.subr.mxu1 %v5646_v47 }
 0x4be   :  { %3263 = vmatpush3.msra.mxu1 %v4802_v25 }
 0x4bf   :  { %3264 = vmatprep.subr.mxu1 %v5646_v47 }
 0x4c0   :  { %3265 = vmatpush3.msra.mxu1 %v4809_v26 }
 0x4c1   :  { %3266 = vmatprep.subr.mxu1 %v5646_v47 }
 0x4c2   :  { %3267 = vmatpush3.msra.mxu1 %v4816_v27 }
 0x4c3   :  { %3268 = vmatprep.subr.mxu1 %v5646_v47 }
 0x4c4   :  { %3269 = vmatpush3.msra.mxu1 %v4823_v28 }
 0x4c5   :  { %3270 = vmatprep.subr.mxu1 %v5646_v47 }
 0x4c6   :  { %3271 = vmatpush3.msra.mxu1 %v4830_v29 }
 0x4c7   :  { %3272 = vmatprep.subr.mxu1 %v5646_v47 }
 0x4c8   :  { %3273 = vmatpush3.msra.mxu1 %v4837_v4 }
 0x4c9   :  { %3274 = vmatprep.subr.mxu1 %v5646_v47 }
 0x4ca   :  { %3275 = vmatpush3.msra.mxu1 %v4844_v58 }
 0x4cb   :  { %3277 = vmatmul.mubr.f32.vlgmr.msra.gmra.mxu1 %v931_v13  ;;  %3314 = vmatprep.subr.mxu1 %v5646_v47 }
 0x4cc   :  { %3315 = vmatpush3.msra.mxu1 %v4848_v10  ;;  %3346 = vmatprep.mubr.msk.f32.mxu1 %vm4018_vm0, %v5646_v47 }
 0x4cd   :  { %3316 = vmatprep.subr.mxu1 %v5646_v47 }
 0x4ce   :  { %3317 = vmatpush3.msra.mxu1 %v4854_v59 }
 0x4cf   :  { %3318 = vmatprep.subr.mxu1 %v5646_v47 }
 0x4d0   :  { %3319 = vmatpush3.msra.mxu1 %v4858_v0 }
 0x4d1   :  { %3320 = vmatprep.subr.mxu1 %v5646_v47 }
 0x4d2   :  { %3321 = vmatpush3.msra.mxu1 %v4257_v30 }
 0x4d3   :  { %3322 = vmatprep.subr.mxu1 %v5646_v47 }
 0x4d4   :  { %3323 = vmatpush3.msra.mxu1 %v4263_v31 }
 0x4d5   :  { %3324 = vmatprep.subr.mxu1 %v5646_v47 }
 0x4d6   :  { %3325 = vmatpush3.msra.mxu1 %v4269_v32 }
 0x4d7   :  { %3326 = vmatprep.subr.mxu1 %v5646_v47 }
 0x4d8   :  { %3327 = vmatpush3.msra.mxu1 %v4275_v33 }
 0x4d9   :  { %3328 = vmatprep.subr.mxu1 %v5646_v47 }
 0x4da   :  { %3329 = vmatpush3.msra.mxu1 %v4281_v34 }
 0x4db   :  { %3330 = vmatprep.subr.mxu1 %v5646_v47 }
 0x4dc   :  { %3331 = vmatpush3.msra.mxu1 %v4287_v35 }
 0x4dd   :  { %3332 = vmatprep.subr.mxu1 %v5646_v47 }
 0x4de   :  { %3333 = vmatpush3.msra.mxu1 %v4293_v36 }
 0x4df   :  { %3334 = vmatprep.subr.mxu1 %v5646_v47 }
 0x4e0   :  { %3335 = vmatpush3.msra.mxu1 %v4299_v37 }
 0x4e1   :  { %3336 = vmatprep.subr.mxu1 %v5646_v47 }
 0x4e2   :  { %3337 = vmatpush3.msra.mxu1 %v4305_v38 }
 0x4e3   :  { %3338 = vmatprep.subr.mxu1 %v5646_v47 }
 0x4e4   :  { %3339 = vmatpush3.msra.mxu1 %v4311_v39 }
 0x4e5   :  { %3340 = vmatprep.subr.mxu1 %v5646_v47 }
 0x4e6   :  { %3341 = vmatpush3.msra.mxu1 %v4317_v40 }
 0x4e7   :  { %3342 = vmatprep.subr.mxu1 %v5646_v47 }
 0x4e8   :  { %3343 = vmatpush3.msra.mxu1 %v4323_v41 }
 0x4e9   :  { %3344 = vmatprep.subr.mxu1 %v5646_v47 }
 0x4ea   :  { %3345 = vmatpush3.msra.mxu1 %v4329_v42 }
 0x4eb   :  { %3384 = vmatprep.subr.mxu1 %v5646_v47 }
 0x54b   :  { %v840_v30 = vpop.f32.mrf.mxu1 }
 0x54c   :  { %v841_v32 = vadd.f32 %v4556_v56, %v840_v30 }
 0x54d   :  { %v3138_v31 = vpop.f32.mrf.mxu1 }
 0x56b   :  { %v998_v33 = vpop.f32.mrf.mxu1 }
 0x56c   :  { %v999_v34 = vadd.f32 %v998_v33, %v841_v32 }
 0x56d   :  { %v3208_v35 = vpop.f32.mrf.mxu1 }
 0x56e   :  { %v1002_v36 = vmul.f32 0.5, %v999_v34  ;;  %v4907_v35 = vld [vmem:[%s5627_s4 + $0x78] sm:$0xff] }
 0x570   :  { %3816 = vtanh.f32 %v1002_v36 }
 0x571   :  { %3818 = vtanh.f32 %v999_v34 }
 0x57d   :  { %v3817_v37 = vpop.eup %3816 }
 0x57e   :  { %v1004_v38 = vmul.f32 0.5, %v3817_v37  ;;  %v3819_v40 = vpop.eup %3818 }
 0x580   :  { %v1005_v39 = vadd.f32 0.5, %v1004_v38  ;;  %v5033_v38 = vld [vmem:[#allocation4 + $0x8] sm:$0xff] }
 0x582   :  { %v1007_v41 = vsel %vm136_vm2, %v1005_v39, %v3819_v40  ;;  %v5037_v39 = vld [vmem:[#allocation4] sm:$0xff] }
 0x583   :  { %1012 = vrot.lane.b32.xlu0 %v1007_v41, %s4021_s22  ;;  %1008 = vrot.lane.b32.xlu1 %v1007_v41, %s4020_s18  ;;  %5649 = vst [vmem:[#allocation10_spill] sm:$0xff] %v5037_v39 }
 0x587   :  { %1010 = vrot.lane.b32.xlu1 %v1007_v41, %s4019_s17 }
 0x58b   :  { %v1155_v42 = vpop.f32.mrf.mxu1 }
 0x58c   :  { %v1159_v50 = vadd.f32 %v1155_v42, %v5648_v54 }
 0x58d   :  { %v3278_v60 = vpop.f32.mrf.mxu1 }
 0x58e   :  { %v1160_v52 = vmul.f32 0.5, %v1159_v50 }
 0x590   :  { %3820 = vtanh.f32 %v1160_v52 }
 0x591   :  { %3822 = vtanh.f32 %v1159_v50 }
 0x59d   :  { %v3821_v49 = vpop.eup %3820 }
 0x59e   :  { %v1162_v43 = vmul.f32 0.5, %v3821_v49  ;;  %v3823_v5 = vpop.eup %3822 }
 0x5a0   :  { %v1163_v62 = vadd.f32 0.5, %v1162_v43 }
 0x5a2   :  { %v1165_v7 = vsel %vm136_vm2, %v1163_v62, %v3823_v5 }
 0x5a3   :  { %1170 = vrot.lane.b32.xlu1 %v1165_v7, %s4021_s22  ;;  %1166 = vrot.lane.b32.xlu0 %v1165_v7, %s4020_s18 }
 0x5a7   :  { %1168 = vrot.lane.b32.xlu0 %v1165_v7, %s4019_s17 }
 0x5f5   :  { %v1013_v57 = vpop.permute.xlu0 %1012  ;;  %v1009_v11 = vpop.permute.xlu1 %1008 }
 0x5f6   :  { %v1015_v13 = vmul.f32 %v1013_v57, %v1007_v41  ;;  %v1014_v30 = vmul.f32 %v1009_v11, %v4693_v55  ;;  %v5650_v57 = vld [vmem:[#allocation12_spill] sm:$0xff] }
 0x5f8   :  { %v4901_v31 = vadd.f32 %v1015_v13, %v1014_v30 }
 0x5f9   :  { %v1011_v33 = vpop.permute.xlu1 %1010 }
 0x5fa   :  { %3824 = vtanh.f32 %v4901_v31 }
 0x607   :  { %v3825_v32 = vpop.eup %3824 }
 0x608   :  { %v1018_v34 = vmul.f32 %v3825_v32, %v1011_v33 }
 0x60a   :  { %3242 = vmatmul.mubr.f32.vlgmr.msra.gmra.mxu0 %v1018_v34 }
 0x60b   :  { %3280 = vmatpush3.msra.mxu0 %v4907_v35  ;;  %3311 = vmatprep.mubr.msk.f32.mxu0 %vm4018_vm0, %v5646_v47 }
 0x60c   :  { %3281 = vmatprep.subr.mxu0 %v5646_v47 }
 0x60d   :  { %3282 = vmatpush3.msra.mxu0 %v4348_v44 }
 0x60e   :  { %3283 = vmatprep.subr.mxu0 %v5646_v47 }
 0x60f   :  { %3284 = vmatpush3.msra.mxu0 %v4357_v45 }
 0x610   :  { %3285 = vmatprep.subr.mxu0 %v5646_v47 }
 0x611   :  { %3286 = vmatpush3.msra.mxu0 %v4365_v46 }
 0x612   :  { %3287 = vmatprep.subr.mxu0 %v5646_v47 }
 0x613   :  { %3288 = vmatpush3.msra.mxu0 %v4391_v6 }
 0x614   :  { %3289 = vmatprep.subr.mxu0 %v5646_v47 }
 0x615   :  { %3290 = vmatpush3.msra.mxu0 %v4397_v8  ;;  %v1171_v55 = vpop.permute.xlu1 %1170  ;;  %v1167_v36 = vpop.permute.xlu0 %1166 }
 0x616   :  { %v1173_v37 = vmul.f32 %v1171_v55, %v1165_v7  ;;  %v1172_v44 = vmul.f32 %v1167_v36, %v4712_v9  ;;  %3291 = vmatprep.subr.mxu0 %v5646_v47  ;;  %v5029_v9 = vld [vmem:[#allocation4 + $0x10] sm:$0xff] }
 0x617   :  { %3292 = vmatpush3.msra.mxu0 %v4405_v12  ;;  %v4989_v12 = vld [vmem:[#allocation4 + $0x60] sm:$0xff] }
 0x618   :  { %v4925_v45 = vadd.f32 %v1173_v37, %v1172_v44  ;;  %3293 = vmatprep.subr.mxu0 %v5646_v47 }
 0x619   :  { %3294 = vmatpush3.msra.mxu0 %v4414_v16  ;;  %v1169_v6 = vpop.permute.xlu0 %1168  ;;  %v4993_v16 = vld [vmem:[#allocation4 + $0x58] sm:$0xff] }
 0x61a   :  { %3826 = vtanh.f32 %v4925_v45  ;;  %3295 = vmatprep.subr.mxu0 %v5646_v47 }
 0x61b   :  { %3296 = vmatpush3.msra.mxu0 %v4421_v48  ;;  %v4997_v48 = vld [vmem:[#allocation4 + $0x50] sm:$0xff] }
 0x61c   :  { %3297 = vmatprep.subr.mxu0 %v5646_v47 }
 0x61d   :  { %3298 = vmatpush3.msra.mxu0 %v4427_v51  ;;  %v5001_v51 = vld [vmem:[#allocation4 + $0x48] sm:$0xff] }
 0x61e   :  { %3299 = vmatprep.subr.mxu0 %v5646_v47 }
 0x61f   :  { %3300 = vmatpush3.msra.mxu0 %v4434_v53  ;;  %v5005_v53 = vld [vmem:[#allocation4 + $0x40] sm:$0xff] }
 0x620   :  { %3301 = vmatprep.subr.mxu0 %v5646_v47 }
 0x621   :  { %3302 = vmatpush3.msra.mxu0 %v4444_v61  ;;  %v5009_v61 = vld [vmem:[#allocation4 + $0x38] sm:$0xff] }
 0x622   :  { %3303 = vmatprep.subr.mxu0 %v5646_v47 }
 0x623   :  { %3304 = vmatpush3.msra.mxu0 %v4452_v63  ;;  %v5013_v63 = vld [vmem:[#allocation4 + $0x30] sm:$0xff] }
 0x624   :  { %3305 = vmatprep.subr.mxu0 %v5646_v47 }
 0x625   :  { %3306 = vmatpush3.msra.mxu0 %v4459_v1  ;;  %v5017_v1 = vld [vmem:[#allocation4 + $0x28] sm:$0xff] }
 0x626   :  { %3307 = vmatprep.subr.mxu0 %v5646_v47 }
 0x627   :  { %v3827_v46 = vpop.eup %3826  ;;  %3308 = vmatpush3.msra.mxu0 %v4467_v2  ;;  %v5021_v2 = vld [vmem:[#allocation4 + $0x20] sm:$0xff] }
 0x628   :  { %v1176_v8 = vmul.f32 %v3827_v46, %v1169_v6  ;;  %3309 = vmatprep.subr.mxu0 %v5646_v47 }
 0x629   :  { %3310 = vmatpush3.msra.mxu0 %v4474_v3  ;;  %v5025_v3 = vld [vmem:[#allocation4 + $0x18] sm:$0xff] }
 0x62a   :  { %3312 = vmatmul.mubr.f32.vlgmr.msra.gmra.mxu0 %v1176_v8  ;;  %3349 = vmatprep.subr.mxu0 %v5646_v47 }
 0x62b   :  { %3350 = vmatpush3.msra.mxu0 %v4737_v15  ;;  %3381 = vmatprep.mubr.msk.f32.mxu0 %vm4018_vm0, %v5646_v47 }
 0x62c   :  { %3351 = vmatprep.subr.mxu0 %v5646_v47 }
 0x62d   :  { %3352 = vmatpush3.msra.mxu0 %v4746_v17 }
 0x62e   :  { %3353 = vmatprep.subr.mxu0 %v5646_v47 }
 0x62f   :  { %3354 = vmatpush3.msra.mxu0 %v4753_v18 }
 0x630   :  { %3355 = vmatprep.subr.mxu0 %v5646_v47 }
 0x631   :  { %3356 = vmatpush3.msra.mxu0 %v4760_v19 }
 0x632   :  { %3357 = vmatprep.subr.mxu0 %v5646_v47 }
 0x633   :  { %3358 = vmatpush3.msra.mxu0 %v4767_v20 }
 0x634   :  { %3359 = vmatprep.subr.mxu0 %v5646_v47 }
 0x635   :  { %3360 = vmatpush3.msra.mxu0 %v4774_v21 }
 0x636   :  { %3361 = vmatprep.subr.mxu0 %v5646_v47 }
 0x637   :  { %3362 = vmatpush3.msra.mxu0 %v4781_v22 }
 0x638   :  { %3363 = vmatprep.subr.mxu0 %v5646_v47 }
 0x639   :  { %3364 = vmatpush3.msra.mxu0 %v4788_v23 }
 0x63a   :  { %3365 = vmatprep.subr.mxu0 %v5646_v47 }
 0x63b   :  { %3366 = vmatpush3.msra.mxu0 %v4795_v24 }
 0x63c   :  { %3367 = vmatprep.subr.mxu0 %v5646_v47 }
 0x63d   :  { %3368 = vmatpush3.msra.mxu0 %v4802_v25 }
 0x63e   :  { %3369 = vmatprep.subr.mxu0 %v5646_v47 }
 0x63f   :  { %3370 = vmatpush3.msra.mxu0 %v4809_v26 }
 0x640   :  { %3371 = vmatprep.subr.mxu0 %v5646_v47 }
 0x641   :  { %3372 = vmatpush3.msra.mxu0 %v4816_v27 }
 0x642   :  { %3373 = vmatprep.subr.mxu0 %v5646_v47 }
 0x643   :  { %3374 = vmatpush3.msra.mxu0 %v4823_v28 }
 0x644   :  { %3375 = vmatprep.subr.mxu0 %v5646_v47 }
 0x645   :  { %3376 = vmatpush3.msra.mxu0 %v4830_v29 }
 0x646   :  { %3377 = vmatprep.subr.mxu0 %v5646_v47 }
 0x647   :  { %3378 = vmatpush3.msra.mxu0 %v4837_v4 }
 0x648   :  { %3379 = vmatprep.subr.mxu0 %v5646_v47 }
 0x649   :  { %3380 = vmatpush3.msra.mxu0 %v4844_v58 }
 0x64a   :  { %3382 = vmatmul.mubr.f32.vlgmr.msra.gmra.mxu0 %v1176_v8  ;;  %3419 = vmatprep.subr.mxu0 %v5646_v47 }
 0x64b   :  { %3420 = vmatpush3.msra.mxu0 %v4848_v10  ;;  %3451 = vmatprep.mubr.msk.f32.mxu0 %vm4018_vm0, %v5646_v47 }
 0x64c   :  { %3421 = vmatprep.subr.mxu0 %v5646_v47 }
 0x64d   :  { %3422 = vmatpush3.msra.mxu0 %v4854_v59 }
 0x64e   :  { %3423 = vmatprep.subr.mxu0 %v5646_v47 }
 0x64f   :  { %3424 = vmatpush3.msra.mxu0 %v4858_v0 }
 0x650   :  { %3425 = vmatprep.subr.mxu0 %v5646_v47 }
 0x651   :  { %3426 = vmatpush3.msra.mxu0 %v4989_v12 }
 0x652   :  { %3427 = vmatprep.subr.mxu0 %v5646_v47 }
 0x653   :  { %3428 = vmatpush3.msra.mxu0 %v4993_v16 }
 0x654   :  { %3429 = vmatprep.subr.mxu0 %v5646_v47 }
 0x655   :  { %3430 = vmatpush3.msra.mxu0 %v4997_v48 }
 0x656   :  { %3431 = vmatprep.subr.mxu0 %v5646_v47 }
 0x657   :  { %3432 = vmatpush3.msra.mxu0 %v5001_v51 }
 0x658   :  { %3433 = vmatprep.subr.mxu0 %v5646_v47 }
 0x659   :  { %3434 = vmatpush3.msra.mxu0 %v5005_v53 }
 0x65a   :  { %3435 = vmatprep.subr.mxu0 %v5646_v47 }
 0x65b   :  { %3436 = vmatpush3.msra.mxu0 %v5009_v61 }
 0x65c   :  { %3437 = vmatprep.subr.mxu0 %v5646_v47 }
 0x65d   :  { %3438 = vmatpush3.msra.mxu0 %v5013_v63 }
 0x65e   :  { %3439 = vmatprep.subr.mxu0 %v5646_v47 }
 0x65f   :  { %3440 = vmatpush3.msra.mxu0 %v5017_v1 }
 0x660   :  { %3441 = vmatprep.subr.mxu0 %v5646_v47 }
 0x661   :  { %3442 = vmatpush3.msra.mxu0 %v5021_v2 }
 0x662   :  { %3443 = vmatprep.subr.mxu0 %v5646_v47 }
 0x663   :  { %3444 = vmatpush3.msra.mxu0 %v5025_v3 }
 0x664   :  { %3445 = vmatprep.subr.mxu0 %v5646_v47 }
 0x665   :  { %3446 = vmatpush3.msra.mxu0 %v5029_v9 }
 0x666   :  { %3447 = vmatprep.subr.mxu0 %v5646_v47 }
 0x667   :  { %3448 = vmatpush3.msra.mxu0 %v5033_v38 }
 0x668   :  { %3449 = vmatprep.subr.mxu0 %v5646_v47 }
 0x669   :  { %3450 = vmatpush3.msra.mxu0 %v5037_v39 }
 0x66a   :  { %3489 = vmatprep.subr.mxu0 %v5646_v47 }
 0x6ca   :  { %v1085_v40 = vpop.f32.mrf.mxu0 }
 0x6cb   :  { %v1086_v42 = vadd.f32 %v4556_v56, %v1085_v40 }
 0x6cc   :  { %v3243_v41 = vpop.f32.mrf.mxu0 }
 0x6ea   :  { %v1243_v54 = vpop.f32.mrf.mxu0 }
 0x6eb   :  { %v1244_v50 = vadd.f32 %v1243_v54, %v1086_v42  ;;  %v5064_v54 = vld [vmem:[%s5627_s4 + $0x70] sm:$0xff] }
 0x6ec   :  { %v3313_v60 = vpop.f32.mrf.mxu0 }
 0x6ed   :  { %v1247_v52 = vmul.f32 0.5, %v1244_v50  ;;  %v5085_v60 = vld [vmem:[%s5627_s4 + $0x58] sm:$0xff] }
 0x6ef   :  { %3828 = vtanh.f32 %v1247_v52  ;;  %v5092_v52 = vld [vmem:[%s5627_s4 + $0x50] sm:$0xff] }
 0x6f0   :  { %3830 = vtanh.f32 %v1244_v50  ;;  %v5078_v50 = vld [vmem:[%s5627_s4 + $0x60] sm:$0xff] }
 0x6fc   :  { %v3829_v49 = vpop.eup %3828 }
 0x6fd   :  { %v1249_v43 = vmul.f32 0.5, %v3829_v49  ;;  %v3831_v5 = vpop.eup %3830 }
 0x6ff   :  { %v1250_v62 = vadd.f32 0.5, %v1249_v43 }
 0x701   :  { %v1252_v7 = vsel %vm136_vm2, %v1250_v62, %v3831_v5 }
 0x702   :  { %1257 = vrot.lane.b32.xlu0 %v1252_v7, %s4021_s22  ;;  %1253 = vrot.lane.b32.xlu1 %v1252_v7, %s4020_s18 }
 0x706   :  { %1255 = vrot.lane.b32.xlu1 %v1252_v7, %s4019_s17 }
 0x70a   :  { %v1400_v56 = vpop.f32.mrf.mxu0 }
 0x70b   :  { %v1404_v11 = vadd.f32 %v1400_v56, %v5650_v57  ;;  %v5109_v57 = vld [vmem:[%s5627_s4 + $0x40] sm:$0xff] }
 0x70c   :  { %v3383_v13 = vpop.f32.mrf.mxu0 }
 0x70d   :  { %v1405_v30 = vmul.f32 0.5, %v1404_v11  ;;  %v5131_v13 = vld [vmem:[%s5627_s4 + $0x28] sm:$0xff] }
 0x70f   :  { %3832 = vtanh.f32 %v1405_v30  ;;  %v5138_v30 = vld [vmem:[%s5627_s4 + $0x20] sm:$0xff] }
 0x710   :  { %3834 = vtanh.f32 %v1404_v11  ;;  %v5124_v11 = vld [vmem:[%s5627_s4 + $0x30] sm:$0xff] }
 0x71c   :  { %v3833_v32 = vpop.eup %3832 }
 0x71d   :  { %v1407_v33 = vmul.f32 0.5, %v3833_v32  ;;  %v3835_v55 = vpop.eup %3834  ;;  %v5145_v32 = vld [vmem:[%s5627_s4 + $0x18] sm:$0xff] }
 0x71f   :  { %v1408_v34 = vadd.f32 0.5, %v1407_v33  ;;  %v5152_v33 = vld [vmem:[%s5627_s4 + $0x10] sm:$0xff] }
 0x721   :  { %v1410_v36 = vsel %vm136_vm2, %v1408_v34, %v3835_v55 }
 0x722   :  { %1415 = vrot.lane.b32.xlu1 %v1410_v36, %s4021_s22  ;;  %1411 = vrot.lane.b32.xlu0 %v1410_v36, %s4020_s18 }
 0x726   :  { %1413 = vrot.lane.b32.xlu0 %v1410_v36, %s4019_s17 }
 0x774   :  { %v1258_v37 = vpop.permute.xlu0 %1257  ;;  %v1254_v44 = vpop.permute.xlu1 %1253 }
 0x775   :  { %v1260_v46 = vmul.f32 %v1258_v37, %v1252_v7  ;;  %v1259_v6 = vmul.f32 %v1254_v44, %v4901_v31  ;;  %v5071_v31 = vld [vmem:[%s5627_s4 + $0x68] sm:$0xff]  ;;  %v5166_v44 = vld [vmem:[%s5627_s4] sm:$0xff] }
 0x776   :  { %v5100_v7 = vld [vmem:[%s5627_s4 + $0x48] sm:$0xff] }
 0x777   :  { %v5054_v8 = vadd.f32 %v1260_v46, %v1259_v6 }
 0x778   :  { %v1256_v41 = vpop.permute.xlu1 %1255 }
 0x779   :  { %3836 = vtanh.f32 %v5054_v8 }
 0x786   :  { %v3837_v40 = vpop.eup %3836 }
 0x787   :  { %v1263_v42 = vmul.f32 %v3837_v40, %v1256_v41  ;;  %v5241_v40 = vld [vmem:[%s5629_s6] ss:$0 sm:$0xff] }
 0x788   :  { %5651 = vst [vmem:[#allocation9_spill] sm:$0xff] %v5241_v40 }
 0x789   :  { %3347 = vmatmul.mubr.f32.vlgmr.msra.gmra.mxu1 %v1263_v42 }
 0x78a   :  { %3385 = vmatpush3.msra.mxu1 %v4907_v35  ;;  %3416 = vmatprep.mubr.msk.f32.mxu1 %vm4018_vm0, %v5646_v47 }
 0x78b   :  { %3386 = vmatprep.subr.mxu1 %v5646_v47 }
 0x78c   :  { %3387 = vmatpush3.msra.mxu1 %v5064_v54 }
 0x78d   :  { %3388 = vmatprep.subr.mxu1 %v5646_v47 }
 0x78e   :  { %3389 = vmatpush3.msra.mxu1 %v5071_v31 }
 0x78f   :  { %3390 = vmatprep.subr.mxu1 %v5646_v47 }
 0x790   :  { %3391 = vmatpush3.msra.mxu1 %v5078_v50 }
 0x791   :  { %3392 = vmatprep.subr.mxu1 %v5646_v47 }
 0x792   :  { %3393 = vmatpush3.msra.mxu1 %v5085_v60 }
 0x793   :  { %3394 = vmatprep.subr.mxu1 %v5646_v47 }
 0x794   :  { %3395 = vmatpush3.msra.mxu1 %v5092_v52  ;;  %v1416_v49 = vpop.permute.xlu1 %1415  ;;  %v1412_v43 = vpop.permute.xlu0 %1411 }
 0x795   :  { %3396 = vmatprep.subr.mxu1 %v5646_v47  ;;  %v1418_v62 = vmul.f32 %v1416_v49, %v1410_v36  ;;  %v1417_v5 = vmul.f32 %v1412_v43, %v4925_v45  ;;  %v5117_v45 = vld [vmem:[%s5627_s4 + $0x38] sm:$0xff]  ;;  %v5159_v36 = vld [vmem:[%s5627_s4 + $0x8] sm:$0xff] }
 0x796   :  { %3397 = vmatpush3.msra.mxu1 %v5100_v7 }
 0x797   :  { %v5103_v56 = vadd.f32 %v1418_v62, %v1417_v5  ;;  %3398 = vmatprep.subr.mxu1 %v5646_v47 }
 0x798   :  { %3399 = vmatpush3.msra.mxu1 %v5109_v57  ;;  %v1414_v55 = vpop.permute.xlu0 %1413 }
 0x799   :  { %3838 = vtanh.f32 %v5103_v56  ;;  %3400 = vmatprep.subr.mxu1 %v5646_v47 }
 0x79a   :  { %3401 = vmatpush3.msra.mxu1 %v5117_v45 }
 0x79b   :  { %3402 = vmatprep.subr.mxu1 %v5646_v47 }
 0x79c   :  { %3403 = vmatpush3.msra.mxu1 %v5124_v11 }
 0x79d   :  { %3404 = vmatprep.subr.mxu1 %v5646_v47 }
 0x79e   :  { %3405 = vmatpush3.msra.mxu1 %v5131_v13 }
 0x79f   :  { %3406 = vmatprep.subr.mxu1 %v5646_v47 }
 0x7a0   :  { %3407 = vmatpush3.msra.mxu1 %v5138_v30 }
 0x7a1   :  { %3408 = vmatprep.subr.mxu1 %v5646_v47 }
 0x7a2   :  { %3409 = vmatpush3.msra.mxu1 %v5145_v32 }
 0x7a3   :  { %3410 = vmatprep.subr.mxu1 %v5646_v47 }
 0x7a4   :  { %3411 = vmatpush3.msra.mxu1 %v5152_v33 }
 0x7a5   :  { %3412 = vmatprep.subr.mxu1 %v5646_v47 }
 0x7a6   :  { %v3839_v34 = vpop.eup %3838  ;;  %3413 = vmatpush3.msra.mxu1 %v5159_v36 }
 0x7a7   :  { %v1421_v37 = vmul.f32 %v3839_v34, %v1414_v55  ;;  %3414 = vmatprep.subr.mxu1 %v5646_v47 }
 0x7a8   :  { %3415 = vmatpush3.msra.mxu1 %v5166_v44 }
 0x7a9   :  { %3454 = vmatprep.subr.mxu1 %v5646_v47  ;;  %3417 = vmatmul.mubr.f32.vlgmr.msra.gmra.mxu1 %v1421_v37 }
 0x7aa   :  { %3455 = vmatpush3.msra.mxu1 %v4737_v15  ;;  %3486 = vmatprep.mubr.msk.f32.mxu1 %vm4018_vm0, %v5646_v47 }
 0x7ab   :  { %3456 = vmatprep.subr.mxu1 %v5646_v47 }
 0x7ac   :  { %3457 = vmatpush3.msra.mxu1 %v4746_v17 }
 0x7ad   :  { %3458 = vmatprep.subr.mxu1 %v5646_v47 }
 0x7ae   :  { %3459 = vmatpush3.msra.mxu1 %v4753_v18 }
 0x7af   :  { %3460 = vmatprep.subr.mxu1 %v5646_v47 }
 0x7b0   :  { %3461 = vmatpush3.msra.mxu1 %v4760_v19 }
 0x7b1   :  { %3462 = vmatprep.subr.mxu1 %v5646_v47 }
 0x7b2   :  { %3463 = vmatpush3.msra.mxu1 %v4767_v20 }
 0x7b3   :  { %3464 = vmatprep.subr.mxu1 %v5646_v47 }
 0x7b4   :  { %3465 = vmatpush3.msra.mxu1 %v4774_v21 }
 0x7b5   :  { %3466 = vmatprep.subr.mxu1 %v5646_v47 }
 0x7b6   :  { %3467 = vmatpush3.msra.mxu1 %v4781_v22 }
 0x7b7   :  { %3468 = vmatprep.subr.mxu1 %v5646_v47 }
 0x7b8   :  { %3469 = vmatpush3.msra.mxu1 %v4788_v23 }
 0x7b9   :  { %3470 = vmatprep.subr.mxu1 %v5646_v47 }
 0x7ba   :  { %3471 = vmatpush3.msra.mxu1 %v4795_v24 }
 0x7bb   :  { %3472 = vmatprep.subr.mxu1 %v5646_v47 }
 0x7bc   :  { %3473 = vmatpush3.msra.mxu1 %v4802_v25 }
 0x7bd   :  { %3474 = vmatprep.subr.mxu1 %v5646_v47 }
 0x7be   :  { %3475 = vmatpush3.msra.mxu1 %v4809_v26 }
 0x7bf   :  { %3476 = vmatprep.subr.mxu1 %v5646_v47 }
 0x7c0   :  { %3477 = vmatpush3.msra.mxu1 %v4816_v27 }
 0x7c1   :  { %3478 = vmatprep.subr.mxu1 %v5646_v47 }
 0x7c2   :  { %3479 = vmatpush3.msra.mxu1 %v4823_v28 }
 0x7c3   :  { %3480 = vmatprep.subr.mxu1 %v5646_v47 }
 0x7c4   :  { %3481 = vmatpush3.msra.mxu1 %v4830_v29 }
 0x7c5   :  { %3482 = vmatprep.subr.mxu1 %v5646_v47 }
 0x7c6   :  { %3483 = vmatpush3.msra.mxu1 %v4837_v4 }
 0x7c7   :  { %3484 = vmatprep.subr.mxu1 %v5646_v47 }
 0x7c8   :  { %3485 = vmatpush3.msra.mxu1 %v4844_v58 }
 0x7c9   :  { %3487 = vmatmul.mubr.f32.vlgmr.msra.gmra.mxu1 %v1421_v37  ;;  %3524 = vmatprep.subr.mxu1 %v5646_v47 }
 0x7ca   :  { %3525 = vmatpush3.msra.mxu1 %v4848_v10  ;;  %3556 = vmatprep.mubr.msk.f32.mxu1 %vm4018_vm0, %v5646_v47 }
 0x7cb   :  { %3526 = vmatprep.subr.mxu1 %v5646_v47 }
 0x7cc   :  { %3527 = vmatpush3.msra.mxu1 %v4854_v59 }
 0x7cd   :  { %3528 = vmatprep.subr.mxu1 %v5646_v47 }
 0x7ce   :  { %3529 = vmatpush3.msra.mxu1 %v4858_v0 }
 0x7cf   :  { %3530 = vmatprep.subr.mxu1 %v5646_v47 }
 0x7d0   :  { %3531 = vmatpush3.msra.mxu1 %v4989_v12 }
 0x7d1   :  { %3532 = vmatprep.subr.mxu1 %v5646_v47 }
 0x7d2   :  { %3533 = vmatpush3.msra.mxu1 %v4993_v16 }
 0x7d3   :  { %3534 = vmatprep.subr.mxu1 %v5646_v47 }
 0x7d4   :  { %3535 = vmatpush3.msra.mxu1 %v4997_v48 }
 0x7d5   :  { %3536 = vmatprep.subr.mxu1 %v5646_v47 }
 0x7d6   :  { %3537 = vmatpush3.msra.mxu1 %v5001_v51 }
 0x7d7   :  { %3538 = vmatprep.subr.mxu1 %v5646_v47 }
 0x7d8   :  { %3539 = vmatpush3.msra.mxu1 %v5005_v53 }
 0x7d9   :  { %3540 = vmatprep.subr.mxu1 %v5646_v47 }
 0x7da   :  { %3541 = vmatpush3.msra.mxu1 %v5009_v61 }
 0x7db   :  { %3542 = vmatprep.subr.mxu1 %v5646_v47 }
 0x7dc   :  { %3543 = vmatpush3.msra.mxu1 %v5013_v63 }
 0x7dd   :  { %3544 = vmatprep.subr.mxu1 %v5646_v47 }
 0x7de   :  { %3545 = vmatpush3.msra.mxu1 %v5017_v1 }
 0x7df   :  { %3546 = vmatprep.subr.mxu1 %v5646_v47 }
 0x7e0   :  { %3547 = vmatpush3.msra.mxu1 %v5021_v2 }
 0x7e1   :  { %3548 = vmatprep.subr.mxu1 %v5646_v47 }
 0x7e2   :  { %3549 = vmatpush3.msra.mxu1 %v5025_v3 }
 0x7e3   :  { %3550 = vmatprep.subr.mxu1 %v5646_v47 }
 0x7e4   :  { %3551 = vmatpush3.msra.mxu1 %v5029_v9 }
 0x7e5   :  { %3552 = vmatprep.subr.mxu1 %v5646_v47 }
 0x7e6   :  { %3553 = vmatpush3.msra.mxu1 %v5033_v38 }
 0x7e7   :  { %3554 = vmatprep.subr.mxu1 %v5646_v47 }
 0x7e8   :  { %3555 = vmatpush3.msra.mxu1 %v5037_v39 }
 0x7e9   :  { %3594 = vmatprep.subr.mxu1 %v5646_v47 }
 0x849   :  { %v1330_v46 = vpop.f32.mrf.mxu1 }
 0x84a   :  { %v1331_v41 = vadd.f32 %v5241_v40, %v1330_v46  ;;  %v5652_v40 = vld [vmem:[#allocation11_spill] sm:$0xff] }
 0x84b   :  { %v3348_v6 = vpop.f32.mrf.mxu1 }
 0x869   :  { %v1488_v42 = vpop.f32.mrf.mxu1 }
 0x86a   :  { %v1489_v49 = vadd.f32 %v1488_v42, %v1331_v41 }
 0x86b   :  { %v3418_v43 = vpop.f32.mrf.mxu1 }
 0x86c   :  { %v1492_v62 = vmul.f32 0.5, %v1489_v49 }
 0x86e   :  { %3840 = vtanh.f32 %v1492_v62 }
 0x86f   :  { %3842 = vtanh.f32 %v1489_v49 }
 0x87b   :  { %v3841_v5 = vpop.eup %3840 }
 0x87c   :  { %v1494_v34 = vmul.f32 0.5, %v3841_v5  ;;  %v3843_v37 = vpop.eup %3842 }
 0x87e   :  { %v1495_v55 = vadd.f32 0.5, %v1494_v34 }
 0x880   :  { %v1497_v6 = vsel %vm136_vm2, %v1495_v55, %v3843_v37 }
 0x881   :  { %1502 = vrot.lane.b32.xlu0 %v1497_v6, %s4021_s22  ;;  %1498 = vrot.lane.b32.xlu1 %v1497_v6, %s4020_s18 }
 0x885   :  { %1500 = vrot.lane.b32.xlu1 %v1497_v6, %s4019_s17 }
 0x889   :  { %v1645_v46 = vpop.f32.mrf.mxu1 }
 0x88a   :  { %v1649_v41 = vadd.f32 %v1645_v46, %v5652_v40 }
 0x88b   :  { %v3488_v42 = vpop.f32.mrf.mxu1 }
 0x88c   :  { %v1650_v43 = vmul.f32 0.5, %v1649_v41 }
 0x88e   :  { %3844 = vtanh.f32 %v1650_v43 }
 0x88f   :  { %3846 = vtanh.f32 %v1649_v41 }
 0x89b   :  { %v3845_v49 = vpop.eup %3844 }
 0x89c   :  { %v1652_v62 = vmul.f32 0.5, %v3845_v49  ;;  %v3847_v34 = vpop.eup %3846 }
 0x89e   :  { %v1653_v5 = vadd.f32 0.5, %v1652_v62 }
 0x8a0   :  { %v1655_v55 = vsel %vm136_vm2, %v1653_v5, %v3847_v34 }
 0x8a1   :  { %1660 = vrot.lane.b32.xlu1 %v1655_v55, %s4021_s22  ;;  %1656 = vrot.lane.b32.xlu0 %v1655_v55, %s4020_s18 }
 0x8a5   :  { %1658 = vrot.lane.b32.xlu0 %v1655_v55, %s4019_s17 }
 0x8f3   :  { %v1503_v37 = vpop.permute.xlu0 %1502  ;;  %v1499_v39 = vpop.permute.xlu1 %1498 }
 0x8f4   :  { %v1505_v40 = vmul.f32 %v1503_v37, %v1497_v6  ;;  %v1504_v46 = vmul.f32 %v1499_v39, %v5054_v8 }
 0x8f6   :  { %v5256_v42 = vadd.f32 %v1505_v40, %v1504_v46 }
 0x8f7   :  { %v1501_v43 = vpop.permute.xlu1 %1500 }
 0x8f8   :  { %3848 = vtanh.f32 %v5256_v42 }
 0x905   :  { %v3849_v41 = vpop.eup %3848 }
 0x906   :  { %v1508_v49 = vmul.f32 %v3849_v41, %v1501_v43 }
 0x908   :  { %3452 = vmatmul.mubr.f32.vlgmr.msra.gmra.mxu0 %v1508_v49 }
 0x909   :  { %3490 = vmatpush3.msra.mxu0 %v4907_v35  ;;  %3521 = vmatprep.mubr.msk.f32.mxu0 %vm4018_vm0, %v5646_v47 }
 0x90a   :  { %3491 = vmatprep.subr.mxu0 %v5646_v47 }
 0x90b   :  { %3492 = vmatpush3.msra.mxu0 %v5064_v54 }
 0x90c   :  { %3493 = vmatprep.subr.mxu0 %v5646_v47 }
 0x90d   :  { %3494 = vmatpush3.msra.mxu0 %v5071_v31 }
 0x90e   :  { %3495 = vmatprep.subr.mxu0 %v5646_v47 }
 0x90f   :  { %3496 = vmatpush3.msra.mxu0 %v5078_v50 }
 0x910   :  { %3497 = vmatprep.subr.mxu0 %v5646_v47 }
 0x911   :  { %3498 = vmatpush3.msra.mxu0 %v5085_v60 }
 0x912   :  { %3499 = vmatprep.subr.mxu0 %v5646_v47 }
 0x913   :  { %3500 = vmatpush3.msra.mxu0 %v5092_v52  ;;  %v1661_v39 = vpop.permute.xlu1 %1660  ;;  %v1657_v8 = vpop.permute.xlu0 %1656 }
 0x914   :  { %v1663_v6 = vmul.f32 %v1661_v39, %v1655_v55  ;;  %v1662_v62 = vmul.f32 %v1657_v8, %v5103_v56  ;;  %3501 = vmatprep.subr.mxu0 %v5646_v47  ;;  %v3931_v8 = vld [vmem:[%s5625_s2 + $0x78] sm:$0xff] }
 0x915   :  { %3502 = vmatpush3.msra.mxu0 %v5100_v7 }
 0x916   :  { %v5275_v5 = vadd.f32 %v1663_v6, %v1662_v62  ;;  %3503 = vmatprep.subr.mxu0 %v5646_v47  ;;  %v3932_v6 = vld [vmem:[%s5625_s2 + $0x70] sm:$0xff]  ;;  %v3933_v62 = vld [vmem:[%s5625_s2 + $0x68] sm:$0xff] }
 0x917   :  { %3504 = vmatpush3.msra.mxu0 %v5109_v57  ;;  %v1659_v34 = vpop.permute.xlu0 %1658 }
 0x918   :  { %3850 = vtanh.f32 %v5275_v5  ;;  %3505 = vmatprep.subr.mxu0 %v5646_v47 }
 0x919   :  { %3506 = vmatpush3.msra.mxu0 %v5117_v45 }
 0x91a   :  { %3507 = vmatprep.subr.mxu0 %v5646_v47 }
 0x91b   :  { %3508 = vmatpush3.msra.mxu0 %v5124_v11 }
 0x91c   :  { %3509 = vmatprep.subr.mxu0 %v5646_v47 }
 0x91d   :  { %3510 = vmatpush3.msra.mxu0 %v5131_v13 }
 0x91e   :  { %3511 = vmatprep.subr.mxu0 %v5646_v47 }
 0x91f   :  { %3512 = vmatpush3.msra.mxu0 %v5138_v30 }
 0x920   :  { %3513 = vmatprep.subr.mxu0 %v5646_v47 }
 0x921   :  { %3514 = vmatpush3.msra.mxu0 %v5145_v32 }
 0x922   :  { %3515 = vmatprep.subr.mxu0 %v5646_v47 }
 0x923   :  { %3516 = vmatpush3.msra.mxu0 %v5152_v33 }
 0x924   :  { %3517 = vmatprep.subr.mxu0 %v5646_v47 }
 0x925   :  { %v3851_v56 = vpop.eup %3850  ;;  %3518 = vmatpush3.msra.mxu0 %v5159_v36 }
 0x926   :  { %v1666_v55 = vmul.f32 %v3851_v56, %v1659_v34  ;;  %3519 = vmatprep.subr.mxu0 %v5646_v47  ;;  %v3935_v56 = vld [vmem:[%s5625_s2 + $0x58] sm:$0xff]  ;;  %v3936_v34 = vld [vmem:[%s5625_s2 + $0x50] sm:$0xff] }
 0x927   :  { %3520 = vmatpush3.msra.mxu0 %v5166_v44 }
 0x928   :  { %3522 = vmatmul.mubr.f32.vlgmr.msra.gmra.mxu0 %v1666_v55  ;;  %3559 = vmatprep.subr.mxu0 %v5646_v47 }
 0x929   :  { %3560 = vmatpush3.msra.mxu0 %v4737_v15  ;;  %3591 = vmatprep.mubr.msk.f32.mxu0 %vm4018_vm0, %v5646_v47  ;;  %v5653_v15 = vld [vmem:[#allocation10_spill] sm:$0xff] }
 0x92a   :  { %3561 = vmatprep.subr.mxu0 %v5646_v47 }
 0x92b   :  { %3562 = vmatpush3.msra.mxu0 %v4746_v17 }
 0x92c   :  { %3563 = vmatprep.subr.mxu0 %v5646_v47 }
 0x92d   :  { %3564 = vmatpush3.msra.mxu0 %v4753_v18 }
 0x92e   :  { %3565 = vmatprep.subr.mxu0 %v5646_v47 }
 0x92f   :  { %3566 = vmatpush3.msra.mxu0 %v4760_v19  ;;  %v5654_v19 = vld [vmem:[#allocation9_spill] sm:$0xff] }
 0x930   :  { %3567 = vmatprep.subr.mxu0 %v5646_v47 }
 0x931   :  { %3568 = vmatpush3.msra.mxu0 %v4767_v20 }
 0x932   :  { %3569 = vmatprep.subr.mxu0 %v5646_v47 }
 0x933   :  { %3570 = vmatpush3.msra.mxu0 %v4774_v21 }
 0x934   :  { %3571 = vmatprep.subr.mxu0 %v5646_v47 }
 0x935   :  { %3572 = vmatpush3.msra.mxu0 %v4781_v22 }
 0x936   :  { %3573 = vmatprep.subr.mxu0 %v5646_v47 }
 0x937   :  { %3574 = vmatpush3.msra.mxu0 %v4788_v23 }
 0x938   :  { %3575 = vmatprep.subr.mxu0 %v5646_v47 }
 0x939   :  { %3576 = vmatpush3.msra.mxu0 %v4795_v24 }
 0x93a   :  { %3577 = vmatprep.subr.mxu0 %v5646_v47 }
 0x93b   :  { %3578 = vmatpush3.msra.mxu0 %v4802_v25 }
 0x93c   :  { %3579 = vmatprep.subr.mxu0 %v5646_v47 }
 0x93d   :  { %3580 = vmatpush3.msra.mxu0 %v4809_v26 }
 0x93e   :  { %3581 = vmatprep.subr.mxu0 %v5646_v47 }
 0x93f   :  { %3582 = vmatpush3.msra.mxu0 %v4816_v27 }
 0x940   :  { %3583 = vmatprep.subr.mxu0 %v5646_v47 }
 0x941   :  { %3584 = vmatpush3.msra.mxu0 %v4823_v28 }
 0x942   :  { %3585 = vmatprep.subr.mxu0 %v5646_v47 }
 0x943   :  { %3586 = vmatpush3.msra.mxu0 %v4830_v29 }
 0x944   :  { %3587 = vmatprep.subr.mxu0 %v5646_v47 }
 0x945   :  { %3588 = vmatpush3.msra.mxu0 %v4837_v4 }
 0x946   :  { %3589 = vmatprep.subr.mxu0 %v5646_v47 }
 0x947   :  { %3590 = vmatpush3.msra.mxu0 %v4844_v58  ;;  %v5655_v58 = vld [vmem:[#allocation14_spill] sm:$0xff] }
 0x948   :  { %3592 = vmatmul.mubr.f32.vlgmr.msra.gmra.mxu0 %v1666_v55  ;;  %3629 = vmatprep.subr.mxu0 %v5646_v47  ;;  %v3937_v55 = vld [vmem:[%s5625_s2 + $0x48] sm:$0xff] }
 0x949   :  { %3630 = vmatpush3.msra.mxu0 %v4848_v10  ;;  %3661 = vmatprep.mubr.msk.f32.mxu0 %vm4018_vm0, %v5646_v47 }
 0x94a   :  { %3631 = vmatprep.subr.mxu0 %v5646_v47 }
 0x94b   :  { %3632 = vmatpush3.msra.mxu0 %v4854_v59 }
 0x94c   :  { %3633 = vmatprep.subr.mxu0 %v5646_v47 }
 0x94d   :  { %3634 = vmatpush3.msra.mxu0 %v4858_v0 }
 0x94e   :  { %3635 = vmatprep.subr.mxu0 %v5646_v47 }
 0x94f   :  { %3636 = vmatpush3.msra.mxu0 %v4989_v12 }
 0x950   :  { %3637 = vmatprep.subr.mxu0 %v5646_v47 }
 0x951   :  { %3638 = vmatpush3.msra.mxu0 %v4993_v16 }
 0x952   :  { %3639 = vmatprep.subr.mxu0 %v5646_v47 }
 0x953   :  { %3640 = vmatpush3.msra.mxu0 %v4997_v48 }
 0x954   :  { %3641 = vmatprep.subr.mxu0 %v5646_v47 }
 0x955   :  { %3642 = vmatpush3.msra.mxu0 %v5001_v51 }
 0x956   :  { %3643 = vmatprep.subr.mxu0 %v5646_v47 }
 0x957   :  { %3644 = vmatpush3.msra.mxu0 %v5005_v53 }
 0x958   :  { %3645 = vmatprep.subr.mxu0 %v5646_v47 }
 0x959   :  { %3646 = vmatpush3.msra.mxu0 %v5009_v61 }
 0x95a   :  { %3647 = vmatprep.subr.mxu0 %v5646_v47 }
 0x95b   :  { %3648 = vmatpush3.msra.mxu0 %v5013_v63 }
 0x95c   :  { %3649 = vmatprep.subr.mxu0 %v5646_v47 }
 0x95d   :  { %3650 = vmatpush3.msra.mxu0 %v5017_v1 }
 0x95e   :  { %3651 = vmatprep.subr.mxu0 %v5646_v47 }
 0x95f   :  { %3652 = vmatpush3.msra.mxu0 %v5021_v2 }
 0x960   :  { %3653 = vmatprep.subr.mxu0 %v5646_v47 }
 0x961   :  { %3654 = vmatpush3.msra.mxu0 %v5025_v3 }
 0x962   :  { %3655 = vmatprep.subr.mxu0 %v5646_v47 }
 0x963   :  { %3656 = vmatpush3.msra.mxu0 %v5029_v9 }
 0x964   :  { %3657 = vmatprep.subr.mxu0 %v5646_v47 }
 0x965   :  { %3658 = vmatpush3.msra.mxu0 %v5033_v38 }
 0x966   :  { %3659 = vmatprep.subr.mxu0 %v5646_v47 }
 0x967   :  { %3660 = vmatpush3.msra.mxu0 %v5653_v15  ;;  %v3938_v15 = vld [vmem:[%s5625_s2 + $0x40] sm:$0xff] }
 0x968   :  { %3699 = vmatprep.subr.mxu0 %v5646_v47 }
 0x9c8   :  { %v1575_v17 = vpop.f32.mrf.mxu0 }
 0x9c9   :  { %v1576_v20 = vadd.f32 %v5654_v19, %v1575_v17  ;;  %v3939_v17 = vld [vmem:[%s5625_s2 + $0x38] sm:$0xff] }
 0x9ca   :  { %v3453_v18 = vpop.f32.mrf.mxu0 }
 0x9cb   :  { %v3940_v18 = vld [vmem:[%s5625_s2 + $0x30] sm:$0xff] }
 0x9e8   :  { %v1733_v21 = vpop.f32.mrf.mxu0 }
 0x9e9   :  { %v1734_v22 = vadd.f32 %v1733_v21, %v1576_v20  ;;  %v3941_v20 = vld [vmem:[%s5625_s2 + $0x28] sm:$0xff]  ;;  %v3942_v21 = vld [vmem:[%s5625_s2 + $0x20] sm:$0xff] }
 0x9ea   :  { %v3523_v23 = vpop.f32.mrf.mxu0 }
 0x9eb   :  { %v1737_v24 = vmul.f32 0.5, %v1734_v22  ;;  %v3944_v23 = vld [vmem:[%s5625_s2 + $0x10] sm:$0xff] }
 0x9ed   :  { %3852 = vtanh.f32 %v1737_v24  ;;  %v3945_v24 = vld [vmem:[%s5625_s2 + $0x8] sm:$0xff] }
 0x9ee   :  { %3854 = vtanh.f32 %v1734_v22  ;;  %v3943_v22 = vld [vmem:[%s5625_s2 + $0x18] sm:$0xff] }
 0x9fa   :  { %v3853_v25 = vpop.eup %3852 }
 0x9fb   :  { %v1739_v26 = vmul.f32 0.5, %v3853_v25  ;;  %v3855_v28 = vpop.eup %3854  ;;  %v3946_v25 = vld [vmem:[%s5625_s2] sm:$0xff] }
 0x9fd   :  { %v1740_v27 = vadd.f32 0.5, %v1739_v26 }
 0x9ff   :  { %v1742_v29 = vsel %vm136_vm2, %v1740_v27, %v3855_v28 }
 0xa00   :  { %1747 = vrot.lane.b32.xlu0 %v1742_v29, %s4021_s22  ;;  %1743 = vrot.lane.b32.xlu1 %v1742_v29, %s4020_s18 }
 0xa04   :  { %1745 = vrot.lane.b32.xlu1 %v1742_v29, %s4019_s17 }
 0xa08   :  { %v1890_v4 = vpop.f32.mrf.mxu0 }
 0xa09   :  { %v1894_v10 = vadd.f32 %v1890_v4, %v5655_v58 }
 0xa0a   :  { %v3593_v59 = vpop.f32.mrf.mxu0 }
 0xa0b   :  { %v1895_v0 = vmul.f32 0.5, %v1894_v10 }
 0xa0d   :  { %3856 = vtanh.f32 %v1895_v0 }
 0xa0e   :  { %3858 = vtanh.f32 %v1894_v10 }
 0xa1a   :  { %v3857_v12 = vpop.eup %3856 }
 0xa1b   :  { %v1897_v16 = vmul.f32 0.5, %v3857_v12  ;;  %v3859_v51 = vpop.eup %3858 }
 0xa1d   :  { %v1898_v48 = vadd.f32 0.5, %v1897_v16 }
 0xa1f   :  { %v1900_v53 = vsel %vm136_vm2, %v1898_v48, %v3859_v51 }
 0xa20   :  { %1905 = vrot.lane.b32.xlu1 %v1900_v53, %s4021_s22  ;;  %1901 = vrot.lane.b32.xlu0 %v1900_v53, %s4020_s18 }
 0xa24   :  { %1903 = vrot.lane.b32.xlu0 %v1900_v53, %s4019_s17 }
 0xa72   :  { %v1748_v61 = vpop.permute.xlu0 %1747  ;;  %v1744_v63 = vpop.permute.xlu1 %1743 }
 0xa73   :  { %v1750_v1 = vmul.f32 %v1748_v61, %v1742_v29  ;;  %v1749_v2 = vmul.f32 %v1744_v63, %v5256_v42 }
 0xa75   :  { %v5378_v3 = vadd.f32 %v1750_v1, %v1749_v2 }
 0xa76   :  { %v1746_v38 = vpop.permute.xlu1 %1745 }
 0xa77   :  { %3860 = vtanh.f32 %v5378_v3 }
 0xa84   :  { %v3861_v9 = vpop.eup %3860 }
 0xa85   :  { %v1753_v37 = vmul.f32 %v3861_v9, %v1746_v38 }
 0xa87   :  { %3557 = vmatmul.mubr.f32.vlgmr.msra.gmra.mxu1 %v1753_v37 }
 0xa88   :  { %3595 = vmatpush3.msra.mxu1 %v4907_v35  ;;  %3626 = vmatprep.mubr.msk.f32.mxu1 %vm4018_vm0, %v5646_v47 }
 0xa89   :  { %3596 = vmatprep.subr.mxu1 %v5646_v47 }
 0xa8a   :  { %3597 = vmatpush3.msra.mxu1 %v5064_v54 }
 0xa8b   :  { %3598 = vmatprep.subr.mxu1 %v5646_v47 }
 0xa8c   :  { %3599 = vmatpush3.msra.mxu1 %v5071_v31 }
 0xa8d   :  { %3600 = vmatprep.subr.mxu1 %v5646_v47 }
 0xa8e   :  { %3601 = vmatpush3.msra.mxu1 %v5078_v50 }
 0xa8f   :  { %3602 = vmatprep.subr.mxu1 %v5646_v47 }
 0xa90   :  { %3603 = vmatpush3.msra.mxu1 %v5085_v60 }
 0xa91   :  { %3604 = vmatprep.subr.mxu1 %v5646_v47 }
 0xa92   :  { %3605 = vmatpush3.msra.mxu1 %v5092_v52  ;;  %v1906_v35 = vpop.permute.xlu1 %1905  ;;  %v1902_v40 = vpop.permute.xlu0 %1901 }
 0xa93   :  { %3606 = vmatprep.subr.mxu1 %v5646_v47  ;;  %v1908_v46 = vmul.f32 %v1906_v35, %v1900_v53  ;;  %v1907_v42 = vmul.f32 %v1902_v40, %v5275_v5  ;;  %v3934_v5 = vld [vmem:[%s5625_s2 + $0x60] sm:$0xff] }
 0xa94   :  { %3607 = vmatpush3.msra.mxu1 %v5100_v7  ;;  %v5656_v53 = vld [vmem:[#allocation13_spill] sm:$0xff] }
 0xa95   :  { %v5397_v41 = vadd.f32 %v1908_v46, %v1907_v42  ;;  %3608 = vmatprep.subr.mxu1 %v5646_v47 }
 0xa96   :  { %3609 = vmatpush3.msra.mxu1 %v5109_v57  ;;  %v1904_v49 = vpop.permute.xlu0 %1903 }
 0xa97   :  { %3862 = vtanh.f32 %v5397_v41  ;;  %3610 = vmatprep.subr.mxu1 %v5646_v47 }
 0xa98   :  { %3611 = vmatpush3.msra.mxu1 %v5117_v45 }
 0xa99   :  { %3612 = vmatprep.subr.mxu1 %v5646_v47 }
 0xa9a   :  { %3613 = vmatpush3.msra.mxu1 %v5124_v11 }
 0xa9b   :  { %3614 = vmatprep.subr.mxu1 %v5646_v47 }
 0xa9c   :  { %3615 = vmatpush3.msra.mxu1 %v5131_v13 }
 0xa9d   :  { %3616 = vmatprep.subr.mxu1 %v5646_v47 }
 0xa9e   :  { %3617 = vmatpush3.msra.mxu1 %v5138_v30 }
 0xa9f   :  { %3618 = vmatprep.subr.mxu1 %v5646_v47 }
 0xaa0   :  { %3619 = vmatpush3.msra.mxu1 %v5145_v32 }
 0xaa1   :  { %3620 = vmatprep.subr.mxu1 %v5646_v47 }
 0xaa2   :  { %3621 = vmatpush3.msra.mxu1 %v5152_v33 }
 0xaa3   :  { %3622 = vmatprep.subr.mxu1 %v5646_v47 }
 0xaa4   :  { %v3863_v43 = vpop.eup %3862  ;;  %3623 = vmatpush3.msra.mxu1 %v5159_v36 }
 0xaa5   :  { %v1911_v39 = vmul.f32 %v3863_v43, %v1904_v49  ;;  %3624 = vmatprep.subr.mxu1 %v5646_v47 }
 0xaa6   :  { %3625 = vmatpush3.msra.mxu1 %v5166_v44 }
 0xaa7   :  { %3664 = vmatprep.subr.mxu1 %v5646_v47  ;;  %3627 = vmatmul.mubr.f32.vlgmr.msra.gmra.mxu1 %v1911_v39 }
 0xaa8   :  { %3665 = vmatpush3.msra.mxu1 %v3931_v8  ;;  %3696 = vmatprep.mubr.msk.f32.mxu1 %vm4018_vm0, %v5646_v47 }
 0xaa9   :  { %3666 = vmatprep.subr.mxu1 %v5646_v47 }
 0xaaa   :  { %3667 = vmatpush3.msra.mxu1 %v3932_v6 }
 0xaab   :  { %3668 = vmatprep.subr.mxu1 %v5646_v47 }
 0xaac   :  { %3669 = vmatpush3.msra.mxu1 %v3933_v62  ;;  %v3947_v62 = vld [vmem:[%s5627_s4 + $0x78] sm:$0xff] }
 0xaad   :  { %3670 = vmatprep.subr.mxu1 %v5646_v47 }
 0xaae   :  { %3671 = vmatpush3.msra.mxu1 %v3934_v5 }
 0xaaf   :  { %3672 = vmatprep.subr.mxu1 %v5646_v47 }
 0xab0   :  { %3673 = vmatpush3.msra.mxu1 %v3935_v56 }
 0xab1   :  { %3674 = vmatprep.subr.mxu1 %v5646_v47 }
 0xab2   :  { %3675 = vmatpush3.msra.mxu1 %v3936_v34 }
 0xab3   :  { %3676 = vmatprep.subr.mxu1 %v5646_v47 }
 0xab4   :  { %3677 = vmatpush3.msra.mxu1 %v3937_v55 }
 0xab5   :  { %3678 = vmatprep.subr.mxu1 %v5646_v47 }
 0xab6   :  { %3679 = vmatpush3.msra.mxu1 %v3938_v15  ;;  %v2253_v15 = vld [vmem:[%s5630_s7 + $0x48] sm:$0xff] }
 0xab7   :  { %3680 = vmatprep.subr.mxu1 %v5646_v47 }
 0xab8   :  { %3681 = vmatpush3.msra.mxu1 %v3939_v17  ;;  %v2252_v17 = vld [vmem:[%s5630_s7 + $0x40] sm:$0xff] }
 0xab9   :  { %3682 = vmatprep.subr.mxu1 %v5646_v47 }
 0xaba   :  { %3683 = vmatpush3.msra.mxu1 %v3940_v18  ;;  %v2250_v18 = vld [vmem:[%s5630_s7 + $0x30] sm:$0xff] }
 0xabb   :  { %3684 = vmatprep.subr.mxu1 %v5646_v47 }
 0xabc   :  { %3685 = vmatpush3.msra.mxu1 %v3941_v20 }
 0xabd   :  { %3686 = vmatprep.subr.mxu1 %v5646_v47 }
 0xabe   :  { %3687 = vmatpush3.msra.mxu1 %v3942_v21 }
 0xabf   :  { %3688 = vmatprep.subr.mxu1 %v5646_v47 }
 0xac0   :  { %3689 = vmatpush3.msra.mxu1 %v3943_v22  ;;  %v2249_v22 = vld [vmem:[%s5630_s7 + $0x28] sm:$0xff] }
 0xac1   :  { %3690 = vmatprep.subr.mxu1 %v5646_v47 }
 0xac2   :  { %3691 = vmatpush3.msra.mxu1 %v3944_v23 }
 0xac3   :  { %3692 = vmatprep.subr.mxu1 %v5646_v47 }
 0xac4   :  { %3693 = vmatpush3.msra.mxu1 %v3945_v24  ;;  %v2248_v24 = vld [vmem:[%s5630_s7 + $0x20] sm:$0xff] }
 0xac5   :  { %3694 = vmatprep.subr.mxu1 %v5646_v47 }
 0xac6   :  { %3695 = vmatpush3.msra.mxu1 %v3946_v25 }
 0xac7   :  { %3697 = vmatmul.mubr.f32.vlgmr.msra.gmra.mxu1 %v1911_v39  ;;  %3734 = vmatprep.subr.mxu1 %v5646_v47 }
 0xac8   :  { %3766 = vmatprep.mubr.msk.f32.mxu1 %vm4018_vm0, %v5646_v47 }
 0xb47   :  { %v1820_v26 = vpop.f32.mrf.mxu1 }
 0xb48   :  { %v1821_v28 = vadd.f32 %v5654_v19, %v1820_v26 }
 0xb49   :  { %v3558_v27 = vpop.f32.mrf.mxu1 }
 0xb4a   :  { %v2247_v27 = vld [vmem:[%s5630_s7 + $0x18] sm:$0xff] }
 0xb67   :  { %v1978_v29 = vpop.f32.mrf.mxu1 }
 0xb68   :  { %v1979_v4 = vadd.f32 %v1978_v29, %v1821_v28  ;;  %v2246_v28 = vld [vmem:[%s5630_s7 + $0x10] sm:$0xff]  ;;  %v2244_v29 = vld [vmem:[%s5630_s7] sm:$0xff] }
 0xb69   :  { %v3628_v58 = vpop.f32.mrf.mxu1 }
 0xb6a   :  { %v1982_v10 = vmul.f32 0.5, %v1979_v4 }
 0xb6c   :  { %3864 = vtanh.f32 %v1982_v10 }
 0xb6d   :  { %3866 = vtanh.f32 %v1979_v4 }
 0xb79   :  { %v3865_v59 = vpop.eup %3864 }
 0xb7a   :  { %v1984_v0 = vmul.f32 0.5, %v3865_v59  ;;  %v3867_v16 = vpop.eup %3866 }
 0xb7c   :  { %v1985_v12 = vadd.f32 0.5, %v1984_v0 }
 0xb7e   :  { %v1987_v48 = vsel %vm136_vm2, %v1985_v12, %v3867_v16 }
 0xb7f   :  { %1992 = vrot.lane.b32.xlu0 %v1987_v48, %s4021_s22  ;;  %1988 = vrot.lane.b32.xlu1 %v1987_v48, %s4020_s18 }
 0xb83   :  { %1990 = vrot.lane.b32.xlu1 %v1987_v48, %s4019_s17 }
 0xb87   :  { %v2135_v51 = vpop.f32.mrf.mxu1 }
 0xb88   :  { %v2139_v61 = vadd.f32 %v2135_v51, %v5656_v53  ;;  %v2339_v51 = vld [vmem:[#allocation6 + $0x8] sm:$0xff]  ;;  %v2338_v53 = vld [vmem:[#allocation6] sm:$0xff] }
 0xb89   :  { %v3698_v63 = vpop.f32.mrf.mxu1 }
 0xb8a   :  { %v2140_v1 = vmul.f32 0.5, %v2139_v61 }
 0xb8c   :  { %3868 = vtanh.f32 %v2140_v1 }
 0xb8d   :  { %3870 = vtanh.f32 %v2139_v61  ;;  %v2437_v61 = vld [vmem:[%s5631_s8] ss:$0 sm:$0xff] }
 0xb99   :  { %v3869_v2 = vpop.eup %3868 }
 0xb9a   :  { %v2142_v9 = vmul.f32 0.5, %v3869_v2  ;;  %v3871_v37 = vpop.eup %3870 }
 0xb9c   :  { %v2143_v38 = vadd.f32 0.5, %v2142_v9 }
 0xb9e   :  { %v2145_v35 = vsel %vm136_vm2, %v2143_v38, %v3871_v37  ;;  %v2438_v38 = vld [vmem:[%s5633_s10] ss:$0 sm:$0xff] }
 0xb9f   :  { %2150 = vrot.lane.b32.xlu1 %v2145_v35, %s4021_s22  ;;  %2146 = vrot.lane.b32.xlu0 %v2145_v35, %s4020_s18 }
 0xba3   :  { %2148 = vrot.lane.b32.xlu0 %v2145_v35, %s4019_s17 }
 0xbf1   :  { %v1993_v40 = vpop.permute.xlu0 %1992  ;;  %v1989_v46 = vpop.permute.xlu1 %1988 }
 0xbf2   :  { %v1995_v42 = vmul.f32 %v1993_v40, %v1987_v48  ;;  %v1994_v43 = vmul.f32 %v1989_v46, %v5378_v3 }
 0xbf4   :  { %v5500_v49 = vadd.f32 %v1995_v42, %v1994_v43 }
 0xbf5   :  { %v1991_v8 = vpop.permute.xlu1 %1990 }
 0xbf6   :  { %3872 = vtanh.f32 %v5500_v49 }
 0xc03   :  { %v3873_v39 = vpop.eup %3872 }
 0xc04   :  { %v1998_v6 = vmul.f32 %v3873_v39, %v1991_v8 }
 0xc06   :  { %3662 = vmatmul.mubr.f32.vlgmr.msra.gmra.mxu0 %v1998_v6 }
 0xc07   :  { %3700 = vmatpush3.msra.mxu0 %v3947_v62  ;;  %3731 = vmatprep.mubr.msk.f32.mxu0 %vm4018_vm0, %v5646_v47 }
 0xc08   :  { %3701 = vmatprep.subr.mxu0 %v5646_v47 }
 0xc09   :  { %3702 = vmatpush3.msra.mxu0 %v5064_v54 }
 0xc0a   :  { %3703 = vmatprep.subr.mxu0 %v5646_v47 }
 0xc0b   :  { %3704 = vmatpush3.msra.mxu0 %v5071_v31 }
 0xc0c   :  { %3705 = vmatprep.subr.mxu0 %v5646_v47 }
 0xc0d   :  { %3706 = vmatpush3.msra.mxu0 %v5078_v50 }
 0xc0e   :  { %3707 = vmatprep.subr.mxu0 %v5646_v47 }
 0xc0f   :  { %3708 = vmatpush3.msra.mxu0 %v5085_v60 }
 0xc10   :  { %3709 = vmatprep.subr.mxu0 %v5646_v47 }
 0xc11   :  { %3710 = vmatpush3.msra.mxu0 %v5092_v52  ;;  %v2151_v3 = vpop.permute.xlu1 %2150  ;;  %v2147_v5 = vpop.permute.xlu0 %2146 }
 0xc12   :  { %v2153_v56 = vmul.f32 %v2151_v3, %v2145_v35  ;;  %v2152_v54 = vmul.f32 %v2147_v5, %v5397_v41  ;;  %3711 = vmatprep.subr.mxu0 %v5646_v47 }
 0xc13   :  { %3712 = vmatpush3.msra.mxu0 %v5100_v7  ;;  %v2259_v7 = vld [vmem:[%s5630_s7 + $0x78] sm:$0xff] }
 0xc14   :  { %v2154_v31 = vadd.f32 %v2153_v56, %v2152_v54  ;;  %3713 = vmatprep.subr.mxu0 %v5646_v47  ;;  %3735 = vmatpush3.msra.mxu1 %v2259_v7 }
 0xc15   :  { %3714 = vmatpush3.msra.mxu0 %v5109_v57  ;;  %v2149_v60 = vpop.permute.xlu0 %2148  ;;  %v2258_v57 = vld [vmem:[%s5630_s7 + $0x70] sm:$0xff]  ;;  %3736 = vmatprep.subr.mxu1 %v5646_v47 }
 0xc16   :  { %3874 = vtanh.f32 %v2154_v31  ;;  %3715 = vmatprep.subr.mxu0 %v5646_v47  ;;  %3737 = vmatpush3.msra.mxu1 %v2258_v57 }
 0xc17   :  { %3716 = vmatpush3.msra.mxu0 %v5117_v45  ;;  %v2257_v45 = vld [vmem:[%s5630_s7 + $0x68] sm:$0xff]  ;;  %3738 = vmatprep.subr.mxu1 %v5646_v47 }
 0xc18   :  { %3717 = vmatprep.subr.mxu0 %v5646_v47  ;;  %3739 = vmatpush3.msra.mxu1 %v2257_v45 }
 0xc19   :  { %3718 = vmatpush3.msra.mxu0 %v5124_v11  ;;  %v2256_v11 = vld [vmem:[%s5630_s7 + $0x60] sm:$0xff]  ;;  %3740 = vmatprep.subr.mxu1 %v5646_v47 }
 0xc1a   :  { %3719 = vmatprep.subr.mxu0 %v5646_v47  ;;  %3741 = vmatpush3.msra.mxu1 %v2256_v11 }
 0xc1b   :  { %3720 = vmatpush3.msra.mxu0 %v5131_v13  ;;  %v2255_v13 = vld [vmem:[%s5630_s7 + $0x58] sm:$0xff]  ;;  %3742 = vmatprep.subr.mxu1 %v5646_v47 }
 0xc1c   :  { %3721 = vmatprep.subr.mxu0 %v5646_v47  ;;  %3743 = vmatpush3.msra.mxu1 %v2255_v13 }
 0xc1d   :  { %3722 = vmatpush3.msra.mxu0 %v5138_v30  ;;  %v2254_v30 = vld [vmem:[%s5630_s7 + $0x50] sm:$0xff]  ;;  %3744 = vmatprep.subr.mxu1 %v5646_v47 }
 0xc1e   :  { %3723 = vmatprep.subr.mxu0 %v5646_v47  ;;  %3745 = vmatpush3.msra.mxu1 %v2254_v30 }
 0xc1f   :  { %3724 = vmatpush3.msra.mxu0 %v5145_v32  ;;  %3746 = vmatprep.subr.mxu1 %v5646_v47 }
 0xc20   :  { %3725 = vmatprep.subr.mxu0 %v5646_v47  ;;  %3747 = vmatpush3.msra.mxu1 %v2253_v15 }
 0xc21   :  { %3726 = vmatpush3.msra.mxu0 %v5152_v33  ;;  %3748 = vmatprep.subr.mxu1 %v5646_v47 }
 0xc22   :  { %3727 = vmatprep.subr.mxu0 %v5646_v47  ;;  %3749 = vmatpush3.msra.mxu1 %v2252_v17 }
 0xc23   :  { %v3875_v50 = vpop.eup %3874  ;;  %3728 = vmatpush3.msra.mxu0 %v5159_v36  ;;  %3750 = vmatprep.subr.mxu1 %v5646_v47 }
 0xc24   :  { %v2156_v52 = vmul.f32 %v3875_v50, %v2149_v60  ;;  %3729 = vmatprep.subr.mxu0 %v5646_v47 }
 0xc25   :  { %3730 = vmatpush3.msra.mxu0 %v5166_v44 }
 0xc26   :  { %3732 = vmatmul.mubr.f32.vlgmr.msra.gmra.mxu0 %v2156_v52  ;;  %3769 = vmatprep.subr.mxu0 %v5646_v47 }
 0xc27   :  { %3773 = vmatprep.mubr.msk.f32.mxu0 %vm4018_vm0, %v5646_v47  ;;  %3770 = vmatpush3.msra.mxu0 %v2339_v51 }
 0xc28   :  { %3771 = vmatprep.subr.mxu0 %v5646_v47 }
 0xc29   :  { %3772 = vmatpush3.msra.mxu0 %v2338_v53 }
 0xcc6   :  { %v2065_v32 = vpop.f32.mrf.mxu0 }
 0xcc7   :  { %v2066_v36 = vadd.f32 %v5654_v19, %v2065_v32  ;;  %v2251_v19 = vld [vmem:[%s5630_s7 + $0x38] sm:$0xff] }
 0xcc8   :  { %v3663_v33 = vpop.f32.mrf.mxu0  ;;  %3751 = vmatpush3.msra.mxu1 %v2251_v19 }
 0xcc9   :  { %3752 = vmatprep.subr.mxu1 %v5646_v47 }
 0xcca   :  { %3753 = vmatpush3.msra.mxu1 %v2250_v18 }
 0xccb   :  { %3754 = vmatprep.subr.mxu1 %v5646_v47 }
 0xccc   :  { %3755 = vmatpush3.msra.mxu1 %v2249_v22 }
 0xccd   :  { %3756 = vmatprep.subr.mxu1 %v5646_v47 }
 0xcce   :  { %3757 = vmatpush3.msra.mxu1 %v2248_v24 }
 0xccf   :  { %3758 = vmatprep.subr.mxu1 %v5646_v47 }
 0xcd0   :  { %3759 = vmatpush3.msra.mxu1 %v2247_v27 }
 0xcd1   :  { %3760 = vmatprep.subr.mxu1 %v5646_v47 }
 0xcd2   :  { %3761 = vmatpush3.msra.mxu1 %v2246_v28 }
 0xcd3   :  { %3762 = vmatprep.subr.mxu1 %v5646_v47 }
 0xcd4   :  { %3763 = vmatpush3.msra.mxu1 %v2245_v14 }
 0xcd5   :  { %3764 = vmatprep.subr.mxu1 %v5646_v47 }
 0xcd6   :  { %3765 = vmatpush3.msra.mxu1 %v2244_v29 }
 0xce6   :  { %v2223_v44 = vpop.f32.mrf.mxu0 }
 0xce7   :  { %v2224_v41 = vadd.f32 %v2223_v44, %v2066_v36 }
 0xce8   :  { %v3733_v34 = vpop.f32.mrf.mxu0 }
 0xce9   :  { %v2227_v55 = vmul.f32 0.5, %v2224_v41 }
 0xceb   :  { %3876 = vtanh.f32 %v2227_v55 }
 0xcec   :  { %3878 = vtanh.f32 %v2224_v41 }
 0xcf8   :  { %v3877_v20 = vpop.eup %3876 }
 0xcf9   :  { %v2229_v21 = vmul.f32 0.5, %v3877_v20  ;;  %v3879_v25 = vpop.eup %3878 }
 0xcfb   :  { %v2230_v23 = vadd.f32 0.5, %v2229_v21 }
 0xcfd   :  { %v2232_v26 = vsel %vm136_vm2, %v2230_v23, %v3879_v25 }
 0xcfe   :  { %2237 = vrot.lane.b32.xlu0 %v2232_v26, %s4021_s22  ;;  %2233 = vrot.lane.b32.xlu1 %v2232_v26, %s4020_s18 }
 0xd02   :  { %2235 = vrot.lane.b32.xlu1 %v2232_v26, %s4019_s17 }
 0xd70   :  { %v2238_v4 = vpop.permute.xlu0 %2237  ;;  %v2234_v58 = vpop.permute.xlu1 %2233 }
 0xd71   :  { %v2240_v10 = vmul.f32 %v2238_v4, %v2232_v26  ;;  %v2239_v59 = vmul.f32 %v2234_v58, %v5500_v49 }
 0xd73   :  { %v2241_v0 = vadd.f32 %v2240_v10, %v2239_v59 }
 0xd74   :  { %v2236_v16 = vpop.permute.xlu1 %2235 }
 0xd75   :  { %3880 = vtanh.f32 %v2241_v0 }
 0xd82   :  { %v3881_v12 = vpop.eup %3880 }
 0xd83   :  { %v2243_v48 = vmul.f32 %v3881_v12, %v2236_v16 }
 0xd85   :  { %3767 = vmatmul.mubr.f32.vlgmr.msra.gmra.mxu1 %v2243_v48 }
 0xe45   :  { %v2333_v63 = vpop.f32.mrf.mxu1 }
 0xe46   :  { %v2334_v1 = vadd.f32 %v2437_v61, %v2333_v63 }
 0xe47   :  { %v3768_v2 = vpop.f32.mrf.mxu1 }
 0xe48   :  { %v2337_v9 = vmax.f32 %v2334_v1, 0.0 }
 0xe4a   :  { %3774 = vmatmul.mubr.msk.f32.vlgmr.msra.gmra.mxu0 %vm154_vm1, %v2337_v9 }
 0xf0a   :  { %v2416_v37 = vpop.f32.mrf.mxu0 }
 0xf0b   :  { %v2417_v35 = vadd.f32 %v2438_v38, %v2416_v37 }
 0xf0c   :  { %v3775_v40 = vpop.f32.mrf.mxu0 }
 0xf0d   :  { %2420 = vst [vmem:[%s5634_s11] sm:$0xff] %v2417_v35 }
 0xf0e   :  { %2425 = vsyncpa [#allocation3], 1 }
 0xf0f   :  { %2426 = vsyncpa [#allocation5], 1 }

</bundles_post_ra>
